<compile_context>
chip_gen: v7x
topology: tpu7x:2x2x1
jax: 0.10.0
libtpu: 0.0.40
codegen_flags: <defaults>
</compile_context>

<pallas_src>
import jax
import jax.numpy as jnp
from jax import lax
from jax.experimental import pallas as pl
from jax.experimental.pallas import tpu as pltpu


def _inner_swap_kernel(x1_ref, g1_ref, x2_ref, g2_ref, o1_ref, o2_ref):
    """One grid step: permute the columns of a (bt, L) tile of x1 and x2.

    g*_ref are (1, L) int32 gather tables: out[:, j] = x[:, g[j]].
    """
    L = x1_ref.shape[-1]
    # src[i, j] = i  (source-column index); TPU needs >= 2-D iota.
    src = lax.broadcasted_iota(jnp.int32, (L, L), 0)

    def permute(x_ref, g_ref, o_ref):
        # perm[i, j] = 1.0 iff i == g[j]  ->  (x @ perm)[:, j] = x[:, g[j]].
        # One nonzero (==1.0) per output column + HIGHEST precision => exact selection.
        perm = (src == g_ref[...]).astype(jnp.float32)
        y = jnp.dot(x_ref[...].astype(jnp.float32), perm,
                    preferred_element_type=jnp.float32,
                    precision=lax.Precision.HIGHEST)
        o_ref[...] = y.astype(o_ref.dtype)

    permute(x1_ref, g1_ref, o1_ref)
    permute(x2_ref, g2_ref, o2_ref)


def _pick_batch_tile(B, L, itemsize, max_batch_tile=512, vmem_budget=20 << 20):
    """Batch tile: full array for small B (always a legal block), else a multiple of 8
    sized so the 4 (bt, L) tiles (x1, x2, o1, o2), double-buffered, fit the budget."""
    if B <= max_batch_tile:
        return B
    per_row = L * itemsize * 4 * 2            # 4 tiles, each double-buffered
    bt = min(max_batch_tile, max(8, vmem_budget // per_row))
    return max(8, (bt // 8) * 8)              # multiple of 8 for the (8, 128) layout rule


def inner_swap_gather_fused(x1, g1, x2, g2, *, max_batch_tile=512):
    """Fused launch: out1[:, j] = x1[:, g1[j]], out2[:, j] = x2[:, g2[j]]."""
    assert x1.ndim == 2 and x1.shape == x2.shape
    B, L = x1.shape
    bt = _pick_batch_tile(B, L, jnp.dtype(x1.dtype).itemsize, max_batch_tile)
    grid = (pl.cdiv(B, bt),)

    g1 = g1.reshape(1, L).astype(jnp.int32)
    g2 = g2.reshape(1, L).astype(jnp.int32)

    x_spec = pl.BlockSpec((bt, L), lambda i: (i, 0))
    g_spec = pl.BlockSpec((1, L), lambda i: (0, 0))   # constant block -> fetched once

    o1, o2 = pl.pallas_call(
        _inner_swap_kernel,
        out_shape=(jax.ShapeDtypeStruct((B, L), x1.dtype),
                   jax.ShapeDtypeStruct((B, L), x2.dtype)),
        grid=grid,
        in_specs=[x_spec, g_spec, x_spec, g_spec],
        out_specs=(x_spec, x_spec),
        compiler_params=pltpu.CompilerParams(
            dimension_semantics=("parallel",)),       # batch tiles are independent
    )(x1, g1, x2, g2)
    return o1, o2


def _build_swap_gather_indices(key, L, n_swaps, apply_flag):
    """Replicates
         swap_pair = randint(L, size=(n_swaps, 2))
         x[:, p0], x[:, p1] = x[:, p1], x[:, p0]
       as a column gather map g with out[:, j] = x[:, g[j]].
       RHS values are read from the original x, then the two scatter assignments
       happen in order -> g[p0] = p1, then g[p1] = p0."""
    pair = jax.random.randint(key, (n_swaps, 2), 0, L, dtype=jnp.int32)
    identity = jnp.arange(L, dtype=jnp.int32)
    g = identity
    g = g.at[pair[:, 0]].set(pair[:, 1])   # first scatter assignment
    g = g.at[pair[:, 1]].set(pair[:, 0])   # second scatter assignment
    # TODO(synk): duplicate swap-pair indices resolve nondeterministically in both the
    # torch scatter-assign and jax .at[].set; exact tie-breaking is not reproducible.
    return jnp.where(apply_flag, g, identity)


def inner_swap_augment_forward(batch, key, *, swap_percentage=0.1, apply_prob=0.5,
                               input_shape=(1, 256)):
    """JAX/Pallas equivalent of InnerSwap_Augment.forward."""
    x1, x2, cell_ids = batch['x1'], batch['x2'], batch['cell_ids']
    L = input_shape[1]
    n_swaps = int(L * swap_percentage // 2)
    k1, k2, k3, k4 = jax.random.split(key, 4)
    # torch: s = rand(1); if s < apply_thresh -> augment.  The host branch is folded
    # into an identity gather map when the coin flip says "don't apply".
    apply1 = jax.random.uniform(k1, ()) < apply_prob
    apply2 = jax.random.uniform(k2, ()) < apply_prob
    g1 = _build_swap_gather_indices(k3, L, n_swaps, apply1)
    g2 = _build_swap_gather_indices(k4, L, n_swaps, apply2)
    o1, o2 = inner_swap_gather_fused(x1, g1, x2, g2)
    return {'x1': o1, 'x2': o2, 'cell_ids': cell_ids}, (g1, g2)


if __name__ == "__main__":
    B, L = 4, 256
    key = jax.random.PRNGKey(0)
    kx1, kx2, kfwd = jax.random.split(key, 3)
    x1 = jax.random.normal(kx1, (B, L), dtype=jnp.float32)
    x2 = jax.random.normal(kx2, (B, L), dtype=jnp.float32)
    cell_ids = jnp.arange(B, dtype=jnp.int32)
    batch = {'x1': x1, 'x2': x2, 'cell_ids': cell_ids}

    out, (g1, g2) = inner_swap_augment_forward(
        batch, kfwd, swap_percentage=0.1, apply_prob=0.5, input_shape=(1, L))
    jax.block_until_ready(out)

    # pure-JAX reference for the fused gather hot path
    ref1 = x1[:, g1]
    ref2 = x2[:, g2]
    assert out['x1'].shape == (B, L) and out['x1'].dtype == x1.dtype
    assert jnp.allclose(out['x1'], ref1, atol=1e-6, rtol=1e-6)
    assert jnp.allclose(out['x2'], ref2, atol=1e-6, rtol=1e-6)
    assert jnp.array_equal(out['cell_ids'], cell_ids)

    # exercise the batch-tiled multi-grid-step ("parallel") path
    B2 = 16
    xa = jax.random.normal(jax.random.PRNGKey(1), (B2, L), dtype=jnp.float32)
    xb = jax.random.normal(jax.random.PRNGKey(2), (B2, L), dtype=jnp.float32)
    oa, ob = inner_swap_gather_fused(xa, g1, xb, g2, max_batch_tile=8)
    jax.block_until_ready((oa, ob))
    assert jnp.allclose(oa, xa[:, g1], atol=1e-6, rtol=1e-6)
    assert jnp.allclose(ob, xb[:, g2], atol=1e-6, rtol=1e-6)

    # exercise the ragged (cdiv) path: batch not divisible by the tile
    B3 = 20
    xc = jax.random.normal(jax.random.PRNGKey(3), (B3, L), dtype=jnp.float32)
    xd = jax.random.normal(jax.random.PRNGKey(4), (B3, L), dtype=jnp.float32)
    oc, od = inner_swap_gather_fused(xc, g1, xd, g2, max_batch_tile=8)
    jax.block_until_ready((oc, od))
    assert jnp.allclose(oc, xc[:, g1], atol=1e-6, rtol=1e-6)
    assert jnp.allclose(od, xd[:, g2], atol=1e-6, rtol=1e-6)

    print("KERNEL_OK")
</pallas_src>

<mosaic_0001>
module attributes {stable_mosaic.version = 11 : i64} {
  func.func @_inner_swap_kernel(%arg0: i32, %arg1: memref<4x256xf32, #tpu.memory_space<vmem>>, %arg2: memref<1x256xi32, #tpu.memory_space<vmem>>, %arg3: memref<4x256xf32, #tpu.memory_space<vmem>>, %arg4: memref<1x256xi32, #tpu.memory_space<vmem>>, %arg5: memref<4x256xf32, #tpu.memory_space<vmem>>, %arg6: memref<4x256xf32, #tpu.memory_space<vmem>>) attributes {dimension_semantics = [#tpu.dimension_semantics<parallel>], iteration_bounds = array<i64: 1>, scalar_prefetch = 0 : i64, scratch_operands = 0 : i64, tpu.core_type = #tpu.core_type<tc>, window_params = [{transform_indices = @transform_0, window_bounds = array<i64: 4, 256>}, {pipeline_mode = #tpu.pipeline_mode<synchronous>, transform_indices = @transform_1, window_bounds = array<i64: 1, 256>}, {transform_indices = @transform_2, window_bounds = array<i64: 4, 256>}, {pipeline_mode = #tpu.pipeline_mode<synchronous>, transform_indices = @transform_3, window_bounds = array<i64: 1, 256>}, {transform_indices = @transform_4, window_bounds = array<i64: 4, 256>}, {transform_indices = @transform_5, window_bounds = array<i64: 4, 256>}]} {
    %0 = tpu.iota {dimensions = array<i32: 0>} : vector<256x256xi32>
    %c0 = arith.constant 0 : index
    %c0_0 = arith.constant 0 : index
    %1 = vector.load %arg2[%c0, %c0_0] : memref<1x256xi32, #tpu.memory_space<vmem>>, vector<1x256xi32>
    %2 = vector.broadcast %1 : vector<1x256xi32> to vector<256x256xi32>
    %3 = arith.cmpi eq, %0, %2 : vector<256x256xi32>
    %4 = arith.extui %3 : vector<256x256xi1> to vector<256x256xi32>
    %5 = arith.sitofp %4 : vector<256x256xi32> to vector<256x256xf32>
    %c0_1 = arith.constant 0 : index
    %c0_2 = arith.constant 0 : index
    %6 = vector.load %arg1[%c0_1, %c0_2] : memref<4x256xf32, #tpu.memory_space<vmem>>, vector<4x256xf32>
    %cst = arith.constant dense<0.000000e+00> : vector<4x256xf32>
    %7 = tpu.matmul %6, %5, %cst {dimension_numbers = #tpu.dot_dimension_numbers<[1], [0], [0], [1], [0, 0, 1, 1], [], []>, precision = #tpu.contract_precision<fp32>} : vector<4x256xf32>, vector<256x256xf32>, vector<4x256xf32> -> vector<4x256xf32>
    %c0_3 = arith.constant 0 : index
    %c0_4 = arith.constant 0 : index
    %8 = vector.load %arg5[%c0_3, %c0_4] : memref<4x256xf32, #tpu.memory_space<vmem>>, vector<4x256xf32>
    tpu.vector_store %arg5[%c0_3, %c0_4], %7 {strides = array<i32>} : memref<4x256xf32, #tpu.memory_space<vmem>>, vector<4x256xf32>,
    %c0_5 = arith.constant 0 : index
    %c0_6 = arith.constant 0 : index
    %9 = vector.load %arg4[%c0_5, %c0_6] : memref<1x256xi32, #tpu.memory_space<vmem>>, vector<1x256xi32>
    %10 = vector.broadcast %9 : vector<1x256xi32> to vector<256x256xi32>
    %11 = arith.cmpi eq, %0, %10 : vector<256x256xi32>
    %12 = arith.extui %11 : vector<256x256xi1> to vector<256x256xi32>
    %13 = arith.sitofp %12 : vector<256x256xi32> to vector<256x256xf32>
    %c0_7 = arith.constant 0 : index
    %c0_8 = arith.constant 0 : index
    %14 = vector.load %arg3[%c0_7, %c0_8] : memref<4x256xf32, #tpu.memory_space<vmem>>, vector<4x256xf32>
    %cst_9 = arith.constant dense<0.000000e+00> : vector<4x256xf32>
    %15 = tpu.matmul %14, %13, %cst_9 {dimension_numbers = #tpu.dot_dimension_numbers<[1], [0], [0], [1], [0, 0, 1, 1], [], []>, precision = #tpu.contract_precision<fp32>} : vector<4x256xf32>, vector<256x256xf32>, vector<4x256xf32> -> vector<4x256xf32>
    %c0_10 = arith.constant 0 : index
    %c0_11 = arith.constant 0 : index
    %16 = vector.load %arg6[%c0_10, %c0_11] : memref<4x256xf32, #tpu.memory_space<vmem>>, vector<4x256xf32>
    tpu.vector_store %arg6[%c0_10, %c0_11], %15 {strides = array<i32>} : memref<4x256xf32, #tpu.memory_space<vmem>>, vector<4x256xf32>,
    return
  }
  func.func @transform_0(%arg0: i32) -> (i32, i32) {
    %c0_i32 = arith.constant 0 : i32
    %c0_i32_0 = arith.constant 0 : i32
    return %arg0, %c0_i32 : i32, i32
  }
  func.func @transform_1(%arg0: i32) -> (i32, i32) {
    %c0_i32 = arith.constant 0 : i32
    %c0_i32_0 = arith.constant 0 : i32
    %c0_i32_1 = arith.constant 0 : i32
    return %c0_i32, %c0_i32_0 : i32, i32
  }
  func.func @transform_2(%arg0: i32) -> (i32, i32) {
    %c0_i32 = arith.constant 0 : i32
    %c0_i32_0 = arith.constant 0 : i32
    return %arg0, %c0_i32 : i32, i32
  }
  func.func @transform_3(%arg0: i32) -> (i32, i32) {
    %c0_i32 = arith.constant 0 : i32
    %c0_i32_0 = arith.constant 0 : i32
    %c0_i32_1 = arith.constant 0 : i32
    return %c0_i32, %c0_i32_0 : i32, i32
  }
  func.func @transform_4(%arg0: i32) -> (i32, i32) {
    %c0_i32 = arith.constant 0 : i32
    %c0_i32_0 = arith.constant 0 : i32
    return %arg0, %c0_i32 : i32, i32
  }
  func.func @transform_5(%arg0: i32) -> (i32, i32) {
    %c0_i32 = arith.constant 0 : i32
    %c0_i32_0 = arith.constant 0 : i32
    return %arg0, %c0_i32 : i32, i32
  }
}

</mosaic_0001>

<bundles_post_ra>
// kernel: tpu_custom_call.1
= control target key start
LH: loop header
LB: loop body
LE: loop exit
PB: predicated region body
PF: predicated region fallthrough
CT: control target
= control target key end

     0   :  { %11 = vsyncpa [#allocation3], 0  ;;  %s7132_s0 = inlined_call_operand.hbm [shape: f32[4,256], index: 0, kind: input, shape index: {}]   ;;  %s7133_s1 = inlined_call_operand.vmem [shape: s32[1,256], index: 1, kind: input, shape index: {}]   ;;  %s7134_s2 = inlined_call_operand.hbm [shape: f32[4,256], index: 2, kind: input, shape index: {}]   ;;  %s7135_s3 = inlined_call_operand.vmem [shape: s32[1,256], index: 3, kind: input, shape index: {}]   ;;  %s7136_s4 = inlined_call_operand.hbm [shape: f32[4,256], index: 4, kind: output, shape index: {0}]   ;;  %s7137_s5 = inlined_call_operand.hbm [shape: f32[4,256], index: 5, kind: output, shape index: {1}]  }
   0x1   :  { %12 = vsyncpa [#allocation6], 0 }
   0x2   :  { %13 = vsyncpa [#allocation4], 0 }
   0x3   :  { %14 = vsyncpa [#allocation9], 0  ;;  %s4500_s18 = smov [#allocation2]   ;;  %s4501_s20 = smov [#allocation5]  }
   0x4   :  { %s21_s19 = sshll.u32 %s4500_s18, 4  ;;  %s33_s21 = sshll.u32 %s4501_s20, 4  ;;  %s22_s19 = int_to_ptr.vmem [resolvable:$true] %s21_s19  ;;  %s34_s21 = int_to_ptr.vmem [resolvable:$true] %s33_s21 }
   0x5   :  { %s4404_s24 = scalar_lea.hbm %s7132_s0, 128 }
   0x6   :  { %p4405_p0 = scmp.ne.s32.totalorder %s7132_s0, %s4404_s24  ;;  %p4408_p1 = scmp.lt.u32.totalorder %s4404_s24, %s7132_s0 }
   0x8   :  { %p4410_p2 = pnand %p4408_p1, %p4405_p0 }
   0xa   :  { %4413 = shalt.err (!%p4410_p2)
}
   0xb   :  { %s4414_s29 = scalar_lea.vmem %s22_s19, 128  ;;  %p4419_p4 = scmp.lt.s32.totalorder %s22_s19, %s22_s19 }
   0xc   :  { %p4415_p3 = scmp.ne.s32.totalorder %s22_s19, %s4414_s29  ;;  %p4420_p5 = scmp.lt.s32.totalorder %s4414_s29, %s4414_s29 }
   0xe   :  { %p4421_p6 = por %p4420_p5, %p4419_p4 }
  0x10   :  { %p4422_p7 = pnand %p4421_p6, %p4415_p3 }
  0x12   :  { %4425 = shalt.err (!%p4422_p7)
}
  0x13   :  { %24 = dma.hbm_to_vmem [thread:$0]  %s7132_s0, 128, %s22_s19, [#allocation3]  }
  0x14   :  { %s4426_s9 = scalar_lea.hbm %s7134_s2, 128 }
  0x15   :  { %p4427_p8 = scmp.ne.s32.totalorder %s7134_s2, %s4426_s9  ;;  %p4430_p9 = scmp.lt.u32.totalorder %s4426_s9, %s7134_s2 }
  0x17   :  { %p4432_p10 = pnand %p4430_p9, %p4427_p8 }
  0x19   :  { %4435 = shalt.err (!%p4432_p10)
}
  0x1a   :  { %s4436_s14 = scalar_lea.vmem %s34_s21, 128  ;;  %p4441_p12 = scmp.lt.s32.totalorder %s34_s21, %s34_s21 }
  0x1b   :  { %p4437_p11 = scmp.ne.s32.totalorder %s34_s21, %s4436_s14  ;;  %p4442_p13 = scmp.lt.s32.totalorder %s4436_s14, %s4436_s14 }
  0x1d   :  { %p4443_p0 = por %p4442_p13, %p4441_p12 }
  0x1f   :  { %p4444_p1 = pnand %p4443_p0, %p4437_p11 }
  0x21   :  { %4447 = shalt.err (!%p4444_p1)
}
  0x22   :  { %36 = dma.hbm_to_vmem [thread:$0]  %s7134_s2, 128, %s34_s21, [#allocation6]  }
  0x23   :  { %4492 = dma.done.wait [#allocation3], 128  }
  0x24   :  { %4493 = vsyncadd [#allocation3], 4294967168 }
  0x25   :  { %4494 = dma.done.wait [#allocation6], 128  }
  0x26   :  { %4495 = vsyncadd [#allocation6], 4294967168  ;;  %v45_v0 = vlaneseq  ;;  %v78_v14 = vld [vmem:[%s7133_s1] sm:$0x3]  ;;  %v7170_v26 = vmov 0.0   ;;  %v7725_v29 = vmov 0 }
  0x27   :  { %v1572_v15 = vld [vmem:[%s7135_s3] sm:$0x3]  ;;  %v7144_v32 = vmov 1.0|1.0   ;;  %v7730_v35 = vmov 0  ;;  %v7733_v40 = vmov 0 }
  0x28   :  { %v4560_v1 = vshrl.u32 %v45_v0, 7  ;;  %v7738_v45 = vmov 0  ;;  %v7743_v52 = vmov 0  ;;  %v7746_v57 = vmov 0  ;;  %s4504_s1 = smov [#allocation7]   ;;  %s4505_s19 = smov [#allocation8]  }
  0x29   :  { %s3072_s3 = sshll.u32 %s4504_s1, 4  ;;  %s3082_s20 = sshll.u32 %s4505_s19, 4  ;;  %s3073_s3 = int_to_ptr.vmem [resolvable:$true] %s3072_s3  ;;  %s3083_s20 = int_to_ptr.vmem [resolvable:$true] %s3082_s20 }
  0x2a   :  { %v81_v2 = vsub.s32 0, %v4560_v1  ;;  %v85_v3 = vsub.s32 1, %v4560_v1  ;;  %v47_v4 = vadd.s32 8, %v4560_v1  ;;  %v4566_v5 = vadd.s32 16, %v4560_v1  ;;  %s4448_s21 = scalar_lea.vmem %s3073_s3, 128  ;;  %p4453_p3 = scmp.lt.s32.totalorder %s3073_s3, %s3073_s3 }
  0x2b   :  { %v4569_v6 = vadd.s32 24, %v4560_v1  ;;  %v4572_v7 = vadd.s32 32, %v4560_v1  ;;  %v4575_v8 = vadd.s32 40, %v4560_v1  ;;  %v4578_v9 = vadd.s32 48, %v4560_v1  ;;  %p4449_p2 = scmp.ne.s32.totalorder %s3073_s3, %s4448_s21  ;;  %p4454_p4 = scmp.lt.s32.totalorder %s4448_s21, %s4448_s21 }
  0x2c   :  { %v4581_v10 = vadd.s32 56, %v4560_v1  ;;  %v4584_v11 = vadd.s32 64, %v4560_v1  ;;  %v4587_v12 = vadd.s32 72, %v4560_v1  ;;  %v4590_v13 = vadd.s32 80, %v4560_v1 }
  0x2d   :  { %v4599_v16 = vadd.s32 88, %v4560_v1  ;;  %v4602_v17 = vadd.s32 96, %v4560_v1  ;;  %v4604_v18 = vrot.slane %v78_v14, %v81_v2  ;;  %v4606_v19 = vrot.slane %v78_v14, %v85_v3  ;;  %p4455_p5 = por %p4454_p4, %p4453_p3 }
  0x2e   :  { %v4608_v20 = vrot.slane %v1572_v15, %v81_v2  ;;  %v4610_v21 = vrot.slane %v1572_v15, %v85_v3  ;;  %v4613_v22 = vadd.s32 104, %v4560_v1  ;;  %v4616_v23 = vadd.s32 112, %v4560_v1 }
  0x2f   :  { %v4619_v24 = vadd.s32 120, %v4560_v1  ;;  %v4622_v25 = vadd.s32 128, %v4560_v1  ;;  %vm88_vm0 = vcmp.eq.s32.totalorder %v4560_v1, %v4606_v19  ;;  %vm90_vm1 = vcmp.eq.s32.totalorder %v47_v4, %v4606_v19  ;;  %p4456_p6 = pnand %p4455_p5, %p4449_p2 }
  0x30   :  { %vm1582_vm2 = vcmp.eq.s32.totalorder %v4560_v1, %v4610_v21  ;;  %vm1584_vm3 = vcmp.eq.s32.totalorder %v47_v4, %v4610_v21  ;;  %v3097_v27 = vsel %vm88_vm0, 1.0, %v7170_v26  ;;  %v3099_v28 = vsel %vm90_vm1, 1.0, %v7170_v26  ;;  %vm4632_vm4 = vmpackc.low %vm90_vm1, %vm88_vm0 }
  0x31   :  { %v7726_v29 = vsel %vm4632_vm4, 4294967295, %v7725_v29  ;;  %v3353_v30 = vsel %vm1582_vm2, 1.0, %v7170_v26  ;;  %v3355_v31 = vsel %vm1584_vm3, 1.0, %v7170_v26  ;;  %3609 = vmatprep.subr.msk.bf16.mxu0 %vm4632_vm4, %v7144_v32  ;;  %v4641_v33 = vsub.f32 %v3097_v27, %v3097_v27  ;;  %vm4645_vm5 = vmpackc.low %vm1584_vm3, %vm1582_vm2 }
  0x32   :  { %7727 = vst [vmem:[#allocation14_spill] sm:$0xff] %v7726_v29  ;;  %v4643_v34 = vsub.f32 %v3099_v28, %v3099_v28  ;;  %v7731_v35 = vsel %vm4645_vm5, 4294967295, %v7730_v35  ;;  %v4649_v36 = vsub.f32 %v3353_v30, %v3353_v30  ;;  %v4651_v37 = vsub.f32 %v3355_v31, %v3355_v31  ;;  %3993 = vmatprep.subr.msk.bf16.mxu1 %vm4645_vm5, %v7144_v32 }
  0x33   :  { %7728 = vst [vmem:[#allocation15_spill] sm:$0xff] %v4641_v33  ;;  %7732 = vst [vmem:[#allocation17_spill] sm:$0xff] %v7731_v35  ;;  %vm87_vm6 = vcmp.eq.s32.totalorder %v4560_v1, %v4604_v18  ;;  %vm89_vm7 = vcmp.eq.s32.totalorder %v47_v4, %v4604_v18  ;;  %vm1581_vm8 = vcmp.eq.s32.totalorder %v4560_v1, %v4608_v20  ;;  %v7753_v30 = vmov 0 }
  0x34   :  { %7729 = vst [vmem:[#allocation16_spill] sm:$0xff] %v4643_v34  ;;  %vm1583_vm9 = vcmp.eq.s32.totalorder %v47_v4, %v4608_v20  ;;  %v3096_v38 = vsel %vm87_vm6, 1.0, %v7170_v26  ;;  %v3098_v39 = vsel %vm89_vm7, 1.0, %v7170_v26  ;;  %vm4664_vm10 = vmpackc.low %vm89_vm7, %vm87_vm6  ;;  %v3352_v41 = vsel %vm1581_vm8, 1.0, %v7170_v26 }
  0x35   :  { %v7734_v40 = vsel %vm4664_vm10, 4294967295, %v7733_v40  ;;  %v3354_v42 = vsel %vm1583_vm9, 1.0, %v7170_v26  ;;  %3611 = vmatpush1.bf16.msk.msra.mxu0 %vm4664_vm10, %v7144_v32  ;;  %v4673_v43 = vsub.f32 %v3096_v38, %v3096_v38  ;;  %v4675_v44 = vsub.f32 %v3098_v39, %v3098_v39  ;;  %vm4677_vm11 = vmpackc.low %vm1583_vm9, %vm1581_vm8 }
  0x36   :  { %7735 = vst [vmem:[#allocation18_spill] sm:$0xff] %v7734_v40  ;;  %v7739_v45 = vsel %vm4677_vm11, 4294967295, %v7738_v45  ;;  %v4681_v46 = vsub.f32 %v3352_v41, %v3352_v41  ;;  %v4683_v47 = vsub.f32 %v3354_v42, %v3354_v42  ;;  %3995 = vmatpush1.bf16.msk.msra.mxu1 %vm4677_vm11, %v7144_v32  ;;  %vm92_vm12 = vcmp.eq.s32.totalorder %v4566_v5, %v4606_v19 }
  0x37   :  { %7736 = vst [vmem:[#allocation19_spill] sm:$0xff] %v4673_v43  ;;  %7737 = vst [vmem:[#allocation20_spill] sm:$0xff] %v4675_v44  ;;  %vm94_vm13 = vcmp.eq.s32.totalorder %v4569_v6, %v4606_v19  ;;  %vm1586_vm14 = vcmp.eq.s32.totalorder %v4566_v5, %v4610_v21  ;;  %vm1588_vm15 = vcmp.eq.s32.totalorder %v4569_v6, %v4610_v21  ;;  %v7141_v48 = vand.u32 4294901760, %v4673_v43 }
  0x38   :  { %7740 = vst [vmem:[#allocation21_spill] sm:$0xff] %v7739_v45  ;;  %7741 = vst [vmem:[#allocation22_spill] sm:$0xff] %v4681_v46  ;;  %v7140_v49 = vand.u32 4294901760, %v4675_v44  ;;  %v7139_v50 = vand.u32 4294901760, %v4681_v46  ;;  %v7138_v51 = vand.u32 4294901760, %v4683_v47  ;;  %v3101_v53 = vsel %vm92_vm12, 1.0, %v7170_v26 }
  0x39   :  { %7742 = vst [vmem:[#allocation23_spill] sm:$0xff] %v4683_v47  ;;  %vm4700_vm0 = vmpackc.low %vm94_vm13, %vm92_vm12  ;;  %v3103_v54 = vsel %vm94_vm13, 1.0, %v7170_v26  ;;  %v3357_v55 = vsel %vm1586_vm14, 1.0, %v7170_v26  ;;  %v3359_v56 = vsel %vm1588_vm15, 1.0, %v7170_v26  ;;  %v4718_v58 = vsub.f32 %v4673_v43, %v7141_v48 }
  0x3a   :  { %v7744_v52 = vsel %vm4700_vm0, 4294967295, %v7743_v52  ;;  %3613 = vmatprep.subr.msk.bf16.mxu0 %vm4700_vm0, %v7144_v32  ;;  %vm4711_vm1 = vmpackc.low %vm1588_vm15, %vm1586_vm14  ;;  %v4723_v59 = vsub.f32 %v4675_v44, %v7140_v49  ;;  %v4728_v60 = vsub.f32 %v4681_v46, %v7139_v50  ;;  %v4733_v61 = vsub.f32 %v4683_v47, %v7138_v51 }
  0x3b   :  { %7745 = vst [vmem:[#allocation24_spill] sm:$0xff] %v7744_v52  ;;  %v7747_v57 = vsel %vm4711_vm1, 4294967295, %v7746_v57  ;;  %3997 = vmatprep.subr.msk.bf16.mxu1 %vm4711_vm1, %v7144_v32  ;;  %v4738_v62 = vsub.f32 %v3101_v53, %v3101_v53  ;;  %v4740_v63 = vsub.f32 %v3103_v54, %v3103_v54  ;;  %v4742_v0 = vsub.f32 %v3357_v55, %v3357_v55 }
  0x3c   :  { %7748 = vst [vmem:[#allocation25_spill] sm:$0xff] %v7747_v57  ;;  %v4744_v2 = vsub.f32 %v3359_v56, %v3359_v56  ;;  %vm91_vm2 = vcmp.eq.s32.totalorder %v4566_v5, %v4604_v18  ;;  %vm93_vm3 = vcmp.eq.s32.totalorder %v4569_v6, %v4604_v18  ;;  %vm1585_vm6 = vcmp.eq.s32.totalorder %v4566_v5, %v4608_v20 }
  0x3d   :  { %7749 = vst [vmem:[#allocation26_spill] sm:$0xff] %v4738_v62  ;;  %7750 = vst [vmem:[#allocation27_spill] sm:$0xff] %v4740_v63  ;;  %vm1587_vm7 = vcmp.eq.s32.totalorder %v4569_v6, %v4608_v20  ;;  %v3100_v27 = vsel %vm91_vm2, 1.0, %v7170_v26  ;;  %v3102_v28 = vsel %vm93_vm3, 1.0, %v7170_v26  ;;  %v3356_v31 = vsel %vm1585_vm6, 1.0, %v7170_v26 }
  0x3e   :  { %7751 = vst [vmem:[#allocation28_spill] sm:$0xff] %v4742_v0  ;;  %7752 = vst [vmem:[#allocation29_spill] sm:$0xff] %v4744_v2  ;;  %v3358_v38 = vsel %vm1587_vm7, 1.0, %v7170_v26  ;;  %v4769_v5 = vsub.f32 %v3100_v27, %v3100_v27  ;;  %v4771_v39 = vsub.f32 %v3102_v28, %v3102_v28  ;;  %v7758_v6 = vmov 0 }
  0x3f   :  { %vm4760_vm8 = vmpackc.low %vm93_vm3, %vm91_vm2  ;;  %v4777_v41 = vsub.f32 %v3356_v31, %v3356_v31  ;;  %v4779_v42 = vsub.f32 %v3358_v38, %v3358_v38  ;;  %vm96_vm12 = vcmp.eq.s32.totalorder %v4572_v7, %v4606_v19  ;;  %vm98_vm13 = vcmp.eq.s32.totalorder %v4575_v8, %v4606_v19 }
  0x40   :  { %v7754_v30 = vsel %vm4760_vm8, 4294967295, %v7753_v30  ;;  %3615 = vmatpush1.bf16.msk.msra.mxu0 %vm4760_vm8, %v7144_v32  ;;  %7756 = vst [vmem:[#allocation31_spill] sm:$0xff] %v4769_v5  ;;  %7757 = vst [vmem:[#allocation32_spill] sm:$0xff] %v4771_v39  ;;  %vm1590_vm14 = vcmp.eq.s32.totalorder %v4572_v7, %v4610_v21  ;;  %vm1592_vm15 = vcmp.eq.s32.totalorder %v4575_v8, %v4610_v21  ;;  %v7763_v27 = vmov 0 }
  0x41   :  { %7755 = vst [vmem:[#allocation30_spill] sm:$0xff] %v7754_v30  ;;  %vm4773_vm9 = vmpackc.low %vm1587_vm7, %vm1585_vm6  ;;  %v3105_v28 = vsel %vm96_vm12, 1.0, %v7170_v26  ;;  %v3107_v31 = vsel %vm98_vm13, 1.0, %v7170_v26  ;;  %v3361_v38 = vsel %vm1590_vm14, 1.0, %v7170_v26  ;;  %v3363_v51 = vsel %vm1592_vm15, 1.0, %v7170_v26 }
  0x42   :  { %v7759_v6 = vsel %vm4773_vm9, 4294967295, %v7758_v6  ;;  %7761 = vst [vmem:[#allocation34_spill] sm:$0xff] %v4777_v41  ;;  %7762 = vst [vmem:[#allocation35_spill] sm:$0xff] %v4779_v42  ;;  %3999 = vmatpush1.bf16.msk.msra.mxu1 %vm4773_vm9, %v7144_v32  ;;  %v7766_v50 = vmov 0  ;;  %v4811_v49 = vsub.f32 %v3105_v28, %v3105_v28  ;;  %v4813_v48 = vsub.f32 %v3107_v31, %v3107_v31 }
  0x43   :  { %7760 = vst [vmem:[#allocation33_spill] sm:$0xff] %v7759_v6  ;;  %vm4796_vm2 = vmpackc.low %vm98_vm13, %vm96_vm12  ;;  %v4818_v56 = vsub.f32 %v3361_v38, %v3361_v38  ;;  %v4820_v55 = vsub.f32 %v3363_v51, %v3363_v51  ;;  %vm95_vm6 = vcmp.eq.s32.totalorder %v4572_v7, %v4604_v18  ;;  %vm97_vm7 = vcmp.eq.s32.totalorder %v4575_v8, %v4604_v18 }
  0x44   :  { %v7764_v27 = vsel %vm4796_vm2, 4294967295, %v7763_v27  ;;  %3617 = vmatprep.subr.msk.bf16.mxu0 %vm4796_vm2, %v7144_v32  ;;  %vm4807_vm3 = vmpackc.low %vm1592_vm15, %vm1590_vm14  ;;  %7769 = vst [vmem:[#allocation38_spill] sm:$0xff] %v4811_v49  ;;  %vm1589_vm12 = vcmp.eq.s32.totalorder %v4572_v7, %v4608_v20  ;;  %vm1591_vm13 = vcmp.eq.s32.totalorder %v4575_v8, %v4608_v20  ;;  %v3104_v28 = vsel %vm95_vm6, 1.0, %v7170_v26 }
  0x45   :  { %7765 = vst [vmem:[#allocation36_spill] sm:$0xff] %v7764_v27  ;;  %v7767_v50 = vsel %vm4807_vm3, 4294967295, %v7766_v50  ;;  %7770 = vst [vmem:[#allocation39_spill] sm:$0xff] %v4813_v48  ;;  %4001 = vmatprep.subr.msk.bf16.mxu1 %vm4807_vm3, %v7144_v32  ;;  %v3106_v31 = vsel %vm97_vm7, 1.0, %v7170_v26  ;;  %v7773_v38 = vmov 0  ;;  %v3360_v51 = vsel %vm1589_vm12, 1.0, %v7170_v26 }
  0x46   :  { %7768 = vst [vmem:[#allocation37_spill] sm:$0xff] %v7767_v50  ;;  %7771 = vst [vmem:[#allocation40_spill] sm:$0xff] %v4818_v56  ;;  %v3362_v54 = vsel %vm1591_vm13, 1.0, %v7170_v26  ;;  %v4841_v7 = vsub.f32 %v3104_v28, %v3104_v28  ;;  %v4843_v53 = vsub.f32 %v3106_v31, %v3106_v31  ;;  %v7778_v8 = vmov 0 }
  0x47   :  { %7772 = vst [vmem:[#allocation41_spill] sm:$0xff] %v4820_v55  ;;  %vm4832_vm14 = vmpackc.low %vm97_vm7, %vm95_vm6  ;;  %v4849_v15 = vsub.f32 %v3360_v51, %v3360_v51  ;;  %v4851_v14 = vsub.f32 %v3362_v54, %v3362_v54  ;;  %vm100_vm6 = vcmp.eq.s32.totalorder %v4578_v9, %v4606_v19  ;;  %vm102_vm7 = vcmp.eq.s32.totalorder %v4581_v10, %v4606_v19 }
  0x48   :  { %v7774_v38 = vsel %vm4832_vm14, 4294967295, %v7773_v38  ;;  %3619 = vmatpush1.bf16.msk.msra.mxu0 %vm4832_vm14, %v7144_v32  ;;  %7776 = vst [vmem:[#allocation43_spill] sm:$0xff] %v4841_v7  ;;  %7777 = vst [vmem:[#allocation44_spill] sm:$0xff] %v4843_v53  ;;  %v7783_v4 = vmov 0  ;;  %v3109_v3 = vsel %vm100_vm6, 1.0, %v7170_v26  ;;  %v7787_v31 = vmov 0 }
  0x49   :  { %7775 = vst [vmem:[#allocation42_spill] sm:$0xff] %v7774_v38  ;;  %vm4845_vm15 = vmpackc.low %vm1591_vm13, %vm1589_vm12  ;;  %vm1594_vm12 = vcmp.eq.s32.totalorder %v4578_v9, %v4610_v21  ;;  %vm1596_vm13 = vcmp.eq.s32.totalorder %v4581_v10, %v4610_v21  ;;  %v4883_v51 = vsub.f32 %v3109_v3, %v3109_v3 }
  0x4a   :  { %v7779_v8 = vsel %vm4845_vm15, 4294967295, %v7778_v8  ;;  %7781 = vst [vmem:[#allocation46_spill] sm:$0xff] %v4849_v15  ;;  %7782 = vst [vmem:[#allocation47_spill] sm:$0xff] %v4851_v14  ;;  %4003 = vmatpush1.bf16.msk.msra.mxu1 %vm4845_vm15, %v7144_v32  ;;  %v3111_v32 = vsel %vm102_vm7, 1.0, %v7170_v26  ;;  %v3365_v28 = vsel %vm1594_vm12, 1.0, %v7170_v26  ;;  %v3367_v54 = vsel %vm1596_vm13, 1.0, %v7170_v26 }
  0x4b   :  { %7780 = vst [vmem:[#allocation45_spill] sm:$0xff] %v7779_v8  ;;  %vm4868_vm15 = vmpackc.low %vm102_vm7, %vm100_vm6  ;;  %v7786_v8 = vmov 1.0|1.0   ;;  %v4885_v38 = vsub.f32 %v3111_v32, %v3111_v32  ;;  %v4890_v50 = vsub.f32 %v3365_v28, %v3365_v28  ;;  %vm99_vm6 = vcmp.eq.s32.totalorder %v4578_v9, %v4604_v18 }
  0x4c   :  { %v7784_v4 = vsel %vm4868_vm15, 4294967295, %v7783_v4  ;;  %3621 = vmatprep.subr.msk.bf16.mxu0 %vm4868_vm15, %v7786_v8  ;;  %vm4879_vm14 = vmpackc.low %vm1596_vm13, %vm1594_vm12  ;;  %7790 = vst [vmem:[#allocation50_spill] sm:$0xff] %v4883_v51  ;;  %vm101_vm7 = vcmp.eq.s32.totalorder %v4581_v10, %v4604_v18  ;;  %vm1593_vm12 = vcmp.eq.s32.totalorder %v4578_v9, %v4608_v20  ;;  %vm1595_vm13 = vcmp.eq.s32.totalorder %v4581_v10, %v4608_v20 }
  0x4d   :  { %7785 = vst [vmem:[#allocation48_spill] sm:$0xff] %v7784_v4  ;;  %v7788_v31 = vsel %vm4879_vm14, 4294967295, %v7787_v31  ;;  %7791 = vst [vmem:[#allocation51_spill] sm:$0xff] %v4885_v38  ;;  %4005 = vmatprep.subr.msk.bf16.mxu1 %vm4879_vm14, %v7786_v8  ;;  %v4892_v4 = vsub.f32 %v3367_v54, %v3367_v54  ;;  %v3108_v32 = vsel %vm99_vm6, 1.0, %v7170_v26  ;;  %v3110_v3 = vsel %vm101_vm7, 1.0, %v7170_v26 }
  0x4e   :  { %7789 = vst [vmem:[#allocation49_spill] sm:$0xff] %v7788_v31  ;;  %7792 = vst [vmem:[#allocation52_spill] sm:$0xff] %v4890_v50  ;;  %v7794_v28 = vmov 0  ;;  %v3364_v54 = vsel %vm1593_vm12, 1.0, %v7170_v26  ;;  %v3366_v31 = vsel %vm1595_vm13, 1.0, %v7170_v26  ;;  %v4913_v9 = vsub.f32 %v3108_v32, %v3108_v32 }
  0x4f   :  { %7793 = vst [vmem:[#allocation53_spill] sm:$0xff] %v4892_v4  ;;  %vm4904_vm14 = vmpackc.low %vm101_vm7, %vm99_vm6  ;;  %v4915_v6 = vsub.f32 %v3110_v3, %v3110_v3  ;;  %v7799_v10 = vmov 0  ;;  %v4921_v27 = vsub.f32 %v3364_v54, %v3364_v54  ;;  %v4923_v30 = vsub.f32 %v3366_v31, %v3366_v31 }
  0x50   :  { %v7795_v28 = vsel %vm4904_vm14, 4294967295, %v7794_v28  ;;  %3623 = vmatpush1.bf16.msk.msra.mxu0 %vm4904_vm14, %v7786_v8  ;;  %7797 = vst [vmem:[#allocation55_spill] sm:$0xff] %v4913_v9  ;;  %vm4917_vm15 = vmpackc.low %vm1595_vm13, %vm1593_vm12  ;;  %vm104_vm6 = vcmp.eq.s32.totalorder %v4584_v11, %v4606_v19  ;;  %vm106_vm7 = vcmp.eq.s32.totalorder %v4587_v12, %v4606_v19  ;;  %vm1598_vm12 = vcmp.eq.s32.totalorder %v4584_v11, %v4610_v21 }
  0x51   :  { %7796 = vst [vmem:[#allocation54_spill] sm:$0xff] %v7795_v28  ;;  %7798 = vst [vmem:[#allocation56_spill] sm:$0xff] %v4915_v6  ;;  %v7800_v10 = vsel %vm4917_vm15, 4294967295, %v7799_v10  ;;  %4007 = vmatpush1.bf16.msk.msra.mxu1 %vm4917_vm15, %v7786_v8  ;;  %vm1600_vm13 = vcmp.eq.s32.totalorder %v4587_v12, %v4610_v21  ;;  %v7804_v26 = vmov 0  ;;  %v7808_v3 = vmov 0 }
  0x52   :  { %7801 = vst [vmem:[#allocation57_spill] sm:$0xff] %v7800_v10  ;;  %7802 = vst [vmem:[#allocation58_spill] sm:$0xff] %v4921_v27  ;;  %v7807_v10 = vmov 0.0  }
  0x53   :  { %7803 = vst [vmem:[#allocation59_spill] sm:$0xff] %v4923_v30  ;;  %vm4940_vm15 = vmpackc.low %vm106_vm7, %vm104_vm6  ;;  %v3113_v28 = vsel %vm104_vm6, 1.0, %v7807_v10  ;;  %v3115_v57 = vsel %vm106_vm7, 1.0, %v7807_v10  ;;  %v3369_v32 = vsel %vm1598_vm12, 1.0, %v7807_v10  ;;  %v3371_v31 = vsel %vm1600_vm13, 1.0, %v7807_v10 }
  0x54   :  { %v7805_v26 = vsel %vm4940_vm15, 4294967295, %v7804_v26  ;;  %3625 = vmatprep.subr.msk.bf16.mxu0 %vm4940_vm15, %v7786_v8  ;;  %vm4951_vm14 = vmpackc.low %vm1600_vm13, %vm1598_vm12  ;;  %v4955_v54 = vsub.f32 %v3113_v28, %v3113_v28  ;;  %v4957_v45 = vsub.f32 %v3115_v57, %v3115_v57  ;;  %v4962_v52 = vsub.f32 %v3369_v32, %v3369_v32 }
  0x55   :  { %7806 = vst [vmem:[#allocation60_spill] sm:$0xff] %v7805_v26  ;;  %v7809_v3 = vsel %vm4951_vm14, 4294967295, %v7808_v3  ;;  %4009 = vmatprep.subr.msk.bf16.mxu1 %vm4951_vm14, %v7786_v8  ;;  %v4964_v26 = vsub.f32 %v3371_v31, %v3371_v31  ;;  %vm103_vm6 = vcmp.eq.s32.totalorder %v4584_v11, %v4604_v18  ;;  %vm105_vm7 = vcmp.eq.s32.totalorder %v4587_v12, %v4604_v18 }
  0x56   :  { %7810 = vst [vmem:[#allocation61_spill] sm:$0xff] %v7809_v3  ;;  %7811 = vst [vmem:[#allocation62_spill] sm:$0xff] %v4955_v54  ;;  %vm1597_vm12 = vcmp.eq.s32.totalorder %v4584_v11, %v4608_v20  ;;  %vm1599_vm13 = vcmp.eq.s32.totalorder %v4587_v12, %v4608_v20  ;;  %v3112_v57 = vsel %vm103_vm6, 1.0, %v7807_v10  ;;  %v3114_v28 = vsel %vm105_vm7, 1.0, %v7807_v10 }
  0x57   :  { %7812 = vst [vmem:[#allocation63_spill] sm:$0xff] %v4957_v45  ;;  %7813 = vst [vmem:[#allocation64_spill] sm:$0xff] %v4962_v52  ;;  %v7815_v32 = vmov 0  ;;  %v3368_v31 = vsel %vm1597_vm12, 1.0, %v7807_v10  ;;  %v3370_v3 = vsel %vm1599_vm13, 1.0, %v7807_v10  ;;  %v4985_v11 = vsub.f32 %v3112_v57, %v3112_v57 }
  0x58   :  { %7814 = vst [vmem:[#allocation65_spill] sm:$0xff] %v4964_v26  ;;  %vm4976_vm14 = vmpackc.low %vm105_vm7, %vm103_vm6  ;;  %v4987_v40 = vsub.f32 %v3114_v28, %v3114_v28  ;;  %v7820_v12 = vmov 0  ;;  %v4993_v35 = vsub.f32 %v3368_v31, %v3368_v31  ;;  %v4995_v29 = vsub.f32 %v3370_v3, %v3370_v3 }
  0x59   :  { %v7816_v32 = vsel %vm4976_vm14, 4294967295, %v7815_v32  ;;  %3627 = vmatpush1.bf16.msk.msra.mxu0 %vm4976_vm14, %v7786_v8  ;;  %7818 = vst [vmem:[#allocation67_spill] sm:$0xff] %v4985_v11  ;;  %vm4989_vm15 = vmpackc.low %vm1599_vm13, %vm1597_vm12  ;;  %vm108_vm6 = vcmp.eq.s32.totalorder %v4590_v13, %v4606_v19  ;;  %vm110_vm7 = vcmp.eq.s32.totalorder %v4599_v16, %v4606_v19  ;;  %vm1602_vm12 = vcmp.eq.s32.totalorder %v4590_v13, %v4610_v21 }
  0x5a   :  { %7817 = vst [vmem:[#allocation66_spill] sm:$0xff] %v7816_v32  ;;  %7819 = vst [vmem:[#allocation68_spill] sm:$0xff] %v4987_v40  ;;  %v7821_v12 = vsel %vm4989_vm15, 4294967295, %v7820_v12  ;;  %4011 = vmatpush1.bf16.msk.msra.mxu1 %vm4989_vm15, %v7786_v8  ;;  %vm1604_vm13 = vcmp.eq.s32.totalorder %v4599_v16, %v4610_v21  ;;  %v3117_v32 = vsel %vm108_vm6, 1.0, %v7807_v10  ;;  %v3119_v47 = vsel %vm110_vm7, 1.0, %v7807_v10 }
  0x5b   :  { %7822 = vst [vmem:[#allocation69_spill] sm:$0xff] %v7821_v12  ;;  %7823 = vst [vmem:[#allocation70_spill] sm:$0xff] %v4993_v35  ;;  %v7825_v12 = vmov 0  ;;  %v3373_v57 = vsel %vm1602_vm12, 1.0, %v7807_v10  ;;  %v3375_v3 = vsel %vm1604_vm13, 1.0, %v7807_v10  ;;  %v7828_v28 = vmov 0 }
  0x5c   :  { %7824 = vst [vmem:[#allocation71_spill] sm:$0xff] %v4995_v29  ;;  %vm5012_vm15 = vmpackc.low %vm110_vm7, %vm108_vm6  ;;  %v5027_v31 = vsub.f32 %v3117_v32, %v3117_v32  ;;  %v5029_v46 = vsub.f32 %v3119_v47, %v3119_v47  ;;  %v5034_v44 = vsub.f32 %v3373_v57, %v3373_v57  ;;  %vm107_vm6 = vcmp.eq.s32.totalorder %v4590_v13, %v4604_v18 }
  0x5d   :  { %v7826_v12 = vsel %vm5012_vm15, 4294967295, %v7825_v12  ;;  %3629 = vmatprep.subr.msk.bf16.mxu0 %vm5012_vm15, %v7786_v8  ;;  %vm5023_vm14 = vmpackc.low %vm1604_vm13, %vm1602_vm12  ;;  %vm109_vm7 = vcmp.eq.s32.totalorder %v4599_v16, %v4604_v18  ;;  %vm1601_vm12 = vcmp.eq.s32.totalorder %v4590_v13, %v4608_v20  ;;  %vm1603_vm13 = vcmp.eq.s32.totalorder %v4599_v16, %v4608_v20 }
  0x5e   :  { %7827 = vst [vmem:[#allocation72_spill] sm:$0xff] %v7826_v12  ;;  %v7829_v28 = vsel %vm5023_vm14, 4294967295, %v7828_v28  ;;  %7831 = vst [vmem:[#allocation74_spill] sm:$0xff] %v5027_v31  ;;  %4013 = vmatprep.subr.msk.bf16.mxu1 %vm5023_vm14, %v7786_v8  ;;  %v5036_v12 = vsub.f32 %v3375_v3, %v3375_v3  ;;  %v3116_v47 = vsel %vm107_vm6, 1.0, %v7807_v10  ;;  %v3118_v32 = vsel %vm109_vm7, 1.0, %v7807_v10 }
  0x5f   :  { %7830 = vst [vmem:[#allocation73_spill] sm:$0xff] %v7829_v28  ;;  %7832 = vst [vmem:[#allocation75_spill] sm:$0xff] %v5029_v46  ;;  %v7835_v57 = vmov 0  ;;  %v3372_v3 = vsel %vm1601_vm12, 1.0, %v7807_v10  ;;  %v3374_v28 = vsel %vm1603_vm13, 1.0, %v7807_v10  ;;  %v5057_v13 = vsub.f32 %v3116_v47, %v3116_v47 }
  0x60   :  { %7833 = vst [vmem:[#allocation76_spill] sm:$0xff] %v5034_v44  ;;  %7834 = vst [vmem:[#allocation77_spill] sm:$0xff] %v5036_v12  ;;  %v5059_v43 = vsub.f32 %v3118_v32, %v3118_v32  ;;  %v7840_v16 = vmov 0  ;;  %v5065_v12 = vsub.f32 %v3372_v3, %v3372_v3  ;;  %v5067_v44 = vsub.f32 %v3374_v28, %v3374_v28 }
  0x61   :  { %vm5048_vm14 = vmpackc.low %vm109_vm7, %vm107_vm6  ;;  %7838 = vst [vmem:[#allocation79_spill] sm:$0xff] %v5057_v13  ;;  %vm112_vm6 = vcmp.eq.s32.totalorder %v4602_v17, %v4606_v19  ;;  %vm114_vm7 = vcmp.eq.s32.totalorder %v4613_v22, %v4606_v19  ;;  %v7848_v32 = vmov 0 }
  0x62   :  { %v7836_v57 = vsel %vm5048_vm14, 4294967295, %v7835_v57  ;;  %3631 = vmatpush1.bf16.msk.msra.mxu0 %vm5048_vm14, %v7786_v8  ;;  %7839 = vst [vmem:[#allocation80_spill] sm:$0xff] %v5059_v43  ;;  %vm5061_vm15 = vmpackc.low %vm1603_vm13, %vm1601_vm12  ;;  %vm1606_vm12 = vcmp.eq.s32.totalorder %v4602_v17, %v4610_v21  ;;  %vm1608_vm13 = vcmp.eq.s32.totalorder %v4613_v22, %v4610_v21  ;;  %v3123_v46 = vsel %vm114_vm7, 1.0, %v7807_v10 }
  0x63   :  { %7837 = vst [vmem:[#allocation78_spill] sm:$0xff] %v7836_v57  ;;  %v7841_v16 = vsel %vm5061_vm15, 4294967295, %v7840_v16  ;;  %7843 = vst [vmem:[#allocation82_spill] sm:$0xff] %v5065_v12  ;;  %4015 = vmatpush1.bf16.msk.msra.mxu1 %vm5061_vm15, %v7786_v8  ;;  %v3121_v57 = vsel %vm112_vm6, 1.0, %v7807_v10  ;;  %v3377_v47 = vsel %vm1606_vm12, 1.0, %v7807_v10  ;;  %v3379_v28 = vsel %vm1608_vm13, 1.0, %v7807_v10 }
  0x64   :  { %7842 = vst [vmem:[#allocation81_spill] sm:$0xff] %v7841_v16  ;;  %7844 = vst [vmem:[#allocation83_spill] sm:$0xff] %v5067_v44  ;;  %v7845_v16 = vmov 0  ;;  %v5099_v3 = vsub.f32 %v3121_v57, %v3121_v57  ;;  %v5101_v44 = vsub.f32 %v3123_v46, %v3123_v46  ;;  %v5106_v12 = vsub.f32 %v3377_v47, %v3377_v47 }
  0x65   :  { %vm5084_vm15 = vmpackc.low %vm114_vm7, %vm112_vm6  ;;  %vm111_vm6 = vcmp.eq.s32.totalorder %v4602_v17, %v4604_v18  ;;  %vm113_vm7 = vcmp.eq.s32.totalorder %v4613_v22, %v4604_v18  ;;  %v7855_v47 = vmov 0 }
  0x66   :  { %v7846_v16 = vsel %vm5084_vm15, 4294967295, %v7845_v16  ;;  %3633 = vmatprep.subr.msk.bf16.mxu0 %vm5084_vm15, %v7786_v8  ;;  %vm5095_vm14 = vmpackc.low %vm1608_vm13, %vm1606_vm12  ;;  %7851 = vst [vmem:[#allocation86_spill] sm:$0xff] %v5099_v3  ;;  %vm1605_vm12 = vcmp.eq.s32.totalorder %v4602_v17, %v4608_v20  ;;  %vm1607_vm13 = vcmp.eq.s32.totalorder %v4613_v22, %v4608_v20  ;;  %v3120_v46 = vsel %vm111_vm6, 1.0, %v7807_v10 }
  0x67   :  { %7847 = vst [vmem:[#allocation84_spill] sm:$0xff] %v7846_v16  ;;  %v7849_v32 = vsel %vm5095_vm14, 4294967295, %v7848_v32  ;;  %7852 = vst [vmem:[#allocation87_spill] sm:$0xff] %v5101_v44  ;;  %4017 = vmatprep.subr.msk.bf16.mxu1 %vm5095_vm14, %v7786_v8  ;;  %v5108_v16 = vsub.f32 %v3379_v28, %v3379_v28  ;;  %v3122_v57 = vsel %vm113_vm7, 1.0, %v7807_v10  ;;  %v3376_v28 = vsel %vm1605_vm12, 1.0, %v7807_v10 }
  0x68   :  { %7850 = vst [vmem:[#allocation85_spill] sm:$0xff] %v7849_v32  ;;  %7853 = vst [vmem:[#allocation88_spill] sm:$0xff] %v5106_v12  ;;  %v3378_v32 = vsel %vm1607_vm13, 1.0, %v7807_v10  ;;  %v5129_v17 = vsub.f32 %v3120_v46, %v3120_v46  ;;  %v7860_v22 = vmov 0  ;;  %v5137_v12 = vsub.f32 %v3376_v28, %v3376_v28 }
  0x69   :  { %7854 = vst [vmem:[#allocation89_spill] sm:$0xff] %v5108_v16  ;;  %vm5120_vm14 = vmpackc.low %vm113_vm7, %vm111_vm6  ;;  %v5131_v16 = vsub.f32 %v3122_v57, %v3122_v57  ;;  %v5139_v44 = vsub.f32 %v3378_v32, %v3378_v32  ;;  %vm116_vm6 = vcmp.eq.s32.totalorder %v4616_v23, %v4606_v19  ;;  %vm118_vm7 = vcmp.eq.s32.totalorder %v4619_v24, %v4606_v19 }
  0x6a   :  { %v7856_v47 = vsel %vm5120_vm14, 4294967295, %v7855_v47  ;;  %3635 = vmatpush1.bf16.msk.msra.mxu0 %vm5120_vm14, %v7786_v8  ;;  %7858 = vst [vmem:[#allocation91_spill] sm:$0xff] %v5129_v17  ;;  %vm5133_vm15 = vmpackc.low %vm1607_vm13, %vm1605_vm12  ;;  %vm1610_vm12 = vcmp.eq.s32.totalorder %v4616_v23, %v4610_v21  ;;  %vm1612_vm13 = vcmp.eq.s32.totalorder %v4619_v24, %v4610_v21  ;;  %v3127_v3 = vsel %vm118_vm7, 1.0, %v7807_v10 }
  0x6b   :  { %7857 = vst [vmem:[#allocation90_spill] sm:$0xff] %v7856_v47  ;;  %7859 = vst [vmem:[#allocation92_spill] sm:$0xff] %v5131_v16  ;;  %v7861_v22 = vsel %vm5133_vm15, 4294967295, %v7860_v22  ;;  %4019 = vmatpush1.bf16.msk.msra.mxu1 %vm5133_vm15, %v7786_v8  ;;  %v3125_v47 = vsel %vm116_vm6, 1.0, %v7807_v10  ;;  %v3381_v46 = vsel %vm1610_vm12, 1.0, %v7807_v10  ;;  %v3383_v32 = vsel %vm1612_vm13, 1.0, %v7807_v10 }
  0x6c   :  { %7862 = vst [vmem:[#allocation93_spill] sm:$0xff] %v7861_v22  ;;  %7863 = vst [vmem:[#allocation94_spill] sm:$0xff] %v5137_v12  ;;  %v7865_v22 = vmov 0  ;;  %v7868_v57 = vmov 0  ;;  %v5171_v28 = vsub.f32 %v3125_v47, %v3125_v47  ;;  %v5178_v12 = vsub.f32 %v3381_v46, %v3381_v46 }
  0x6d   :  { %7864 = vst [vmem:[#allocation95_spill] sm:$0xff] %v5139_v44  ;;  %vm5156_vm15 = vmpackc.low %vm118_vm7, %vm116_vm6  ;;  %v5173_v44 = vsub.f32 %v3127_v3, %v3127_v3  ;;  %vm115_vm6 = vcmp.eq.s32.totalorder %v4616_v23, %v4604_v18  ;;  %vm117_vm7 = vcmp.eq.s32.totalorder %v4619_v24, %v4604_v18  ;;  %v7875_v46 = vmov 0 }
  0x6e   :  { %v7866_v22 = vsel %vm5156_vm15, 4294967295, %v7865_v22  ;;  %3637 = vmatprep.subr.msk.bf16.mxu0 %vm5156_vm15, %v7786_v8  ;;  %vm5167_vm14 = vmpackc.low %vm1612_vm13, %vm1610_vm12  ;;  %7871 = vst [vmem:[#allocation98_spill] sm:$0xff] %v5171_v28  ;;  %vm1609_vm12 = vcmp.eq.s32.totalorder %v4616_v23, %v4608_v20  ;;  %vm1611_vm13 = vcmp.eq.s32.totalorder %v4619_v24, %v4608_v20  ;;  %v3124_v3 = vsel %vm115_vm6, 1.0, %v7807_v10 }
  0x6f   :  { %7867 = vst [vmem:[#allocation96_spill] sm:$0xff] %v7866_v22  ;;  %v7869_v57 = vsel %vm5167_vm14, 4294967295, %v7868_v57  ;;  %7872 = vst [vmem:[#allocation99_spill] sm:$0xff] %v5173_v44  ;;  %4021 = vmatprep.subr.msk.bf16.mxu1 %vm5167_vm14, %v7786_v8  ;;  %v5180_v22 = vsub.f32 %v3383_v32, %v3383_v32  ;;  %v3126_v47 = vsel %vm117_vm7, 1.0, %v7807_v10  ;;  %v3380_v32 = vsel %vm1609_vm12, 1.0, %v7807_v10 }
  0x70   :  { %7870 = vst [vmem:[#allocation97_spill] sm:$0xff] %v7869_v57  ;;  %7873 = vst [vmem:[#allocation100_spill] sm:$0xff] %v5178_v12  ;;  %v3382_v57 = vsel %vm1611_vm13, 1.0, %v7807_v10  ;;  %v5201_v23 = vsub.f32 %v3124_v3, %v3124_v3  ;;  %v7880_v24 = vmov 0  ;;  %v5209_v12 = vsub.f32 %v3380_v32, %v3380_v32 }
  0x71   :  { %7874 = vst [vmem:[#allocation101_spill] sm:$0xff] %v5180_v22  ;;  %vm5192_vm14 = vmpackc.low %vm117_vm7, %vm115_vm6  ;;  %v5203_v22 = vsub.f32 %v3126_v47, %v3126_v47  ;;  %v5211_v44 = vsub.f32 %v3382_v57, %v3382_v57  ;;  %v63_v28 = vadd.s32 136, %v4560_v1  ;;  %vm120_vm6 = vcmp.eq.s32.totalorder %v4622_v25, %v4606_v19 }
  0x72   :  { %v7876_v46 = vsel %vm5192_vm14, 4294967295, %v7875_v46  ;;  %3639 = vmatpush1.bf16.msk.msra.mxu0 %vm5192_vm14, %v7786_v8  ;;  %7878 = vst [vmem:[#allocation103_spill] sm:$0xff] %v5201_v23  ;;  %vm5205_vm15 = vmpackc.low %vm1611_vm13, %vm1609_vm12  ;;  %vm1614_vm7 = vcmp.eq.s32.totalorder %v4622_v25, %v4610_v21  ;;  %v7885_v3 = vmov 0  ;;  %v7950_v17 = vmov 0 }
  0x73   :  { %7877 = vst [vmem:[#allocation102_spill] sm:$0xff] %v7876_v46  ;;  %7879 = vst [vmem:[#allocation104_spill] sm:$0xff] %v5203_v22  ;;  %v7881_v24 = vsel %vm5205_vm15, 4294967295, %v7880_v24  ;;  %4023 = vmatpush1.bf16.msk.msra.mxu1 %vm5205_vm15, %v7786_v8  ;;  %vm122_vm13 = vcmp.eq.s32.totalorder %v63_v28, %v4606_v19  ;;  %vm1616_vm15 = vcmp.eq.s32.totalorder %v63_v28, %v4610_v21  ;;  %v3385_v46 = vsel %vm1614_vm7, 1.0, %v7807_v10 }
  0x74   :  { %7882 = vst [vmem:[#allocation105_spill] sm:$0xff] %v7881_v24  ;;  %7883 = vst [vmem:[#allocation106_spill] sm:$0xff] %v5209_v12  ;;  %v3129_v24 = vsel %vm120_vm6, 1.0, %v7807_v10  ;;  %v3131_v16 = vsel %vm122_vm13, 1.0, %v7807_v10  ;;  %v3387_v32 = vsel %vm1616_vm15, 1.0, %v7807_v10  ;;  %v5242_v57 = vsub.f32 %v3385_v46, %v3385_v46 }
  0x75   :  { %7884 = vst [vmem:[#allocation107_spill] sm:$0xff] %v5211_v44  ;;  %vm5235_vm12 = vmpackc.low %vm122_vm13, %vm120_vm6  ;;  %v5239_v47 = vsub.f32 %v3129_v24, %v3129_v24  ;;  %v5247_v44 = vsub.f32 %v3131_v16, %v3131_v16  ;;  %v7891_v12 = vmov 0  ;;  %v5256_v22 = vsub.f32 %v3387_v32, %v3387_v32 }
  0x76   :  { %v7886_v3 = vsel %vm5235_vm12, 4294967295, %v7885_v3  ;;  %7889 = vst [vmem:[#allocation110_spill] sm:$0xff] %v5242_v57  ;;  %3641 = vmatprep.subr.msk.bf16.mxu0 %vm5235_vm12, %v7786_v8  ;;  %vm5252_vm14 = vmpackc.low %vm1616_vm15, %vm1614_vm7  ;;  %vm121_vm6 = vcmp.eq.s32.totalorder %v63_v28, %v4604_v18  ;;  %vm7895_vm13 = vcmp.eq.s32.totalorder %v4622_v25, %v4604_v18  ;;  %v7897_v24 = vmov 0 }
  0x77   :  { %7887 = vst [vmem:[#allocation108_spill] sm:$0xff] %v7886_v3  ;;  %7888 = vst [vmem:[#allocation109_spill] sm:$0xff] %v5239_v47  ;;  %v7892_v12 = vsel %vm5252_vm14, 4294967295, %v7891_v12  ;;  %v3128_v46 = vsel %vm7895_vm13, 1.0, %v7807_v10  ;;  %4025 = vmatprep.subr.msk.bf16.mxu1 %vm5252_vm14, %v7786_v8  ;;  %v3130_v16 = vsel %vm121_vm6, 1.0, %v7807_v10  ;;  %vm1613_vm12 = vcmp.eq.s32.totalorder %v4622_v25, %v4608_v20 }
  0x78   :  { %7890 = vst [vmem:[#allocation111_spill] sm:$0xff] %v5247_v44  ;;  %7893 = vst [vmem:[#allocation112_spill] sm:$0xff] %v7892_v12  ;;  %v5274_v32 = vsub.f32 %v3128_v46, %v3128_v46  ;;  %v5282_v12 = vsub.f32 %v3130_v16, %v3130_v16  ;;  %v3384_v3 = vsel %vm1613_vm12, 1.0, %v7807_v10  ;;  %v7902_v57 = vmov 0 }
  0x79   :  { %7894 = vst [vmem:[#allocation113_spill] sm:$0xff] %v5256_v22  ;;  %vm7896_vm15 = vmmov %vm7895_vm13  ;;  %vm1615_vm13 = vcmp.eq.s32.totalorder %v63_v28, %v4608_v20  ;;  %v64_v46 = vadd.s32 144, %v4560_v1  ;;  %v5295_v28 = vsub.f32 %v3384_v3, %v3384_v3  ;;  %v5372_v47 = vadd.s32 176, %v4560_v1 }
  0x7a   :  { %vm5270_vm7 = vmpackc.low %vm121_vm6, %vm7896_vm15  ;;  %7900 = vst [vmem:[#allocation115_spill] sm:$0xff] %v5274_v32  ;;  %v3386_v22 = vsel %vm1615_vm13, 1.0, %v7807_v10 }
  0x7b   :  { %v7898_v24 = vsel %vm5270_vm7, 4294967295, %v7897_v24  ;;  %3643 = vmatpush1.bf16.msk.msra.mxu0 %vm5270_vm7, %v7786_v8  ;;  %7901 = vst [vmem:[#allocation116_spill] sm:$0xff] %v5282_v12  ;;  %vm5286_vm6 = vmpackc.low %vm1615_vm13, %vm1613_vm12  ;;  %v5297_v16 = vsub.f32 %v3386_v22, %v3386_v22  ;;  %vm124_vm12 = vcmp.eq.s32.totalorder %v64_v46, %v4606_v19  ;;  %vm1618_vm15 = vcmp.eq.s32.totalorder %v64_v46, %v4610_v21 }
  0x7c   :  { %7899 = vst [vmem:[#allocation114_spill] sm:$0xff] %v7898_v24  ;;  %v7903_v57 = vsel %vm5286_vm6, 4294967295, %v7902_v57  ;;  %4027 = vmatpush1.bf16.msk.msra.mxu1 %vm5286_vm6, %v7786_v8  ;;  %7905 = vst [vmem:[#allocation118_spill] sm:$0xff] %v5295_v28  ;;  %v65_v24 = vadd.s32 152, %v4560_v1  ;;  %v3133_v3 = vsel %vm124_vm12, 1.0, %v7807_v10  ;;  %v3389_v12 = vsel %vm1618_vm15, 1.0, %v7807_v10 }
  0x7d   :  { %7904 = vst [vmem:[#allocation117_spill] sm:$0xff] %v7903_v57  ;;  %7906 = vst [vmem:[#allocation119_spill] sm:$0xff] %v5297_v16  ;;  %v7907_v57 = vmov 0  ;;  %v5313_v44 = vsub.f32 %v3133_v3, %v3133_v3  ;;  %v7912_v16 = vmov 0  ;;  %v5327_v28 = vsub.f32 %v3389_v12, %v3389_v12 }
  0x7e   :  { %vm126_vm6 = vcmp.eq.s32.totalorder %v65_v24, %v4606_v19  ;;  %vm1620_vm14 = vcmp.eq.s32.totalorder %v65_v24, %v4610_v21 }
  0x7f   :  { %v3135_v22 = vsel %vm126_vm6, 1.0, %v7807_v10  ;;  %vm5309_vm7 = vmpackc.low %vm126_vm6, %vm124_vm12  ;;  %7910 = vst [vmem:[#allocation121_spill] sm:$0xff] %v5313_v44  ;;  %v3391_v25 = vsel %vm1620_vm14, 1.0, %v7807_v10  ;;  %vm125_vm6 = vcmp.eq.s32.totalorder %v65_v24, %v4604_v18  ;;  %vm7917_vm12 = vcmp.eq.s32.totalorder %v64_v46, %v4604_v18 }
  0x80   :  { %v7908_v57 = vsel %vm5309_vm7, 4294967295, %v7907_v57  ;;  %3645 = vmatprep.subr.msk.bf16.mxu0 %vm5309_vm7, %v7786_v8  ;;  %v5320_v32 = vsub.f32 %v3135_v22, %v3135_v22  ;;  %vm5323_vm13 = vmpackc.low %vm1620_vm14, %vm1618_vm15  ;;  %7915 = vst [vmem:[#allocation124_spill] sm:$0xff] %v5327_v28  ;;  %v5333_v3 = vsub.f32 %v3391_v25, %v3391_v25  ;;  %v3132_v22 = vsel %vm7917_vm12, 1.0, %v7807_v10 }
  0x81   :  { %7909 = vst [vmem:[#allocation120_spill] sm:$0xff] %v7908_v57  ;;  %v7913_v16 = vsel %vm5323_vm13, 4294967295, %v7912_v16  ;;  %4029 = vmatprep.subr.msk.bf16.mxu1 %vm5323_vm13, %v7786_v8  ;;  %v3134_v57 = vsel %vm125_vm6, 1.0, %v7807_v10  ;;  %vm7918_vm14 = vmmov %vm7917_vm12  ;;  %vm1617_vm7 = vcmp.eq.s32.totalorder %v64_v46, %v4608_v20  ;;  %v5349_v12 = vsub.f32 %v3132_v22, %v3132_v22 }
  0x82   :  { %7911 = vst [vmem:[#allocation122_spill] sm:$0xff] %v5320_v32  ;;  %7914 = vst [vmem:[#allocation123_spill] sm:$0xff] %v7913_v16  ;;  %v7919_v32 = vmov 0  ;;  %v5351_v25 = vsub.f32 %v3134_v57, %v3134_v57  ;;  %vm1619_vm12 = vcmp.eq.s32.totalorder %v65_v24, %v4608_v20  ;;  %v3388_v16 = vsel %vm1617_vm7, 1.0, %v7807_v10 }
  0x83   :  { %7916 = vst [vmem:[#allocation125_spill] sm:$0xff] %v5333_v3  ;;  %vm5341_vm15 = vmpackc.low %vm125_vm6, %vm7918_vm14  ;;  %v3390_v3 = vsel %vm1619_vm12, 1.0, %v7807_v10  ;;  %v7924_v28 = vmov 0  ;;  %v5360_v44 = vsub.f32 %v3388_v16, %v3388_v16  ;;  %v66_v46 = vadd.s32 160, %v4560_v1 }
  0x84   :  { %v7920_v32 = vsel %vm5341_vm15, 4294967295, %v7919_v32  ;;  %3647 = vmatpush1.bf16.msk.msra.mxu0 %vm5341_vm15, %v7786_v8  ;;  %7922 = vst [vmem:[#allocation127_spill] sm:$0xff] %v5349_v12  ;;  %7923 = vst [vmem:[#allocation128_spill] sm:$0xff] %v5351_v25  ;;  %v5369_v24 = vsub.f32 %v3390_v3, %v3390_v3  ;;  %v7929_v3 = vmov 0  ;;  %v7934_v25 = vmov 0 }
  0x85   :  { %7921 = vst [vmem:[#allocation126_spill] sm:$0xff] %v7920_v32  ;;  %vm5356_vm6 = vmpackc.low %vm1619_vm12, %vm1617_vm7  ;;  %v67_v32 = vadd.s32 168, %v4560_v1  ;;  %vm128_vm7 = vcmp.eq.s32.totalorder %v66_v46, %v4606_v19  ;;  %vm1622_vm12 = vcmp.eq.s32.totalorder %v66_v46, %v4610_v21 }
  0x86   :  { %v7925_v28 = vsel %vm5356_vm6, 4294967295, %v7924_v28  ;;  %7927 = vst [vmem:[#allocation130_spill] sm:$0xff] %v5360_v44  ;;  %4031 = vmatpush1.bf16.msk.msra.mxu1 %vm5356_vm6, %v7786_v8  ;;  %7928 = vst [vmem:[#allocation131_spill] sm:$0xff] %v5369_v24  ;;  %v3137_v57 = vsel %vm128_vm7, 1.0, %v7807_v10  ;;  %v3393_v22 = vsel %vm1622_vm12, 1.0, %v7807_v10 }
  0x87   :  { %7926 = vst [vmem:[#allocation129_spill] sm:$0xff] %v7925_v28  ;;  %vm130_vm14 = vcmp.eq.s32.totalorder %v67_v32, %v4606_v19  ;;  %vm1624_vm15 = vcmp.eq.s32.totalorder %v67_v32, %v4610_v21  ;;  %v5389_v16 = vsub.f32 %v3137_v57, %v3137_v57  ;;  %v5402_v12 = vsub.f32 %v3393_v22, %v3393_v22 }
  0x88   :  { %v3139_v28 = vsel %vm130_vm14, 1.0, %v7807_v10  ;;  %vm5381_vm6 = vmpackc.low %vm130_vm14, %vm128_vm7  ;;  %v3395_v24 = vsel %vm1624_vm15, 1.0, %v7807_v10  ;;  %vm127_vm7 = vcmp.eq.s32.totalorder %v66_v46, %v4604_v18  ;;  %vm129_vm14 = vcmp.eq.s32.totalorder %v67_v32, %v4604_v18 }
  0x89   :  { %v7930_v3 = vsel %vm5381_vm6, 4294967295, %v7929_v3  ;;  %3649 = vmatprep.subr.msk.bf16.mxu0 %vm5381_vm6, %v7786_v8  ;;  %7932 = vst [vmem:[#allocation133_spill] sm:$0xff] %v5389_v16  ;;  %v5391_v44 = vsub.f32 %v3139_v28, %v3139_v28  ;;  %vm5395_vm13 = vmpackc.low %vm1624_vm15, %vm1622_vm12  ;;  %v3136_v28 = vsel %vm127_vm7, 1.0, %v7807_v10  ;;  %v3138_v57 = vsel %vm129_vm14, 1.0, %v7807_v10 }
  0x8a   :  { %7931 = vst [vmem:[#allocation132_spill] sm:$0xff] %v7930_v3  ;;  %v7935_v25 = vsel %vm5395_vm13, 4294967295, %v7934_v25  ;;  %4033 = vmatprep.subr.msk.bf16.mxu1 %vm5395_vm13, %v7786_v8  ;;  %7937 = vst [vmem:[#allocation136_spill] sm:$0xff] %v5402_v12  ;;  %v5404_v3 = vsub.f32 %v3395_v24, %v3395_v24  ;;  %vm1621_vm12 = vcmp.eq.s32.totalorder %v66_v46, %v4608_v20  ;;  %v7944_v12 = vmov 0 }
  0x8b   :  { %7933 = vst [vmem:[#allocation134_spill] sm:$0xff] %v5391_v44  ;;  %7936 = vst [vmem:[#allocation135_spill] sm:$0xff] %v7935_v25  ;;  %v7939_v44 = vmov 0  ;;  %vm1623_vm13 = vcmp.eq.s32.totalorder %v67_v32, %v4608_v20  ;;  %v5419_v22 = vsub.f32 %v3136_v28, %v3136_v28  ;;  %v5421_v24 = vsub.f32 %v3138_v57, %v3138_v57 }
  0x8c   :  { %7938 = vst [vmem:[#allocation137_spill] sm:$0xff] %v5404_v3  ;;  %vm5410_vm15 = vmpackc.low %vm129_vm14, %vm127_vm7  ;;  %v3392_v25 = vsel %vm1621_vm12, 1.0, %v7807_v10  ;;  %v3394_v3 = vsel %vm1623_vm13, 1.0, %v7807_v10  ;;  %v69_v28 = vadd.s32 184, %v4560_v1  ;;  %vm132_vm14 = vcmp.eq.s32.totalorder %v5372_v47, %v4606_v19 }
  0x8d   :  { %v7940_v44 = vsel %vm5410_vm15, 4294967295, %v7939_v44  ;;  %3651 = vmatpush1.bf16.msk.msra.mxu0 %vm5410_vm15, %v7786_v8  ;;  %7942 = vst [vmem:[#allocation139_spill] sm:$0xff] %v5419_v22  ;;  %7943 = vst [vmem:[#allocation140_spill] sm:$0xff] %v5421_v24  ;;  %v5432_v32 = vsub.f32 %v3392_v25, %v3392_v25  ;;  %v5434_v46 = vsub.f32 %v3394_v3, %v3394_v3  ;;  %v3141_v16 = vsel %vm132_vm14, 1.0, %v7807_v10 }
  0x8e   :  { %7941 = vst [vmem:[#allocation138_spill] sm:$0xff] %v7940_v44  ;;  %vm5425_vm7 = vmpackc.low %vm1623_vm13, %vm1621_vm12  ;;  %vm1626_vm13 = vcmp.eq.s32.totalorder %v5372_v47, %v4610_v21  ;;  %vm134_vm12 = vcmp.eq.s32.totalorder %v69_v28, %v4606_v19  ;;  %v5447_v3 = vsub.f32 %v3141_v16, %v3141_v16  ;;  %vm1628_vm15 = vcmp.eq.s32.totalorder %v69_v28, %v4610_v21 }
  0x8f   :  { %v7945_v12 = vsel %vm5425_vm7, 4294967295, %v7944_v12  ;;  %4035 = vmatpush1.bf16.msk.msra.mxu1 %vm5425_vm7, %v7786_v8  ;;  %7947 = vst [vmem:[#allocation142_spill] sm:$0xff] %v5432_v32  ;;  %7948 = vst [vmem:[#allocation143_spill] sm:$0xff] %v5434_v46  ;;  %v3143_v23 = vsel %vm134_vm12, 1.0, %v7807_v10  ;;  %v3397_v44 = vsel %vm1626_vm13, 1.0, %v7807_v10  ;;  %vm131_vm6 = vcmp.eq.s32.totalorder %v5372_v47, %v4604_v18 }
  0x90   :  { %7946 = vst [vmem:[#allocation141_spill] sm:$0xff] %v7945_v12  ;;  %7949 = vst [vmem:[#allocation144_spill] sm:$0xff] %v5447_v3  ;;  %v5461_v25 = vsub.f32 %v3143_v23, %v3143_v23  ;;  %v3399_v16 = vsel %vm1628_vm15, 1.0, %v7807_v10  ;;  %v7954_v12 = vmov 0  ;;  %v5468_v57 = vsub.f32 %v3397_v44, %v3397_v44 }
  0x91   :  { %vm5450_vm7 = vmpackc.low %vm134_vm12, %vm132_vm14  ;;  %vm133_vm14 = vcmp.eq.s32.totalorder %v69_v28, %v4604_v18  ;;  %v5474_v3 = vsub.f32 %v3399_v16, %v3399_v16  ;;  %v5510_v32 = vadd.s32 208, %v4560_v1  ;;  %v7990_v22 = vmov 0 }
  0x92   :  { %v7951_v17 = vsel %vm5450_vm7, 4294967295, %v7950_v17  ;;  %3653 = vmatprep.subr.msk.bf16.mxu0 %vm5450_vm7, %v7786_v8  ;;  %7953 = vst [vmem:[#allocation146_spill] sm:$0xff] %v5461_v25  ;;  %vm5464_vm3 = vmpackc.low %vm1628_vm15, %vm1626_vm13  ;;  %v3142_v23 = vsel %vm133_vm14, 1.0, %v7807_v10  ;;  %v7959_v25 = vmov 0  ;;  %vm1625_vm15 = vcmp.eq.s32.totalorder %v5372_v47, %v4608_v20 }
  0x93   :  { %7952 = vst [vmem:[#allocation145_spill] sm:$0xff] %v7951_v17  ;;  %v7955_v12 = vsel %vm5464_vm3, 4294967295, %v7954_v12  ;;  %7957 = vst [vmem:[#allocation148_spill] sm:$0xff] %v5468_v57  ;;  %4037 = vmatprep.subr.msk.bf16.mxu1 %vm5464_vm3, %v7786_v8  ;;  %v3140_v17 = vsel %vm131_vm6, 1.0, %v7807_v10  ;;  %vm1627_vm13 = vcmp.eq.s32.totalorder %v69_v28, %v4608_v20  ;;  %v3396_v16 = vsel %vm1625_vm15, 1.0, %v7807_v10 }
  0x94   :  { %7956 = vst [vmem:[#allocation147_spill] sm:$0xff] %v7955_v12  ;;  %7958 = vst [vmem:[#allocation149_spill] sm:$0xff] %v5474_v3  ;;  %v5487_v44 = vsub.f32 %v3140_v17, %v3140_v17  ;;  %v5489_v12 = vsub.f32 %v3142_v23, %v3142_v23  ;;  %v3398_v3 = vsel %vm1627_vm13, 1.0, %v7807_v10  ;;  %v7964_v57 = vmov 0 }
  0x95   :  { %vm5478_vm12 = vmpackc.low %vm133_vm14, %vm131_vm6  ;;  %v5498_v46 = vsub.f32 %v3396_v16, %v3396_v16  ;;  %v70_v47 = vadd.s32 192, %v4560_v1  ;;  %v5507_v28 = vsub.f32 %v3398_v3, %v3398_v3  ;;  %v7969_v3 = vmov 0 }
  0x96   :  { %v7960_v25 = vsel %vm5478_vm12, 4294967295, %v7959_v25  ;;  %3655 = vmatpush1.bf16.msk.msra.mxu0 %vm5478_vm12, %v7786_v8  ;;  %7962 = vst [vmem:[#allocation151_spill] sm:$0xff] %v5487_v44  ;;  %7963 = vst [vmem:[#allocation152_spill] sm:$0xff] %v5489_v12  ;;  %v7974_v12 = vmov 0 }
  0x97   :  { %7961 = vst [vmem:[#allocation150_spill] sm:$0xff] %v7960_v25  ;;  %vm5494_vm6 = vmpackc.low %vm1627_vm13, %vm1625_vm15  ;;  %v71_v25 = vadd.s32 200, %v4560_v1  ;;  %vm136_vm14 = vcmp.eq.s32.totalorder %v70_v47, %v4606_v19  ;;  %vm1630_vm13 = vcmp.eq.s32.totalorder %v70_v47, %v4610_v21 }
  0x98   :  { %v7965_v57 = vsel %vm5494_vm6, 4294967295, %v7964_v57  ;;  %7967 = vst [vmem:[#allocation154_spill] sm:$0xff] %v5498_v46  ;;  %4039 = vmatpush1.bf16.msk.msra.mxu1 %vm5494_vm6, %v7786_v8  ;;  %7968 = vst [vmem:[#allocation155_spill] sm:$0xff] %v5507_v28  ;;  %v3145_v23 = vsel %vm136_vm14, 1.0, %v7807_v10  ;;  %v3401_v17 = vsel %vm1630_vm13, 1.0, %v7807_v10 }
  0x99   :  { %7966 = vst [vmem:[#allocation153_spill] sm:$0xff] %v7965_v57  ;;  %vm138_vm15 = vcmp.eq.s32.totalorder %v71_v25, %v4606_v19  ;;  %vm1632_vm12 = vcmp.eq.s32.totalorder %v71_v25, %v4610_v21  ;;  %v5527_v16 = vsub.f32 %v3145_v23, %v3145_v23  ;;  %v5540_v44 = vsub.f32 %v3401_v17, %v3401_v17 }
  0x9a   :  { %v3147_v57 = vsel %vm138_vm15, 1.0, %v7807_v10  ;;  %vm5519_vm6 = vmpackc.low %vm138_vm15, %vm136_vm14  ;;  %v3403_v28 = vsel %vm1632_vm12, 1.0, %v7807_v10  ;;  %vm135_vm14 = vcmp.eq.s32.totalorder %v70_v47, %v4604_v18  ;;  %vm137_vm15 = vcmp.eq.s32.totalorder %v71_v25, %v4604_v18 }
  0x9b   :  { %v7970_v3 = vsel %vm5519_vm6, 4294967295, %v7969_v3  ;;  %3657 = vmatprep.subr.msk.bf16.mxu0 %vm5519_vm6, %v7786_v8  ;;  %7972 = vst [vmem:[#allocation157_spill] sm:$0xff] %v5527_v16  ;;  %v5529_v46 = vsub.f32 %v3147_v57, %v3147_v57  ;;  %vm5533_vm3 = vmpackc.low %vm1632_vm12, %vm1630_vm13  ;;  %v3144_v57 = vsel %vm135_vm14, 1.0, %v7807_v10  ;;  %v3146_v23 = vsel %vm137_vm15, 1.0, %v7807_v10 }
  0x9c   :  { %7971 = vst [vmem:[#allocation156_spill] sm:$0xff] %v7970_v3  ;;  %v7975_v12 = vsel %vm5533_vm3, 4294967295, %v7974_v12  ;;  %4041 = vmatprep.subr.msk.bf16.mxu1 %vm5533_vm3, %v7786_v8  ;;  %7977 = vst [vmem:[#allocation160_spill] sm:$0xff] %v5540_v44  ;;  %v5542_v3 = vsub.f32 %v3403_v28, %v3403_v28  ;;  %vm1629_vm13 = vcmp.eq.s32.totalorder %v70_v47, %v4608_v20  ;;  %v7984_v44 = vmov 0 }
  0x9d   :  { %7973 = vst [vmem:[#allocation158_spill] sm:$0xff] %v5529_v46  ;;  %7976 = vst [vmem:[#allocation159_spill] sm:$0xff] %v7975_v12  ;;  %v7979_v46 = vmov 0  ;;  %vm1631_vm3 = vcmp.eq.s32.totalorder %v71_v25, %v4608_v20  ;;  %v5557_v17 = vsub.f32 %v3144_v57, %v3144_v57  ;;  %v5559_v28 = vsub.f32 %v3146_v23, %v3146_v23 }
  0x9e   :  { %7978 = vst [vmem:[#allocation161_spill] sm:$0xff] %v5542_v3  ;;  %vm5548_vm12 = vmpackc.low %vm137_vm15, %vm135_vm14  ;;  %v3400_v12 = vsel %vm1629_vm13, 1.0, %v7807_v10  ;;  %v3402_v3 = vsel %vm1631_vm3, 1.0, %v7807_v10  ;;  %v73_v57 = vadd.s32 216, %v4560_v1  ;;  %vm140_vm15 = vcmp.eq.s32.totalorder %v5510_v32, %v4606_v19 }
  0x9f   :  { %v7980_v46 = vsel %vm5548_vm12, 4294967295, %v7979_v46  ;;  %3659 = vmatpush1.bf16.msk.msra.mxu0 %vm5548_vm12, %v7786_v8  ;;  %7982 = vst [vmem:[#allocation163_spill] sm:$0xff] %v5557_v17  ;;  %7983 = vst [vmem:[#allocation164_spill] sm:$0xff] %v5559_v28  ;;  %v5570_v25 = vsub.f32 %v3400_v12, %v3400_v12  ;;  %v5572_v47 = vsub.f32 %v3402_v3, %v3402_v3  ;;  %v3149_v16 = vsel %vm140_vm15, 1.0, %v7807_v10 }
  0xa0   :  { %7981 = vst [vmem:[#allocation162_spill] sm:$0xff] %v7980_v46  ;;  %vm5563_vm14 = vmpackc.low %vm1631_vm3, %vm1629_vm13  ;;  %vm1634_vm3 = vcmp.eq.s32.totalorder %v5510_v32, %v4610_v21  ;;  %vm142_vm13 = vcmp.eq.s32.totalorder %v73_v57, %v4606_v19  ;;  %v5585_v3 = vsub.f32 %v3149_v16, %v3149_v16  ;;  %vm1636_vm12 = vcmp.eq.s32.totalorder %v73_v57, %v4610_v21 }
  0xa1   :  { %v7985_v44 = vsel %vm5563_vm14, 4294967295, %v7984_v44  ;;  %4043 = vmatpush1.bf16.msk.msra.mxu1 %vm5563_vm14, %v7786_v8  ;;  %7987 = vst [vmem:[#allocation166_spill] sm:$0xff] %v5570_v25  ;;  %7988 = vst [vmem:[#allocation167_spill] sm:$0xff] %v5572_v47  ;;  %v3151_v24 = vsel %vm142_vm13, 1.0, %v7807_v10  ;;  %v3405_v46 = vsel %vm1634_vm3, 1.0, %v7807_v10  ;;  %vm139_vm6 = vcmp.eq.s32.totalorder %v5510_v32, %v4604_v18 }
  0xa2   :  { %7986 = vst [vmem:[#allocation165_spill] sm:$0xff] %v7985_v44  ;;  %7989 = vst [vmem:[#allocation168_spill] sm:$0xff] %v5585_v3  ;;  %v5599_v12 = vsub.f32 %v3151_v24, %v3151_v24  ;;  %v3407_v16 = vsel %vm1636_vm12, 1.0, %v7807_v10  ;;  %v7994_v44 = vmov 0  ;;  %v5606_v23 = vsub.f32 %v3405_v46, %v3405_v46 }
  0xa3   :  { %vm5588_vm14 = vmpackc.low %vm142_vm13, %vm140_vm15  ;;  %vm141_vm15 = vcmp.eq.s32.totalorder %v73_v57, %v4604_v18  ;;  %v5612_v3 = vsub.f32 %v3407_v16, %v3407_v16  ;;  %v5648_v25 = vadd.s32 240, %v4560_v1  ;;  %v8030_v28 = vmov 0 }
  0xa4   :  { %v7991_v22 = vsel %vm5588_vm14, 4294967295, %v7990_v22  ;;  %3661 = vmatprep.subr.msk.bf16.mxu0 %vm5588_vm14, %v7786_v8  ;;  %7993 = vst [vmem:[#allocation170_spill] sm:$0xff] %v5599_v12  ;;  %vm5602_vm7 = vmpackc.low %vm1636_vm12, %vm1634_vm3  ;;  %v3150_v24 = vsel %vm141_vm15, 1.0, %v7807_v10  ;;  %v7999_v12 = vmov 0  ;;  %vm1633_vm12 = vcmp.eq.s32.totalorder %v5510_v32, %v4608_v20 }
  0xa5   :  { %7992 = vst [vmem:[#allocation169_spill] sm:$0xff] %v7991_v22  ;;  %v7995_v44 = vsel %vm5602_vm7, 4294967295, %v7994_v44  ;;  %7997 = vst [vmem:[#allocation172_spill] sm:$0xff] %v5606_v23  ;;  %4045 = vmatprep.subr.msk.bf16.mxu1 %vm5602_vm7, %v7786_v8  ;;  %v3148_v22 = vsel %vm139_vm6, 1.0, %v7807_v10  ;;  %vm1635_vm3 = vcmp.eq.s32.totalorder %v73_v57, %v4608_v20  ;;  %v3404_v16 = vsel %vm1633_vm12, 1.0, %v7807_v10 }
  0xa6   :  { %7996 = vst [vmem:[#allocation171_spill] sm:$0xff] %v7995_v44  ;;  %7998 = vst [vmem:[#allocation173_spill] sm:$0xff] %v5612_v3  ;;  %v5625_v46 = vsub.f32 %v3148_v22, %v3148_v22  ;;  %v5627_v44 = vsub.f32 %v3150_v24, %v3150_v24  ;;  %v3406_v3 = vsel %vm1635_vm3, 1.0, %v7807_v10  ;;  %v8004_v23 = vmov 0 }
  0xa7   :  { %vm5616_vm13 = vmpackc.low %vm141_vm15, %vm139_vm6  ;;  %v5636_v47 = vsub.f32 %v3404_v16, %v3404_v16  ;;  %v74_v32 = vadd.s32 224, %v4560_v1  ;;  %v5645_v57 = vsub.f32 %v3406_v3, %v3406_v3  ;;  %v8009_v3 = vmov 0 }
  0xa8   :  { %v8000_v12 = vsel %vm5616_vm13, 4294967295, %v7999_v12  ;;  %3663 = vmatpush1.bf16.msk.msra.mxu0 %vm5616_vm13, %v7786_v8  ;;  %8002 = vst [vmem:[#allocation175_spill] sm:$0xff] %v5625_v46  ;;  %8003 = vst [vmem:[#allocation176_spill] sm:$0xff] %v5627_v44  ;;  %v8014_v44 = vmov 0 }
  0xa9   :  { %8001 = vst [vmem:[#allocation174_spill] sm:$0xff] %v8000_v12  ;;  %vm5632_vm6 = vmpackc.low %vm1635_vm3, %vm1633_vm12  ;;  %v75_v12 = vadd.s32 232, %v4560_v1  ;;  %vm144_vm15 = vcmp.eq.s32.totalorder %v74_v32, %v4606_v19  ;;  %vm1638_vm3 = vcmp.eq.s32.totalorder %v74_v32, %v4610_v21 }
  0xaa   :  { %v8005_v23 = vsel %vm5632_vm6, 4294967295, %v8004_v23  ;;  %8007 = vst [vmem:[#allocation178_spill] sm:$0xff] %v5636_v47  ;;  %4047 = vmatpush1.bf16.msk.msra.mxu1 %vm5632_vm6, %v7786_v8  ;;  %8008 = vst [vmem:[#allocation179_spill] sm:$0xff] %v5645_v57  ;;  %v3153_v24 = vsel %vm144_vm15, 1.0, %v7807_v10  ;;  %v3409_v22 = vsel %vm1638_vm3, 1.0, %v7807_v10 }
  0xab   :  { %8006 = vst [vmem:[#allocation177_spill] sm:$0xff] %v8005_v23  ;;  %vm146_vm12 = vcmp.eq.s32.totalorder %v75_v12, %v4606_v19  ;;  %vm1640_vm13 = vcmp.eq.s32.totalorder %v75_v12, %v4610_v21  ;;  %v5665_v16 = vsub.f32 %v3153_v24, %v3153_v24  ;;  %v5678_v46 = vsub.f32 %v3409_v22, %v3409_v22 }
  0xac   :  { %v3155_v23 = vsel %vm146_vm12, 1.0, %v7807_v10  ;;  %vm5657_vm6 = vmpackc.low %vm146_vm12, %vm144_vm15  ;;  %v3411_v57 = vsel %vm1640_vm13, 1.0, %v7807_v10  ;;  %vm143_vm15 = vcmp.eq.s32.totalorder %v74_v32, %v4604_v18  ;;  %vm145_vm12 = vcmp.eq.s32.totalorder %v75_v12, %v4604_v18 }
  0xad   :  { %v8010_v3 = vsel %vm5657_vm6, 4294967295, %v8009_v3  ;;  %3665 = vmatprep.subr.msk.bf16.mxu0 %vm5657_vm6, %v7786_v8  ;;  %8012 = vst [vmem:[#allocation181_spill] sm:$0xff] %v5665_v16  ;;  %v5667_v47 = vsub.f32 %v3155_v23, %v3155_v23  ;;  %vm5671_vm7 = vmpackc.low %vm1640_vm13, %vm1638_vm3  ;;  %v3152_v23 = vsel %vm143_vm15, 1.0, %v7807_v10  ;;  %v3154_v24 = vsel %vm145_vm12, 1.0, %v7807_v10 }
  0xae   :  { %8011 = vst [vmem:[#allocation180_spill] sm:$0xff] %v8010_v3  ;;  %v8015_v44 = vsel %vm5671_vm7, 4294967295, %v8014_v44  ;;  %4049 = vmatprep.subr.msk.bf16.mxu1 %vm5671_vm7, %v7786_v8  ;;  %8017 = vst [vmem:[#allocation184_spill] sm:$0xff] %v5678_v46  ;;  %v5680_v3 = vsub.f32 %v3411_v57, %v3411_v57  ;;  %vm1637_vm3 = vcmp.eq.s32.totalorder %v74_v32, %v4608_v20  ;;  %v8024_v46 = vmov 0 }
  0xaf   :  { %8013 = vst [vmem:[#allocation182_spill] sm:$0xff] %v5667_v47  ;;  %8016 = vst [vmem:[#allocation183_spill] sm:$0xff] %v8015_v44  ;;  %v8019_v47 = vmov 0  ;;  %vm1639_vm7 = vcmp.eq.s32.totalorder %v75_v12, %v4608_v20  ;;  %v5695_v22 = vsub.f32 %v3152_v23, %v3152_v23  ;;  %v5697_v57 = vsub.f32 %v3154_v24, %v3154_v24 }
  0xb0   :  { %8018 = vst [vmem:[#allocation185_spill] sm:$0xff] %v5680_v3  ;;  %vm5686_vm13 = vmpackc.low %vm145_vm12, %vm143_vm15  ;;  %v3408_v44 = vsel %vm1637_vm3, 1.0, %v7807_v10  ;;  %v3410_v3 = vsel %vm1639_vm7, 1.0, %v7807_v10  ;;  %v77_v23 = vadd.s32 248, %v4560_v1  ;;  %vm148_vm12 = vcmp.eq.s32.totalorder %v5648_v25, %v4606_v19 }
  0xb1   :  { %v8020_v47 = vsel %vm5686_vm13, 4294967295, %v8019_v47  ;;  %3667 = vmatpush1.bf16.msk.msra.mxu0 %vm5686_vm13, %v7786_v8  ;;  %8022 = vst [vmem:[#allocation187_spill] sm:$0xff] %v5695_v22  ;;  %8023 = vst [vmem:[#allocation188_spill] sm:$0xff] %v5697_v57  ;;  %v5708_v12 = vsub.f32 %v3408_v44, %v3408_v44  ;;  %v5710_v32 = vsub.f32 %v3410_v3, %v3410_v3  ;;  %v3157_v16 = vsel %vm148_vm12, 1.0, %v7807_v10 }
  0xb2   :  { %8021 = vst [vmem:[#allocation186_spill] sm:$0xff] %v8020_v47  ;;  %vm5701_vm15 = vmpackc.low %vm1639_vm7, %vm1637_vm3  ;;  %vm1642_vm7 = vcmp.eq.s32.totalorder %v5648_v25, %v4610_v21  ;;  %vm150_vm3 = vcmp.eq.s32.totalorder %v77_v23, %v4606_v19  ;;  %v5723_v3 = vsub.f32 %v3157_v16, %v3157_v16  ;;  %vm1644_vm13 = vcmp.eq.s32.totalorder %v77_v23, %v4610_v21  ;;  %v279_v21 = vld [vmem:[#allocation2] sm:$0xff] }
  0xb3   :  { %v8025_v46 = vsel %vm5701_vm15, 4294967295, %v8024_v46  ;;  %4051 = vmatpush1.bf16.msk.msra.mxu1 %vm5701_vm15, %v7786_v8  ;;  %8027 = vst [vmem:[#allocation190_spill] sm:$0xff] %v5708_v12  ;;  %8028 = vst [vmem:[#allocation191_spill] sm:$0xff] %v5710_v32  ;;  %v3159_v1 = vsel %vm150_vm3, 1.0, %v7807_v10  ;;  %v3413_v47 = vsel %vm1642_vm7, 1.0, %v7807_v10  ;;  %vm147_vm6 = vcmp.eq.s32.totalorder %v5648_v25, %v4604_v18 }
  0xb4   :  { %8026 = vst [vmem:[#allocation189_spill] sm:$0xff] %v8025_v46  ;;  %8029 = vst [vmem:[#allocation192_spill] sm:$0xff] %v5723_v3  ;;  %v5737_v19 = vsub.f32 %v3159_v1, %v3159_v1  ;;  %v3415_v16 = vsel %vm1644_vm13, 1.0, %v7807_v10  ;;  %v8034_v44 = vmov 0  ;;  %v5744_v46 = vsub.f32 %v3413_v47, %v3413_v47 }
  0xb5   :  { %vm5726_vm15 = vmpackc.low %vm150_vm3, %vm148_vm12  ;;  %vm149_vm12 = vcmp.eq.s32.totalorder %v77_v23, %v4604_v18  ;;  %v5750_v24 = vsub.f32 %v3415_v16, %v3415_v16  ;;  %v3156_v1 = vsel %vm147_vm6, 1.0, %v7807_v10  ;;  %v281_v3 = vcombine.high %v279_v21, %v279_v21 }
  0xb6   :  { %v8031_v28 = vsel %vm5726_vm15, 4294967295, %v8030_v28  ;;  %3669 = vmatprep.subr.msk.bf16.mxu0 %vm5726_vm15, %v7786_v8  ;;  %8033 = vst [vmem:[#allocation194_spill] sm:$0xff] %v5737_v19  ;;  %vm5740_vm14 = vmpackc.low %vm1644_vm13, %vm1642_vm7  ;;  %v8039_v19 = vmov 0  ;;  %vm1641_vm13 = vcmp.eq.s32.totalorder %v5648_v25, %v4608_v20  ;;  %v5763_v18 = vsub.f32 %v3156_v1, %v3156_v1 }
  0xb7   :  { %8032 = vst [vmem:[#allocation193_spill] sm:$0xff] %v8031_v28  ;;  %v8035_v44 = vsel %vm5740_vm14, 4294967295, %v8034_v44  ;;  %8037 = vst [vmem:[#allocation196_spill] sm:$0xff] %v5744_v46  ;;  %4053 = vmatprep.subr.msk.bf16.mxu1 %vm5740_vm14, %v7786_v8  ;;  %v3158_v28 = vsel %vm149_vm12, 1.0, %v7807_v10  ;;  %vm1643_vm7 = vcmp.eq.s32.totalorder %v77_v23, %v4608_v20  ;;  %v3412_v16 = vsel %vm1641_vm13, 1.0, %v7807_v10 }
  0xb8   :  { %8036 = vst [vmem:[#allocation195_spill] sm:$0xff] %v8035_v44  ;;  %8038 = vst [vmem:[#allocation197_spill] sm:$0xff] %v5750_v24  ;;  %v5765_v47 = vsub.f32 %v3158_v28, %v3158_v28  ;;  %v1773_v44 = vld [vmem:[#allocation5] sm:$0xff]  ;;  %v3414_v24 = vsel %vm1643_vm7, 1.0, %v7807_v10  ;;  %v8044_v46 = vmov 0  ;;  %v5774_v25 = vsub.f32 %v3412_v16, %v3412_v16 }
  0xb9   :  { %vm5754_vm3 = vmpackc.low %vm149_vm12, %vm147_vm6  ;;  %8042 = vst [vmem:[#allocation199_spill] sm:$0xff] %v5763_v18  ;;  %v5783_v20 = vsub.f32 %v3414_v24, %v3414_v24  ;;  %v7502_v10 = vand.u32 4294901760, %v4641_v33  ;;  %v5787_v32 = vand.u32 4294901760, %v281_v3  ;;  %v7511_v16 = vand.u32 4294901760, %v4643_v34 }
  0xba   :  { %v8040_v19 = vsel %vm5754_vm3, 4294967295, %v8039_v19  ;;  %3671 = vmatpush1.bf16.msk.msra.mxu0 %vm5754_vm3, %v7786_v8  ;;  %8043 = vst [vmem:[#allocation200_spill] sm:$0xff] %v5765_v47  ;;  %vm5770_vm6 = vmpackc.low %vm1643_vm7, %vm1641_vm13  ;;  %v1775_v12 = vcombine.high %v1773_v44, %v1773_v44  ;;  %v5794_v1 = vand.u32 4294901760, %v1773_v44  ;;  %v7516_v24 = vand.u32 4294901760, %v4649_v36 }
  0xbb   :  { %8041 = vst [vmem:[#allocation198_spill] sm:$0xff] %v8040_v19  ;;  %v8045_v46 = vsel %vm5770_vm6, 4294967295, %v8044_v46  ;;  %8047 = vst [vmem:[#allocation202_spill] sm:$0xff] %v5774_v25  ;;  %v5776_v19 = vand.u32 4294901760, %v279_v21  ;;  %4055 = vmatpush1.bf16.msk.msra.mxu1 %vm5770_vm6, %v7786_v8  ;;  %v431_v28 = vsub.f32 %v4641_v33, %v7502_v10  ;;  %v443_v23 = vsub.f32 %v4643_v34, %v7511_v16 }
  0xbc   :  { %8046 = vst [vmem:[#allocation201_spill] sm:$0xff] %v8045_v46  ;;  %8049 = vst [vmem:[#allocation204_spill] sm:$0xff] %v5783_v20  ;;  %v5798_v46 = vsub.f32 %v281_v3, %v5787_v32  ;;  %v5803_v8 = vand.u32 4294901760, %v1775_v12  ;;  %v7519_v25 = vand.u32 4294901760, %v4651_v37  ;;  %v1925_v10 = vsub.f32 %v4649_v36, %v7516_v24 }
  0xbd   :  { %8048 = vst [vmem:[#allocation203_spill] sm:$0xff] %v5776_v19  ;;  %8050 = vst [vmem:[#allocation205_spill] sm:$0xff] %v5787_v32  ;;  %v432_v57 = vand.u32 4294901760, %v431_v28  ;;  %v5810_v33 = vsub.f32 %v279_v21, %v5776_v19  ;;  %v8055_v20 = vand.u32 4294901760, %v4718_v58  ;;  %v8056_v3 = vand.u32 4294901760, %v4723_v59 }
  0xbe   :  { %8051 = vst [vmem:[#allocation206_spill] sm:$0xff] %v5794_v1  ;;  %8052 = vst [vmem:[#allocation207_spill] sm:$0xff] %v5798_v46  ;;  %v7524_v18 = vand.u32 4294901760, %v5798_v46  ;;  %v444_v16 = vand.u32 4294901760, %v443_v23  ;;  %v5818_v34 = vsub.f32 %v1775_v12, %v5803_v8  ;;  %v1937_v28 = vsub.f32 %v4651_v37, %v7519_v25 }
  0xbf   :  { %8053 = vst [vmem:[#allocation208_spill] sm:$0xff] %v5803_v8  ;;  %8054 = vst [vmem:[#allocation209_spill] sm:$0xff] %v5810_v33  ;;  %v3674_v47 = vpack.c.bf16 %v8056_v3, %v8055_v20  ;;  %v1926_v22 = vand.u32 4294901760, %v1925_v10  ;;  %v7520_v24 = vand.u32 4294901760, %v5810_v33  ;;  %v5825_v21 = vsub.f32 %v1773_v44, %v5794_v1 }
  0xc0   :  { %8057 = vst [vmem:[#allocation210_spill] sm:$0xff] %v5818_v34  ;;  %v8059_v58 = vand.u32 4294901760, %v4728_v60  ;;  %v8060_v59 = vand.u32 4294901760, %v4733_v61  ;;  %v414_v12 = vsub.f32 %v5798_v46, %v7524_v18  ;;  %v3672_v23 = vpack.c.bf16 %v444_v16, %v432_v57 }
  0xc1   :  { %8058 = vst [vmem:[#allocation211_spill] sm:$0xff] %v5825_v21  ;;  %v7522_v3 = vand.u32 4294901760, %v5818_v34  ;;  %v1938_v19 = vand.u32 4294901760, %v1937_v28  ;;  %v420_v10 = vsub.f32 %v5810_v33, %v7520_v24  ;;  %v7521_v44 = vand.u32 4294901760, %v5825_v21 }
  0xc2   :  { %v4058_v20 = vpack.c.bf16 %v8060_v59, %v8059_v58  ;;  %v7523_v25 = vand.u32 4294901760, %v4738_v62  ;;  %v7528_v60 = vand.u32 4294901760, %v4740_v63  ;;  %v415_v61 = vand.u32 4294901760, %v414_v12  ;;  %3673 = vmatprep.subr.bf16.mxu0 %v3672_v23 }
  0xc3   :  { %v1908_v58 = vsub.f32 %v5818_v34, %v7522_v3  ;;  %v4056_v57 = vpack.c.bf16 %v1938_v19, %v1926_v22  ;;  %v7527_v16 = vand.u32 4294901760, %v4742_v0  ;;  %v421_v28 = vand.u32 4294901760, %v420_v10 }
  0xc4   :  { %v1914_v59 = vsub.f32 %v5825_v21, %v7521_v44  ;;  %v455_v24 = vsub.f32 %v4738_v62, %v7523_v25  ;;  %v467_v12 = vsub.f32 %v4740_v63, %v7528_v60  ;;  %416 = vmatprep.mubr.f32.mxu0 %v415_v61  ;;  %v7532_v19 = vand.u32 4294901760, %v4744_v2 }
  0xc5   :  { %v1909_v23 = vand.u32 4294901760, %v1908_v58  ;;  %4057 = vmatprep.subr.bf16.mxu1 %v4056_v57  ;;  %v1949_v22 = vsub.f32 %v4742_v0, %v7527_v16  ;;  %v8061_v10 = vand.u32 4294901760, %v4769_v5  ;;  %422 = vmatmul.mubr.f32.vlgmr.msra.gmra.mrb[0].mxu0 %v421_v28  ;;  %v8062_v21 = vand.u32 4294901760, %v4771_v39 }
  0xc6   :  { %v1915_v3 = vand.u32 4294901760, %v1914_v59  ;;  %v456_v25 = vand.u32 4294901760, %v455_v24  ;;  %v468_v18 = vand.u32 4294901760, %v467_v12  ;;  %3675 = vmatpush1.bf16.msra.mxu0 %v3674_v47  ;;  %v1961_v57 = vsub.f32 %v4744_v2, %v7532_v19  ;;  %813 = vmatprep.mubr.f32.mxu0 %v5787_v32 }
  0xc7   :  { %v461_v44 = vsub.f32 %v4769_v5, %v8061_v10  ;;  %v473_v61 = vsub.f32 %v4771_v39, %v8062_v21  ;;  %1910 = vmatprep.mubr.f32.mxu1 %v1909_v23  ;;  %v1950_v58 = vand.u32 4294901760, %v1949_v22  ;;  %v8063_v60 = vand.u32 4294901760, %v4777_v41 }
  0xc8   :  { %1916 = vmatmul.mubr.f32.vlgmr.msra.gmra.mrb[0].mxu1 %v1915_v3  ;;  %v3676_v28 = vpack.c.bf16 %v468_v18, %v456_v25  ;;  %v8064_v59 = vand.u32 4294901760, %v4779_v42  ;;  %v7530_v21 = vand.u32 4294901760, %v4811_v49  ;;  %v1962_v47 = vand.u32 4294901760, %v1961_v57 }
  0xc9   :  { %v462_v16 = vand.u32 4294901760, %v461_v44  ;;  %v1955_v10 = vsub.f32 %v4777_v41, %v8063_v60  ;;  %v474_v24 = vand.u32 4294901760, %v473_v61  ;;  %4059 = vmatpush1.bf16.msra.mxu1 %v4058_v20  ;;  %v7529_v44 = vand.u32 4294901760, %v4813_v48  ;;  %2307 = vmatprep.mubr.f32.mxu1 %v5803_v8 }
  0xca   :  { %v1967_v12 = vsub.f32 %v4779_v42, %v8064_v59  ;;  %v7531_v22 = vand.u32 4294901760, %v4818_v56  ;;  %3677 = vmatprep.subr.bf16.mxu0 %v3676_v28  ;;  %v479_v3 = vsub.f32 %v4811_v49, %v7530_v21  ;;  %v7533_v60 = vand.u32 4294901760, %v4820_v55 }
  0xcb   :  { %v1956_v23 = vand.u32 4294901760, %v1955_v10  ;;  %v3678_v18 = vpack.c.bf16 %v474_v24, %v462_v16  ;;  %v4060_v61 = vpack.c.bf16 %v1962_v47, %v1950_v58  ;;  %v491_v20 = vsub.f32 %v4813_v48, %v7529_v44 }
  0xcc   :  { %v1968_v25 = vand.u32 4294901760, %v1967_v12  ;;  %v1973_v57 = vsub.f32 %v4818_v56, %v7531_v22  ;;  %v8065_v10 = vand.u32 4294901760, %v4841_v7  ;;  %v480_v24 = vand.u32 4294901760, %v479_v3 }
  0xcd   :  { %3679 = vmatpush1.bf16.msra.mxu0 %v3678_v18  ;;  %v1985_v59 = vsub.f32 %v4820_v55, %v7533_v60  ;;  %v8066_v58 = vand.u32 4294901760, %v4843_v53  ;;  %4061 = vmatprep.subr.bf16.mxu1 %v4060_v61  ;;  %v492_v47 = vand.u32 4294901760, %v491_v20  ;;  %v8067_v22 = vand.u32 4294901760, %v4849_v15 }
  0xce   :  { %v485_v16 = vsub.f32 %v4841_v7, %v8065_v10  ;;  %v4062_v28 = vpack.c.bf16 %v1968_v25, %v1956_v23  ;;  %v1974_v44 = vand.u32 4294901760, %v1973_v57  ;;  %v8068_v25 = vand.u32 4294901760, %v4851_v14 }
  0xcf   :  { %v497_v12 = vsub.f32 %v4843_v53, %v8066_v58  ;;  %v1979_v19 = vsub.f32 %v4849_v15, %v8067_v22  ;;  %v1986_v18 = vand.u32 4294901760, %v1985_v59  ;;  %v7538_v10 = vand.u32 4294901760, %v4883_v51 }
  0xd0   :  { %v486_v21 = vand.u32 4294901760, %v485_v16  ;;  %4063 = vmatpush1.bf16.msra.mxu1 %v4062_v28  ;;  %v1991_v3 = vsub.f32 %v4851_v14, %v8068_v25  ;;  %v3680_v60 = vpack.c.bf16 %v492_v47, %v480_v24  ;;  %v7537_v61 = vand.u32 4294901760, %v4885_v38 }
  0xd1   :  { %v498_v23 = vand.u32 4294901760, %v497_v12  ;;  %v1980_v8 = vand.u32 4294901760, %v1979_v19  ;;  %v7536_v20 = vand.u32 4294901760, %v4890_v50  ;;  %v4064_v57 = vpack.c.bf16 %v1986_v18, %v1974_v44 }
  0xd2   :  { %v1992_v58 = vand.u32 4294901760, %v1991_v3  ;;  %v503_v22 = vsub.f32 %v4883_v51, %v7538_v10  ;;  %3681 = vmatprep.subr.bf16.mxu0 %v3680_v60  ;;  %v515_v28 = vsub.f32 %v4885_v38, %v7537_v61  ;;  %v7543_v24 = vand.u32 4294901760, %v4892_v4 }
  0xd3   :  { %v3682_v16 = vpack.c.bf16 %v498_v23, %v486_v21  ;;  %v1997_v19 = vsub.f32 %v4890_v50, %v7536_v20  ;;  %v8069_v59 = vand.u32 4294901760, %v4913_v9  ;;  %4065 = vmatprep.subr.bf16.mxu1 %v4064_v57  ;;  %v8070_v60 = vand.u32 4294901760, %v4915_v6 }
  0xd4   :  { %v4066_v44 = vpack.c.bf16 %v1992_v58, %v1980_v8  ;;  %v504_v12 = vand.u32 4294901760, %v503_v22  ;;  %v8071_v18 = vand.u32 4294901760, %v4921_v27  ;;  %v516_v25 = vand.u32 4294901760, %v515_v28 }
  0xd5   :  { %v509_v21 = vsub.f32 %v4913_v9, %v8069_v59  ;;  %3683 = vmatpush1.bf16.msra.mxu0 %v3682_v16  ;;  %v521_v47 = vsub.f32 %v4915_v6, %v8070_v60  ;;  %v1998_v3 = vand.u32 4294901760, %v1997_v19  ;;  %v2009_v20 = vsub.f32 %v4892_v4, %v7543_v24 }
  0xd6   :  { %v2003_v23 = vsub.f32 %v4921_v27, %v8071_v18  ;;  %4067 = vmatpush1.bf16.msra.mxu1 %v4066_v44  ;;  %v8072_v8 = vand.u32 4294901760, %v4923_v30  ;;  %v7541_v22 = vand.u32 4294901760, %v4955_v54  ;;  %v3684_v59 = vpack.c.bf16 %v516_v25, %v504_v12  ;;  %v8135_v27 = vld [vmem:[#allocation134_spill] sm:$0xff] }
  0xd7   :  { %v510_v61 = vand.u32 4294901760, %v509_v21  ;;  %v522_v57 = vand.u32 4294901760, %v521_v47  ;;  %v2010_v60 = vand.u32 4294901760, %v2009_v20  ;;  %v7539_v18 = vand.u32 4294901760, %v4957_v45 }
  0xd8   :  { %v2004_v16 = vand.u32 4294901760, %v2003_v23  ;;  %v2015_v58 = vsub.f32 %v4923_v30, %v8072_v8  ;;  %v7540_v28 = vand.u32 4294901760, %v4962_v52  ;;  %v527_v21 = vsub.f32 %v4955_v54, %v7541_v22  ;;  %3685 = vmatprep.subr.bf16.mxu0 %v3684_v59 }
  0xd9   :  { %v3686_v19 = vpack.c.bf16 %v522_v57, %v510_v61  ;;  %v7542_v44 = vand.u32 4294901760, %v4964_v26  ;;  %v4068_v47 = vpack.c.bf16 %v2010_v60, %v1998_v3  ;;  %v539_v23 = vsub.f32 %v4957_v45, %v7539_v18 }
  0xda   :  { %v2016_v10 = vand.u32 4294901760, %v2015_v58  ;;  %v2021_v20 = vsub.f32 %v4962_v52, %v7540_v28  ;;  %v8073_v12 = vand.u32 4294901760, %v4985_v11  ;;  %v528_v57 = vand.u32 4294901760, %v527_v21 }
  0xdb   :  { %3687 = vmatpush1.bf16.msra.mxu0 %v3686_v19  ;;  %v2033_v8 = vsub.f32 %v4964_v26, %v7542_v44  ;;  %v8074_v3 = vand.u32 4294901760, %v4987_v40  ;;  %4069 = vmatprep.subr.bf16.mxu1 %v4068_v47  ;;  %v540_v59 = vand.u32 4294901760, %v539_v23  ;;  %v8075_v28 = vand.u32 4294901760, %v4993_v35  ;;  %v8078_v23 = vld [vmem:[#allocation76_spill] sm:$0xff] }
  0xdc   :  { %v533_v61 = vsub.f32 %v4985_v11, %v8073_v12  ;;  %v4070_v25 = vpack.c.bf16 %v2016_v10, %v2004_v16  ;;  %v2022_v60 = vand.u32 4294901760, %v2021_v20  ;;  %v8076_v16 = vand.u32 4294901760, %v4995_v29 }
  0xdd   :  { %v545_v58 = vsub.f32 %v4987_v40, %v8074_v3  ;;  %v2027_v22 = vsub.f32 %v4993_v35, %v8075_v28  ;;  %v2034_v19 = vand.u32 4294901760, %v2033_v8  ;;  %v7550_v12 = vand.u32 4294901760, %v5027_v31  ;;  %v8077_v3 = vld [vmem:[#allocation75_spill] sm:$0xff] }
  0xde   :  { %v534_v18 = vand.u32 4294901760, %v533_v61  ;;  %4071 = vmatpush1.bf16.msra.mxu1 %v4070_v25  ;;  %v2039_v21 = vsub.f32 %v4995_v29, %v8076_v16  ;;  %v3688_v44 = vpack.c.bf16 %v540_v59, %v528_v57  ;;  %v7548_v47 = vand.u32 4294901760, %v8077_v3  ;;  %v8079_v57 = vld [vmem:[#allocation77_spill] sm:$0xff]  ;;  %v8087_v29 = vld [vmem:[#allocation87_spill] sm:$0xff] }
  0xdf   :  { %v546_v10 = vand.u32 4294901760, %v545_v58  ;;  %v2028_v24 = vand.u32 4294901760, %v2027_v22  ;;  %v7549_v20 = vand.u32 4294901760, %v8078_v23  ;;  %v4072_v61 = vpack.c.bf16 %v2034_v19, %v2022_v60 }
  0xe0   :  { %v2040_v33 = vand.u32 4294901760, %v2039_v21  ;;  %v551_v28 = vsub.f32 %v5027_v31, %v7550_v12  ;;  %3689 = vmatprep.subr.bf16.mxu0 %v3688_v44  ;;  %v563_v25 = vsub.f32 %v8077_v3, %v7548_v47  ;;  %v7563_v8 = vand.u32 4294901760, %v8079_v57  ;;  %v8111_v31 = vld [vmem:[#allocation111_spill] sm:$0xff] }
  0xe1   :  { %v3690_v32 = vpack.c.bf16 %v546_v10, %v534_v18  ;;  %v2045_v22 = vsub.f32 %v8078_v23, %v7549_v20  ;;  %v8080_v58 = vand.u32 4294901760, %v5057_v13  ;;  %4073 = vmatprep.subr.bf16.mxu1 %v4072_v61  ;;  %v8081_v44 = vand.u32 4294901760, %v5059_v43  ;;  %v8082_v10 = vld [vmem:[#allocation82_spill] sm:$0xff] }
  0xe2   :  { %v4074_v59 = vpack.c.bf16 %v2040_v33, %v2028_v24  ;;  %v552_v60 = vand.u32 4294901760, %v551_v28  ;;  %v8083_v16 = vand.u32 4294901760, %v8082_v10  ;;  %v564_v47 = vand.u32 4294901760, %v563_v25  ;;  %v8084_v33 = vld [vmem:[#allocation83_spill] sm:$0xff]  ;;  %v8088_v25 = vld [vmem:[#allocation88_spill] sm:$0xff] }
  0xe3   :  { %v557_v18 = vsub.f32 %v5057_v13, %v8080_v58  ;;  %3691 = vmatpush1.bf16.msra.mxu0 %v3690_v32  ;;  %v569_v19 = vsub.f32 %v5059_v43, %v8081_v44  ;;  %v2046_v20 = vand.u32 4294901760, %v2045_v22  ;;  %v2057_v12 = vsub.f32 %v8079_v57, %v7563_v8  ;;  %v8086_v58 = vld [vmem:[#allocation86_spill] sm:$0xff] }
  0xe4   :  { %v2051_v21 = vsub.f32 %v8082_v10, %v8083_v16  ;;  %4075 = vmatpush1.bf16.msra.mxu1 %v4074_v59  ;;  %v8085_v24 = vand.u32 4294901760, %v8084_v33  ;;  %v7561_v44 = vand.u32 4294901760, %v8086_v58  ;;  %v3692_v43 = vpack.c.bf16 %v564_v47, %v552_v60  ;;  %v8089_v59 = vld [vmem:[#allocation89_spill] sm:$0xff]  ;;  %v8090_v47 = vld [vmem:[#allocation91_spill] sm:$0xff] }
  0xe5   :  { %v558_v23 = vand.u32 4294901760, %v557_v18  ;;  %v570_v61 = vand.u32 4294901760, %v569_v19  ;;  %v2058_v13 = vand.u32 4294901760, %v2057_v12  ;;  %v7562_v16 = vand.u32 4294901760, %v8087_v29 }
  0xe6   :  { %v2052_v32 = vand.u32 4294901760, %v2051_v21  ;;  %v2063_v28 = vsub.f32 %v8084_v33, %v8085_v24  ;;  %v7565_v22 = vand.u32 4294901760, %v8088_v25  ;;  %v575_v18 = vsub.f32 %v8086_v58, %v7561_v44  ;;  %3693 = vmatprep.subr.bf16.mxu0 %v3692_v43 }
  0xe7   :  { %v3694_v10 = vpack.c.bf16 %v570_v61, %v558_v23  ;;  %v7568_v19 = vand.u32 4294901760, %v8089_v59  ;;  %v4076_v21 = vpack.c.bf16 %v2058_v13, %v2046_v20  ;;  %v587_v24 = vsub.f32 %v8087_v29, %v7562_v16  ;;  %v8092_v13 = vld [vmem:[#allocation92_spill] sm:$0xff] }
  0xe8   :  { %v2064_v35 = vand.u32 4294901760, %v2063_v28  ;;  %v2069_v12 = vsub.f32 %v8088_v25, %v7565_v22  ;;  %v8091_v60 = vand.u32 4294901760, %v8090_v47  ;;  %v576_v28 = vand.u32 4294901760, %v575_v18  ;;  %v8094_v22 = vld [vmem:[#allocation94_spill] sm:$0xff] }
  0xe9   :  { %3695 = vmatpush1.bf16.msra.mxu0 %v3694_v10  ;;  %v2081_v43 = vsub.f32 %v8089_v59, %v7568_v19  ;;  %v8093_v20 = vand.u32 4294901760, %v8092_v13  ;;  %4077 = vmatprep.subr.bf16.mxu1 %v4076_v21  ;;  %v588_v16 = vand.u32 4294901760, %v587_v24  ;;  %v8095_v25 = vand.u32 4294901760, %v8094_v22  ;;  %v8098_v19 = vld [vmem:[#allocation98_spill] sm:$0xff]  ;;  %v8100_v24 = vld [vmem:[#allocation100_spill] sm:$0xff] }
  0xea   :  { %v581_v23 = vsub.f32 %v8090_v47, %v8091_v60  ;;  %v4078_v61 = vpack.c.bf16 %v2064_v35, %v2052_v32  ;;  %v2070_v8 = vand.u32 4294901760, %v2069_v12  ;;  %v8096_v32 = vld [vmem:[#allocation95_spill] sm:$0xff]  ;;  %v7575_v47 = vand.u32 4294901760, %v8098_v19 }
  0xeb   :  { %v593_v44 = vsub.f32 %v8092_v13, %v8093_v20  ;;  %v2075_v29 = vsub.f32 %v8094_v22, %v8095_v25  ;;  %v2082_v10 = vand.u32 4294901760, %v2081_v43  ;;  %v8097_v18 = vand.u32 4294901760, %v8096_v32  ;;  %v8099_v20 = vld [vmem:[#allocation99_spill] sm:$0xff] }
  0xec   :  { %v582_v33 = vand.u32 4294901760, %v581_v23  ;;  %4079 = vmatpush1.bf16.msra.mxu1 %v4078_v61  ;;  %v3696_v59 = vpack.c.bf16 %v588_v16, %v576_v28  ;;  %v7574_v21 = vand.u32 4294901760, %v8099_v20  ;;  %v7577_v12 = vand.u32 4294901760, %v8100_v24  ;;  %v8101_v16 = vld [vmem:[#allocation101_spill] sm:$0xff]  ;;  %v8102_v28 = vld [vmem:[#allocation103_spill] sm:$0xff] }
  0xed   :  { %v594_v35 = vand.u32 4294901760, %v593_v44  ;;  %v2087_v60 = vsub.f32 %v8096_v32, %v8097_v18  ;;  %v2076_v58 = vand.u32 4294901760, %v2075_v29  ;;  %v4080_v23 = vpack.c.bf16 %v2082_v10, %v2070_v8 }
  0xee   :  { %v599_v25 = vsub.f32 %v8098_v19, %v7575_v47  ;;  %3697 = vmatprep.subr.bf16.mxu0 %v3696_v59  ;;  %v611_v44 = vsub.f32 %v8099_v20, %v7574_v21  ;;  %v2093_v29 = vsub.f32 %v8100_v24, %v7577_v12  ;;  %v7589_v61 = vand.u32 4294901760, %v8101_v16 }
  0xef   :  { %v3698_v13 = vpack.c.bf16 %v594_v35, %v582_v33  ;;  %v2088_v57 = vand.u32 4294901760, %v2087_v60  ;;  %v8103_v43 = vand.u32 4294901760, %v8102_v28  ;;  %4081 = vmatprep.subr.bf16.mxu1 %v4080_v23  ;;  %v8104_v35 = vld [vmem:[#allocation104_spill] sm:$0xff]  ;;  %v8106_v60 = vld [vmem:[#allocation106_spill] sm:$0xff] }
  0xf0   :  { %v600_v10 = vand.u32 4294901760, %v599_v25  ;;  %v8105_v59 = vand.u32 4294901760, %v8104_v35  ;;  %v8107_v21 = vand.u32 4294901760, %v8106_v60  ;;  %v612_v32 = vand.u32 4294901760, %v611_v44  ;;  %v8112_v44 = vld [vmem:[#allocation110_spill] sm:$0xff] }
  0xf1   :  { %v605_v8 = vsub.f32 %v8102_v28, %v8103_v43  ;;  %3699 = vmatpush1.bf16.msra.mxu0 %v3698_v13  ;;  %v4082_v33 = vpack.c.bf16 %v2088_v57, %v2076_v58  ;;  %v2094_v12 = vand.u32 4294901760, %v2093_v29  ;;  %v2105_v22 = vsub.f32 %v8101_v16, %v7589_v61  ;;  %v8108_v57 = vld [vmem:[#allocation107_spill] sm:$0xff]  ;;  %v8110_v43 = vld [vmem:[#allocation109_spill] sm:$0xff] }
  0xf2   :  { %v617_v18 = vsub.f32 %v8104_v35, %v8105_v59  ;;  %v2099_v47 = vsub.f32 %v8106_v60, %v8107_v21  ;;  %v8109_v58 = vand.u32 4294901760, %v8108_v57  ;;  %v7587_v59 = vand.u32 4294901760, %v8110_v43 }
  0xf3   :  { %v606_v3 = vand.u32 4294901760, %v605_v8  ;;  %4083 = vmatpush1.bf16.msra.mxu1 %v4082_v33  ;;  %v3700_v35 = vpack.c.bf16 %v612_v32, %v600_v10  ;;  %v2106_v28 = vand.u32 4294901760, %v2105_v22  ;;  %v7588_v21 = vand.u32 4294901760, %v8111_v31  ;;  %v8113_v33 = vld [vmem:[#allocation113_spill] sm:$0xff]  ;;  %v8114_v32 = vld [vmem:[#allocation115_spill] sm:$0xff] }
  0xf4   :  { %v618_v23 = vand.u32 4294901760, %v617_v18  ;;  %v2100_v13 = vand.u32 4294901760, %v2099_v47  ;;  %v2111_v25 = vsub.f32 %v8108_v57, %v8109_v58  ;;  %v7591_v29 = vand.u32 4294901760, %v8112_v44 }
  0xf5   :  { %v623_v8 = vsub.f32 %v8110_v43, %v7587_v59  ;;  %v7596_v47 = vand.u32 4294901760, %v8113_v33  ;;  %3701 = vmatprep.subr.bf16.mxu0 %v3700_v35  ;;  %v4084_v18 = vpack.c.bf16 %v2106_v28, %v2094_v12  ;;  %v635_v58 = vsub.f32 %v8111_v31, %v7588_v21  ;;  %v8116_v12 = vld [vmem:[#allocation116_spill] sm:$0xff] }
  0xf6   :  { %v3702_v60 = vpack.c.bf16 %v618_v23, %v606_v3  ;;  %v2112_v34 = vand.u32 4294901760, %v2111_v25  ;;  %v2117_v22 = vsub.f32 %v8112_v44, %v7591_v29  ;;  %v8115_v10 = vand.u32 4294901760, %v8114_v32  ;;  %v8118_v29 = vld [vmem:[#allocation118_spill] sm:$0xff] }
  0xf7   :  { %v624_v25 = vand.u32 4294901760, %v623_v8  ;;  %v2129_v35 = vsub.f32 %v8113_v33, %v7596_v47  ;;  %v8117_v28 = vand.u32 4294901760, %v8116_v12  ;;  %4085 = vmatprep.subr.bf16.mxu1 %v4084_v18  ;;  %v636_v21 = vand.u32 4294901760, %v635_v58  ;;  %v8122_v47 = vld [vmem:[#allocation121_spill] sm:$0xff]  ;;  %v8124_v58 = vld [vmem:[#allocation124_spill] sm:$0xff] }
  0xf8   :  { %v629_v3 = vsub.f32 %v8114_v32, %v8115_v10  ;;  %3703 = vmatpush1.bf16.msra.mxu0 %v3702_v60  ;;  %v4086_v23 = vpack.c.bf16 %v2112_v34, %v2100_v13  ;;  %v2118_v61 = vand.u32 4294901760, %v2117_v22  ;;  %v8119_v40 = vand.u32 4294901760, %v8118_v29  ;;  %v8120_v13 = vld [vmem:[#allocation119_spill] sm:$0xff] }
  0xf9   :  { %v641_v59 = vsub.f32 %v8116_v12, %v8117_v28  ;;  %v2130_v60 = vand.u32 4294901760, %v2129_v35  ;;  %v8121_v8 = vand.u32 4294901760, %v8120_v13  ;;  %v7606_v32 = vand.u32 4294901760, %v8122_v47  ;;  %v8123_v28 = vld [vmem:[#allocation122_spill] sm:$0xff] }
  0xfa   :  { %v630_v57 = vand.u32 4294901760, %v629_v3  ;;  %v2123_v11 = vsub.f32 %v8118_v29, %v8119_v40  ;;  %4087 = vmatpush1.bf16.msra.mxu1 %v4086_v23  ;;  %v3704_v46 = vpack.c.bf16 %v636_v21, %v624_v25  ;;  %v7605_v18 = vand.u32 4294901760, %v8123_v28  ;;  %v8125_v21 = vld [vmem:[#allocation125_spill] sm:$0xff]  ;;  %v8126_v25 = vld [vmem:[#allocation127_spill] sm:$0xff] }
  0xfb   :  { %v642_v34 = vand.u32 4294901760, %v641_v59  ;;  %v2135_v10 = vsub.f32 %v8120_v13, %v8121_v8  ;;  %v7608_v22 = vand.u32 4294901760, %v8124_v58  ;;  %v4088_v3 = vpack.c.bf16 %v2130_v60, %v2118_v61 }
  0xfc   :  { %v2124_v26 = vand.u32 4294901760, %v2123_v11  ;;  %v647_v40 = vsub.f32 %v8122_v47, %v7606_v32  ;;  %3705 = vmatprep.subr.bf16.mxu0 %v3704_v46  ;;  %v659_v59 = vsub.f32 %v8123_v28, %v7605_v18  ;;  %v7621_v23 = vand.u32 4294901760, %v8125_v21 }
  0xfd   :  { %v3706_v12 = vpack.c.bf16 %v642_v34, %v630_v57  ;;  %v2136_v52 = vand.u32 4294901760, %v2135_v10  ;;  %v2141_v11 = vsub.f32 %v8124_v58, %v7608_v22  ;;  %v8127_v35 = vand.u32 4294901760, %v8126_v25  ;;  %4089 = vmatprep.subr.bf16.mxu1 %v4088_v3  ;;  %v8128_v34 = vld [vmem:[#allocation128_spill] sm:$0xff]  ;;  %v8130_v10 = vld [vmem:[#allocation130_spill] sm:$0xff] }
  0xfe   :  { %v648_v60 = vand.u32 4294901760, %v647_v40  ;;  %v8129_v46 = vand.u32 4294901760, %v8128_v34  ;;  %v8131_v18 = vand.u32 4294901760, %v8130_v10  ;;  %v660_v13 = vand.u32 4294901760, %v659_v59  ;;  %v8136_v59 = vld [vmem:[#allocation136_spill] sm:$0xff] }
  0xff   :  { %v653_v61 = vsub.f32 %v8126_v25, %v8127_v35  ;;  %3707 = vmatpush1.bf16.msra.mxu0 %v3706_v12  ;;  %v4090_v57 = vpack.c.bf16 %v2136_v52, %v2124_v26  ;;  %v2142_v22 = vand.u32 4294901760, %v2141_v11  ;;  %v2153_v29 = vsub.f32 %v8125_v21, %v7621_v23  ;;  %v8132_v26 = vld [vmem:[#allocation131_spill] sm:$0xff]  ;;  %v8134_v35 = vld [vmem:[#allocation133_spill] sm:$0xff] }
 0x100   :  { %v665_v8 = vsub.f32 %v8128_v34, %v8129_v46  ;;  %v2147_v32 = vsub.f32 %v8130_v10, %v8131_v18  ;;  %v8133_v52 = vand.u32 4294901760, %v8132_v26  ;;  %v7619_v46 = vand.u32 4294901760, %v8134_v35 }
 0x101   :  { %v654_v30 = vand.u32 4294901760, %v653_v61  ;;  %4091 = vmatpush1.bf16.msra.mxu1 %v4090_v57  ;;  %v3708_v34 = vpack.c.bf16 %v660_v13, %v648_v60  ;;  %v2154_v25 = vand.u32 4294901760, %v2153_v29  ;;  %v7620_v18 = vand.u32 4294901760, %v8135_v27  ;;  %v8137_v57 = vld [vmem:[#allocation137_spill] sm:$0xff]  ;;  %v8138_v13 = vld [vmem:[#allocation139_spill] sm:$0xff] }
 0x102   :  { %v666_v3 = vand.u32 4294901760, %v665_v8  ;;  %v2148_v12 = vand.u32 4294901760, %v2147_v32  ;;  %v2159_v40 = vsub.f32 %v8132_v26, %v8133_v52  ;;  %v7623_v11 = vand.u32 4294901760, %v8136_v59 }
 0x103   :  { %v671_v61 = vsub.f32 %v8134_v35, %v7619_v46  ;;  %v7628_v32 = vand.u32 4294901760, %v8137_v57  ;;  %3709 = vmatprep.subr.bf16.mxu0 %v3708_v34  ;;  %v4092_v8 = vpack.c.bf16 %v2154_v25, %v2142_v22  ;;  %v683_v52 = vsub.f32 %v8135_v27, %v7620_v18  ;;  %v8140_v22 = vld [vmem:[#allocation140_spill] sm:$0xff] }
 0x104   :  { %v3710_v10 = vpack.c.bf16 %v666_v3, %v654_v30  ;;  %v2160_v45 = vand.u32 4294901760, %v2159_v40  ;;  %v2165_v29 = vsub.f32 %v8136_v59, %v7623_v11  ;;  %v8139_v60 = vand.u32 4294901760, %v8138_v13  ;;  %v8142_v11 = vld [vmem:[#allocation142_spill] sm:$0xff] }
 0x105   :  { %v672_v40 = vand.u32 4294901760, %v671_v61  ;;  %v2177_v34 = vsub.f32 %v8137_v57, %v7628_v32  ;;  %v8141_v25 = vand.u32 4294901760, %v8140_v22  ;;  %4093 = vmatprep.subr.bf16.mxu1 %v4092_v8  ;;  %v684_v18 = vand.u32 4294901760, %v683_v52  ;;  %v8146_v32 = vld [vmem:[#allocation144_spill] sm:$0xff] }
 0x106   :  { %v677_v30 = vsub.f32 %v8138_v13, %v8139_v60  ;;  %3711 = vmatpush1.bf16.msra.mxu0 %v3710_v10  ;;  %v4094_v3 = vpack.c.bf16 %v2160_v45, %v2148_v12  ;;  %v2166_v23 = vand.u32 4294901760, %v2165_v29  ;;  %v8143_v54 = vand.u32 4294901760, %v8142_v11  ;;  %v8144_v12 = vld [vmem:[#allocation143_spill] sm:$0xff]  ;;  %v8148_v52 = vld [vmem:[#allocation148_spill] sm:$0xff] }
 0x107   :  { %v689_v46 = vsub.f32 %v8140_v22, %v8141_v25  ;;  %v2178_v10 = vand.u32 4294901760, %v2177_v34  ;;  %v8145_v61 = vand.u32 4294901760, %v8144_v12  ;;  %v7638_v13 = vand.u32 4294901760, %v8146_v32  ;;  %v8147_v25 = vld [vmem:[#allocation146_spill] sm:$0xff] }
 0x108   :  { %v678_v26 = vand.u32 4294901760, %v677_v30  ;;  %v2171_v6 = vsub.f32 %v8142_v11, %v8143_v54  ;;  %4095 = vmatpush1.bf16.msra.mxu1 %v4094_v3  ;;  %v3712_v9 = vpack.c.bf16 %v684_v18, %v672_v40  ;;  %v7637_v8 = vand.u32 4294901760, %v8147_v25  ;;  %v8149_v18 = vld [vmem:[#allocation149_spill] sm:$0xff]  ;;  %v8150_v40 = vld [vmem:[#allocation151_spill] sm:$0xff] }
 0x109   :  { %v690_v45 = vand.u32 4294901760, %v689_v46  ;;  %v2183_v60 = vsub.f32 %v8144_v12, %v8145_v61  ;;  %v7640_v29 = vand.u32 4294901760, %v8148_v52  ;;  %v4096_v30 = vpack.c.bf16 %v2178_v10, %v2166_v23 }
 0x10a   :  { %v2172_v4 = vand.u32 4294901760, %v2171_v6  ;;  %v695_v54 = vsub.f32 %v8146_v32, %v7638_v13  ;;  %3713 = vmatprep.subr.bf16.mxu0 %v3712_v9  ;;  %v707_v46 = vsub.f32 %v8147_v25, %v7637_v8  ;;  %v7650_v3 = vand.u32 4294901760, %v8149_v18  ;;  %v8159_v25 = vld [vmem:[#allocation158_spill] sm:$0xff] }
 0x10b   :  { %v3714_v22 = vpack.c.bf16 %v690_v45, %v678_v26  ;;  %v2184_v50 = vand.u32 4294901760, %v2183_v60  ;;  %v2189_v6 = vsub.f32 %v8148_v52, %v7640_v29  ;;  %v8151_v34 = vand.u32 4294901760, %v8150_v40  ;;  %4097 = vmatprep.subr.bf16.mxu1 %v4096_v30  ;;  %v8152_v45 = vld [vmem:[#allocation152_spill] sm:$0xff]  ;;  %v8154_v60 = vld [vmem:[#allocation154_spill] sm:$0xff] }
 0x10c   :  { %v696_v10 = vand.u32 4294901760, %v695_v54  ;;  %v8153_v9 = vand.u32 4294901760, %v8152_v45  ;;  %v8155_v8 = vand.u32 4294901760, %v8154_v60  ;;  %v708_v12 = vand.u32 4294901760, %v707_v46  ;;  %v8160_v46 = vld [vmem:[#allocation160_spill] sm:$0xff] }
 0x10d   :  { %v701_v23 = vsub.f32 %v8150_v40, %v8151_v34  ;;  %3715 = vmatpush1.bf16.msra.mxu0 %v3714_v22  ;;  %v4098_v26 = vpack.c.bf16 %v2184_v50, %v2172_v4  ;;  %v2190_v29 = vand.u32 4294901760, %v2189_v6  ;;  %v2201_v11 = vsub.f32 %v8149_v18, %v7650_v3  ;;  %v8156_v50 = vld [vmem:[#allocation155_spill] sm:$0xff]  ;;  %v8158_v34 = vld [vmem:[#allocation157_spill] sm:$0xff] }
 0x10e   :  { %v713_v61 = vsub.f32 %v8152_v45, %v8153_v9  ;;  %v2195_v13 = vsub.f32 %v8154_v60, %v8155_v8  ;;  %v8157_v4 = vand.u32 4294901760, %v8156_v50  ;;  %v7649_v9 = vand.u32 4294901760, %v8158_v34 }
 0x10f   :  { %v702_v52 = vand.u32 4294901760, %v701_v23  ;;  %4099 = vmatpush1.bf16.msra.mxu1 %v4098_v26  ;;  %v3716_v45 = vpack.c.bf16 %v708_v12, %v696_v10  ;;  %v2202_v40 = vand.u32 4294901760, %v2201_v11  ;;  %v7648_v8 = vand.u32 4294901760, %v8159_v25  ;;  %v8161_v26 = vld [vmem:[#allocation161_spill] sm:$0xff] }
 0x110   :  { %v714_v30 = vand.u32 4294901760, %v713_v61  ;;  %v2196_v22 = vand.u32 4294901760, %v2195_v13  ;;  %v2207_v54 = vsub.f32 %v8156_v50, %v8157_v4  ;;  %v7651_v6 = vand.u32 4294901760, %v8160_v46 }
 0x111   :  { %v719_v23 = vsub.f32 %v8158_v34, %v7649_v9  ;;  %v7654_v13 = vand.u32 4294901760, %v8161_v26  ;;  %3717 = vmatprep.subr.bf16.mxu0 %v3716_v45  ;;  %v4100_v61 = vpack.c.bf16 %v2202_v40, %v2190_v29  ;;  %v731_v4 = vsub.f32 %v8159_v25, %v7648_v8  ;;  %v8163_v29 = vld [vmem:[#allocation164_spill] sm:$0xff] }
 0x112   :  { %v3718_v60 = vpack.c.bf16 %v714_v30, %v702_v52  ;;  %v2208_v32 = vand.u32 4294901760, %v2207_v54  ;;  %v2213_v11 = vsub.f32 %v8160_v46, %v7651_v6  ;;  %v8162_v12 = vand.u32 4294901760, %v5557_v17  ;;  %v8165_v6 = vld [vmem:[#allocation166_spill] sm:$0xff] }
 0x113   :  { %v720_v30 = vand.u32 4294901760, %v719_v23  ;;  %v2225_v45 = vsub.f32 %v8161_v26, %v7654_v13  ;;  %v8164_v40 = vand.u32 4294901760, %v8163_v29  ;;  %4101 = vmatprep.subr.bf16.mxu1 %v4100_v61  ;;  %v732_v8 = vand.u32 4294901760, %v731_v4  ;;  %v8169_v13 = vld [vmem:[#allocation168_spill] sm:$0xff] }
 0x114   :  { %v725_v52 = vsub.f32 %v5557_v17, %v8162_v12  ;;  %3719 = vmatpush1.bf16.msra.mxu0 %v3718_v60  ;;  %v4102_v10 = vpack.c.bf16 %v2208_v32, %v2196_v22  ;;  %v2214_v9 = vand.u32 4294901760, %v2213_v11  ;;  %v8166_v50 = vand.u32 4294901760, %v8165_v6  ;;  %v8167_v22 = vld [vmem:[#allocation167_spill] sm:$0xff]  ;;  %v8171_v4 = vld [vmem:[#allocation172_spill] sm:$0xff] }
 0x115   :  { %v737_v54 = vsub.f32 %v8163_v29, %v8164_v40  ;;  %v2226_v60 = vand.u32 4294901760, %v2225_v45  ;;  %v8168_v23 = vand.u32 4294901760, %v8167_v22  ;;  %v7662_v17 = vand.u32 4294901760, %v8169_v13  ;;  %v8170_v40 = vld [vmem:[#allocation170_spill] sm:$0xff]  ;;  %v8173_v45 = vld [vmem:[#allocation175_spill] sm:$0xff] }
 0x116   :  { %v726_v3 = vand.u32 4294901760, %v725_v52  ;;  %v2219_v46 = vsub.f32 %v8165_v6, %v8166_v50  ;;  %4103 = vmatpush1.bf16.msra.mxu1 %v4102_v10  ;;  %v3720_v26 = vpack.c.bf16 %v732_v8, %v720_v30  ;;  %v7661_v61 = vand.u32 4294901760, %v8170_v40 }
 0x117   :  { %v738_v32 = vand.u32 4294901760, %v737_v54  ;;  %v2231_v12 = vsub.f32 %v8167_v22, %v8168_v23  ;;  %v7664_v11 = vand.u32 4294901760, %v8171_v4  ;;  %v4104_v52 = vpack.c.bf16 %v2226_v60, %v2214_v9 }
 0x118   :  { %v2220_v25 = vand.u32 4294901760, %v2219_v46  ;;  %v743_v50 = vsub.f32 %v8169_v13, %v7662_v17  ;;  %3721 = vmatprep.subr.bf16.mxu0 %v3720_v26  ;;  %v755_v10 = vsub.f32 %v8170_v40, %v7661_v61  ;;  %v8172_v46 = vld [vmem:[#allocation173_spill] sm:$0xff]  ;;  %v8174_v54 = vand.u32 4294901760, %v8173_v45  ;;  %v8182_v40 = vld [vmem:[#allocation182_spill] sm:$0xff] }
 0x119   :  { %v3722_v29 = vpack.c.bf16 %v738_v32, %v726_v3  ;;  %v2232_v34 = vand.u32 4294901760, %v2231_v12  ;;  %v2237_v8 = vsub.f32 %v8171_v4, %v7664_v11  ;;  %v7674_v30 = vand.u32 4294901760, %v8172_v46  ;;  %4105 = vmatprep.subr.bf16.mxu1 %v4104_v52  ;;  %v8175_v32 = vld [vmem:[#allocation176_spill] sm:$0xff]  ;;  %v8177_v12 = vld [vmem:[#allocation178_spill] sm:$0xff] }
 0x11a   :  { %v749_v3 = vsub.f32 %v8173_v45, %v8174_v54  ;;  %v744_v60 = vand.u32 4294901760, %v743_v50  ;;  %v8176_v26 = vand.u32 4294901760, %v8175_v32  ;;  %v8178_v61 = vand.u32 4294901760, %v8177_v12  ;;  %v8181_v54 = vld [vmem:[#allocation181_spill] sm:$0xff] }
 0x11b   :  { %3723 = vmatpush1.bf16.msra.mxu0 %v3722_v29  ;;  %v4106_v9 = vpack.c.bf16 %v2232_v34, %v2220_v25  ;;  %v756_v22 = vand.u32 4294901760, %v755_v10  ;;  %v2238_v11 = vand.u32 4294901760, %v2237_v8  ;;  %v2249_v6 = vsub.f32 %v8172_v46, %v7674_v30  ;;  %v8179_v25 = vld [vmem:[#allocation179_spill] sm:$0xff]  ;;  %v8183_v10 = vld [vmem:[#allocation184_spill] sm:$0xff] }
 0x11c   :  { %v761_v23 = vsub.f32 %v8175_v32, %v8176_v26  ;;  %v2243_v17 = vsub.f32 %v8177_v12, %v8178_v61  ;;  %v750_v4 = vand.u32 4294901760, %v749_v3  ;;  %v8180_v34 = vand.u32 4294901760, %v8179_v25 }
 0x11d   :  { %4107 = vmatpush1.bf16.msra.mxu1 %v4106_v9  ;;  %v7672_v26 = vand.u32 4294901760, %v8181_v54  ;;  %v3724_v32 = vpack.c.bf16 %v756_v22, %v744_v60  ;;  %v2250_v45 = vand.u32 4294901760, %v2249_v6  ;;  %v7673_v61 = vand.u32 4294901760, %v8182_v40  ;;  %v8184_v9 = vld [vmem:[#allocation185_spill] sm:$0xff]  ;;  %v8185_v22 = vld [vmem:[#allocation187_spill] sm:$0xff] }
 0x11e   :  { %v762_v52 = vand.u32 4294901760, %v761_v23  ;;  %v2244_v29 = vand.u32 4294901760, %v2243_v17  ;;  %v2255_v50 = vsub.f32 %v8179_v25, %v8180_v34  ;;  %v7676_v8 = vand.u32 4294901760, %v8183_v10 }
 0x11f   :  { %v767_v3 = vsub.f32 %v8181_v54, %v7672_v26  ;;  %v7679_v17 = vand.u32 4294901760, %v8184_v9  ;;  %3725 = vmatprep.subr.bf16.mxu0 %v3724_v32  ;;  %v4108_v23 = vpack.c.bf16 %v2250_v45, %v2238_v11  ;;  %v779_v34 = vsub.f32 %v8182_v40, %v7673_v61  ;;  %v8187_v11 = vld [vmem:[#allocation188_spill] sm:$0xff] }
 0x120   :  { %v3726_v12 = vpack.c.bf16 %v762_v52, %v750_v4  ;;  %v2256_v13 = vand.u32 4294901760, %v2255_v50  ;;  %v2261_v6 = vsub.f32 %v8183_v10, %v7676_v8  ;;  %v8186_v60 = vand.u32 4294901760, %v8185_v22  ;;  %v8189_v8 = vld [vmem:[#allocation190_spill] sm:$0xff] }
 0x121   :  { %v768_v50 = vand.u32 4294901760, %v767_v3  ;;  %v2273_v32 = vsub.f32 %v8184_v9, %v7679_v17  ;;  %v8188_v45 = vand.u32 4294901760, %v8187_v11  ;;  %4109 = vmatprep.subr.bf16.mxu1 %v4108_v23  ;;  %v780_v61 = vand.u32 4294901760, %v779_v34  ;;  %v8193_v17 = vld [vmem:[#allocation192_spill] sm:$0xff] }
 0x122   :  { %v773_v4 = vsub.f32 %v8185_v22, %v8186_v60  ;;  %3727 = vmatpush1.bf16.msra.mxu0 %v3726_v12  ;;  %v4110_v52 = vpack.c.bf16 %v2256_v13, %v2244_v29  ;;  %v2262_v30 = vand.u32 4294901760, %v2261_v6  ;;  %v8190_v10 = vand.u32 4294901760, %v8189_v8  ;;  %v8191_v29 = vld [vmem:[#allocation191_spill] sm:$0xff]  ;;  %v8195_v34 = vld [vmem:[#allocation196_spill] sm:$0xff] }
 0x123   :  { %v785_v26 = vsub.f32 %v8187_v11, %v8188_v45  ;;  %v2274_v12 = vand.u32 4294901760, %v2273_v32  ;;  %v8192_v3 = vand.u32 4294901760, %v8191_v29  ;;  %v7686_v22 = vand.u32 4294901760, %v8193_v17  ;;  %v8194_v45 = vld [vmem:[#allocation194_spill] sm:$0xff] }
 0x124   :  { %v774_v25 = vand.u32 4294901760, %v773_v4  ;;  %v2267_v40 = vsub.f32 %v8189_v8, %v8190_v10  ;;  %4111 = vmatpush1.bf16.msra.mxu1 %v4110_v52  ;;  %v3728_v9 = vpack.c.bf16 %v780_v61, %v768_v50  ;;  %v7685_v23 = vand.u32 4294901760, %v8194_v45  ;;  %v8196_v61 = vld [vmem:[#allocation197_spill] sm:$0xff]  ;;  %v8197_v50 = vld [vmem:[#allocation199_spill] sm:$0xff] }
 0x125   :  { %v786_v13 = vand.u32 4294901760, %v785_v26  ;;  %v2279_v60 = vsub.f32 %v8191_v29, %v8192_v3  ;;  %v7688_v6 = vand.u32 4294901760, %v8195_v34  ;;  %v4112_v4 = vpack.c.bf16 %v2274_v12, %v2262_v30 }
 0x126   :  { %v2268_v54 = vand.u32 4294901760, %v2267_v40  ;;  %v791_v10 = vsub.f32 %v8193_v17, %v7686_v22  ;;  %3729 = vmatprep.subr.bf16.mxu0 %v3728_v9  ;;  %v803_v26 = vsub.f32 %v8194_v45, %v7685_v23  ;;  %v7694_v52 = vand.u32 4294901760, %v8196_v61 }
 0x127   :  { %v3730_v11 = vpack.c.bf16 %v786_v13, %v774_v25  ;;  %v2280_v46 = vand.u32 4294901760, %v2279_v60  ;;  %v2285_v40 = vsub.f32 %v8195_v34, %v7688_v6  ;;  %v8198_v32 = vand.u32 4294901760, %v8197_v50  ;;  %4113 = vmatprep.subr.bf16.mxu1 %v4112_v4  ;;  %v8199_v13 = vld [vmem:[#allocation200_spill] sm:$0xff]  ;;  %v8201_v60 = vld [vmem:[#allocation202_spill] sm:$0xff] }
 0x128   :  { %v792_v12 = vand.u32 4294901760, %v791_v10  ;;  %v8200_v9 = vand.u32 4294901760, %v8199_v13  ;;  %v8202_v23 = vand.u32 4294901760, %v8201_v60  ;;  %v804_v29 = vand.u32 4294901760, %v803_v26 }
 0x129   :  { %v797_v30 = vsub.f32 %v8197_v50, %v8198_v32  ;;  %3731 = vmatpush1.bf16.msra.mxu0 %v3730_v11  ;;  %v4114_v25 = vpack.c.bf16 %v2280_v46, %v2268_v54  ;;  %v2286_v6 = vand.u32 4294901760, %v2285_v40  ;;  %v2297_v8 = vsub.f32 %v8196_v61, %v7694_v52  ;;  %v8203_v46 = vld [vmem:[#allocation204_spill] sm:$0xff] }
 0x12a   :  { %v809_v3 = vsub.f32 %v8199_v13, %v8200_v9  ;;  %v2291_v22 = vsub.f32 %v8201_v60, %v8202_v23  ;;  %v8204_v54 = vand.u32 4294901760, %v8203_v46  ;;  %v3732_v32 = vpack.c.bf16 %v804_v29, %v792_v12  ;;  %v8205_v13 = vld [vmem:[#allocation15_spill] sm:$0xff]  ;;  %v8206_v50 = vld [vmem:[#allocation16_spill] sm:$0xff]  ;;  %v8209_v29 = vld [vmem:[#allocation22_spill] sm:$0xff] }
 0x12b   :  { %v798_v34 = vand.u32 4294901760, %v797_v30  ;;  %4115 = vmatpush1.bf16.msra.mxu1 %v4114_v25  ;;  %v2298_v9 = vand.u32 4294901760, %v2297_v8  ;;  %v3736_v45 = vpack.c.bf16 %v8206_v50, %v8205_v13  ;;  %v4120_v52 = vpack.c.bf16 %v4651_v37, %v4649_v36  ;;  %v8207_v25 = vld [vmem:[#allocation19_spill] sm:$0xff] }
 0x12c   :  { %v810_v4 = vand.u32 4294901760, %v809_v3  ;;  %v2292_v11 = vand.u32 4294901760, %v2291_v22  ;;  %v2303_v10 = vsub.f32 %v8203_v46, %v8204_v54  ;;  %3733 = vmatprep.subr.bf16.mxu0 %v3732_v32  ;;  %v8208_v22 = vld [vmem:[#allocation20_spill] sm:$0xff]  ;;  %v3740_v8 = vpack.c.bf16 %v4740_v63, %v4738_v62  ;;  %v8210_v12 = vld [vmem:[#allocation23_spill] sm:$0xff] }
 0x12d   :  { %v4116_v40 = vpack.c.bf16 %v2298_v9, %v2286_v6  ;;  %v3738_v3 = vpack.c.bf16 %v8208_v22, %v8207_v25  ;;  %v4124_v6 = vpack.c.bf16 %v4744_v2, %v4742_v0  ;;  %v4126_v54 = vpack.c.bf16 %v4779_v42, %v4777_v41  ;;  %v8214_v9 = vld [vmem:[#allocation148_spill] sm:$0xff]  ;;  %v8230_v42 = vld [vmem:[#allocation182_spill] sm:$0xff]  ;;  %v8254_v22 = vld [vmem:[#allocation83_spill] sm:$0xff] }
 0x12e   :  { %v3734_v23 = vpack.c.bf16 %v810_v4, %v798_v34  ;;  %v2304_v26 = vand.u32 4294901760, %v2303_v10  ;;  %v4122_v34 = vpack.c.bf16 %v8210_v12, %v8209_v29  ;;  %v8211_v4 = vld [vmem:[#allocation203_spill] sm:$0xff]  ;;  %v4128_v32 = vpack.c.bf16 %v4820_v55, %v4818_v56  ;;  %v8216_v10 = vld [vmem:[#allocation53_spill] sm:$0xff]  ;;  %v8231_v41 = vld [vmem:[#allocation184_spill] sm:$0xff] }
 0x12f   :  { %4117 = vmatprep.subr.bf16.mxu1 %v4116_v40  ;;  %v8226_v55 = vld [vmem:[#allocation173_spill] sm:$0xff]  ;;  %v8228_v56 = vld [vmem:[#allocation63_spill] sm:$0xff]  ;;  %v8241_v2 = vld [vmem:[#allocation68_spill] sm:$0xff] }
 0x130   :  { %3735 = vmatpush1.bf16.msra.mxu0 %v3734_v23  ;;  %v4118_v30 = vpack.c.bf16 %v2304_v26, %v2292_v11  ;;  %v3742_v11 = vpack.c.bf16 %v4771_v39, %v4769_v5  ;;  %v3746_v26 = vpack.c.bf16 %v4843_v53, %v4841_v7  ;;  %v8213_v23 = vld [vmem:[#allocation146_spill] sm:$0xff]  ;;  %v8225_v7 = vld [vmem:[#allocation172_spill] sm:$0xff]  ;;  %v8238_v5 = vld [vmem:[#allocation65_spill] sm:$0xff] }
 0x131   :  { %3737 = vmatprep.subr.bf16.mxu0 %v3736_v45  ;;  %v3744_v45 = vpack.c.bf16 %v4813_v48, %v4811_v49  ;;  %v8224_v53 = vld [vmem:[#allocation170_spill] sm:$0xff]  ;;  %v8232_v48 = vld [vmem:[#allocation185_spill] sm:$0xff]  ;;  %v8234_v49 = vld [vmem:[#allocation59_spill] sm:$0xff] }
 0x132   :  { %4119 = vmatpush1.bf16.msra.mxu1 %v4118_v30  ;;  %v8236_v39 = vld [vmem:[#allocation196_spill] sm:$0xff]  ;;  %v8245_v40 = vld [vmem:[#allocation70_spill] sm:$0xff]  ;;  %v8246_v12 = vld [vmem:[#allocation71_spill] sm:$0xff] }
 0x133   :  { %4121 = vmatprep.subr.bf16.mxu1 %v4120_v52  ;;  %815 = vmatmul.mubr.f32.vlgmr.msra.gmra.mrb[0].mxu0 %v8211_v4  ;;  %v3764_v52 = vpack.c.bf16 %v8099_v20, %v8098_v19  ;;  %v8217_v4 = vld [vmem:[#allocation157_spill] sm:$0xff]  ;;  %v8218_v20 = vld [vmem:[#allocation158_spill] sm:$0xff]  ;;  %v8219_v19 = vld [vmem:[#allocation160_spill] sm:$0xff]  ;;  %v4138_v30 = vpack.c.bf16 %v8246_v12, %v8245_v40 }
 0x134   :  { %3739 = vmatpush1.bf16.msra.mxu0 %v3738_v3  ;;  %v3748_v3 = vpack.c.bf16 %v4885_v38, %v4883_v51  ;;  %v8220_v38 = vld [vmem:[#allocation161_spill] sm:$0xff]  ;;  %v8222_v51 = vld [vmem:[#allocation56_spill] sm:$0xff] }
 0x135   :  { %2309 = vmatmul.mubr.f32.vlgmr.msra.gmra.mrb[0].mxu1 %v5794_v1  ;;  %3741 = vmatprep.subr.bf16.mxu0 %v3740_v8  ;;  %v8240_v8 = vld [vmem:[#allocation67_spill] sm:$0xff]  ;;  %v8248_v29 = vld [vmem:[#allocation77_spill] sm:$0xff]  ;;  %v8258_v40 = vld [vmem:[#allocation92_spill] sm:$0xff] }
 0x136   :  { %4123 = vmatpush1.bf16.msra.mxu1 %v4122_v34  ;;  %v3754_v34 = vpack.c.bf16 %v8241_v2, %v8240_v8  ;;  %v8251_v2 = vld [vmem:[#allocation86_spill] sm:$0xff]  ;;  %v8252_v8 = vld [vmem:[#allocation87_spill] sm:$0xff] }
 0x137   :  { %4125 = vmatprep.subr.bf16.mxu1 %v4124_v6  ;;  %v4130_v6 = vpack.c.bf16 %v4851_v14, %v4849_v15  ;;  %v8223_v15 = vld [vmem:[#allocation168_spill] sm:$0xff]  ;;  %v3760_v62 = vpack.c.bf16 %v8252_v8, %v8251_v2  ;;  %v8261_v8 = vld [vmem:[#allocation103_spill] sm:$0xff] }
 0x138   :  { %3743 = vmatpush1.bf16.msra.mxu0 %v3742_v11  ;;  %v8212_v11 = vld [vmem:[#allocation144_spill] sm:$0xff] }
 0x139   :  { %3745 = vmatprep.subr.bf16.mxu0 %v3744_v45  ;;  %v8215_v45 = vld [vmem:[#allocation52_spill] sm:$0xff] }
 0x13a   :  { %4127 = vmatpush1.bf16.msra.mxu1 %v4126_v54  ;;  %v4132_v1 = vpack.c.bf16 %v8216_v10, %v8215_v45  ;;  %v8221_v54 = vld [vmem:[#allocation55_spill] sm:$0xff]  ;;  %v8229_v45 = vld [vmem:[#allocation181_spill] sm:$0xff] }
 0x13b   :  { %4129 = vmatprep.subr.bf16.mxu1 %v4128_v32  ;;  %v3750_v14 = vpack.c.bf16 %v8222_v51, %v8221_v54  ;;  %v8227_v32 = vld [vmem:[#allocation62_spill] sm:$0xff] }
 0x13c   :  { %3747 = vmatpush1.bf16.msra.mxu0 %v3746_v26  ;;  %v3752_v10 = vpack.c.bf16 %v8228_v56, %v8227_v32  ;;  %v8233_v26 = vld [vmem:[#allocation58_spill] sm:$0xff]  ;;  %v8239_v32 = vld [vmem:[#allocation207_spill] sm:$0xff] }
 0x13d   :  { %3749 = vmatprep.subr.bf16.mxu0 %v3748_v3  ;;  %v4134_v51 = vpack.c.bf16 %v8234_v49, %v8233_v26  ;;  %v8235_v54 = vld [vmem:[#allocation194_spill] sm:$0xff]  ;;  %v8237_v3 = vld [vmem:[#allocation64_spill] sm:$0xff]  ;;  %1015 = vmatprep.mubr.f32.mxu0 %v8239_v32  ;;  %v8244_v26 = vld [vmem:[#allocation75_spill] sm:$0xff] }
 0x13e   :  { %4131 = vmatpush1.bf16.msra.mxu1 %v4130_v6  ;;  %v4136_v56 = vpack.c.bf16 %v8238_v5, %v8237_v3  ;;  %v8242_v6 = vld [vmem:[#allocation210_spill] sm:$0xff]  ;;  %v8249_v3 = vld [vmem:[#allocation79_spill] sm:$0xff] }
 0x13f   :  { %4133 = vmatprep.subr.bf16.mxu1 %v4132_v1  ;;  %2509 = vmatprep.mubr.f32.mxu1 %v8242_v6  ;;  %v8243_v49 = vld [vmem:[#allocation74_spill] sm:$0xff]  ;;  %v8247_v1 = vld [vmem:[#allocation76_spill] sm:$0xff] }
 0x140   :  { %3751 = vmatpush1.bf16.msra.mxu0 %v3750_v14  ;;  %v3756_v0 = vpack.c.bf16 %v8244_v26, %v8243_v49  ;;  %v4140_v5 = vpack.c.bf16 %v8248_v29, %v8247_v1  ;;  %v8250_v14 = vld [vmem:[#allocation80_spill] sm:$0xff]  ;;  %v8256_v49 = vld [vmem:[#allocation89_spill] sm:$0xff] }
 0x141   :  { %3753 = vmatprep.subr.bf16.mxu0 %v3752_v10  ;;  %v3758_v63 = vpack.c.bf16 %v8250_v14, %v8249_v3  ;;  %v8253_v10 = vld [vmem:[#allocation82_spill] sm:$0xff]  ;;  %v8260_v14 = vld [vmem:[#allocation95_spill] sm:$0xff] }
 0x142   :  { %4135 = vmatpush1.bf16.msra.mxu1 %v4134_v51  ;;  %v4142_v26 = vpack.c.bf16 %v8254_v22, %v8253_v10  ;;  %v8255_v51 = vld [vmem:[#allocation88_spill] sm:$0xff]  ;;  %v8264_v22 = vld [vmem:[#allocation107_spill] sm:$0xff] }
 0x143   :  { %4137 = vmatprep.subr.bf16.mxu1 %v4136_v56  ;;  %v4144_v12 = vpack.c.bf16 %v8256_v49, %v8255_v51  ;;  %v8257_v56 = vld [vmem:[#allocation91_spill] sm:$0xff] }
 0x144   :  { %3755 = vmatpush1.bf16.msra.mxu0 %v3754_v34  ;;  %v3762_v29 = vpack.c.bf16 %v8258_v40, %v8257_v56  ;;  %v8259_v34 = vld [vmem:[#allocation94_spill] sm:$0xff] }
 0x145   :  { %3757 = vmatprep.subr.bf16.mxu0 %v3756_v0  ;;  %v4146_v0 = vpack.c.bf16 %v8260_v14, %v8259_v34 }
 0x146   :  { %4139 = vmatpush1.bf16.msra.mxu1 %v4138_v30  ;;  %v8262_v30 = vld [vmem:[#allocation104_spill] sm:$0xff] }
 0x147   :  { %4141 = vmatprep.subr.bf16.mxu1 %v4140_v5  ;;  %v3766_v2 = vpack.c.bf16 %v8262_v30, %v8261_v8  ;;  %v8263_v5 = vld [vmem:[#allocation106_spill] sm:$0xff]  ;;  %v8270_v30 = vld [vmem:[#allocation119_spill] sm:$0xff] }
 0x148   :  { %3759 = vmatpush1.bf16.msra.mxu0 %v3758_v63  ;;  %v4150_v10 = vpack.c.bf16 %v8264_v22, %v8263_v5  ;;  %v8265_v63 = vpack.c.bf16 %v8101_v16, %v8100_v24  ;;  %v8272_v22 = vld [vmem:[#allocation127_spill] sm:$0xff]  ;;  %v8273_v5 = vld [vmem:[#allocation128_spill] sm:$0xff] }
 0x149   :  { %3761 = vmatprep.subr.bf16.mxu0 %v3760_v62  ;;  %v8266_v62 = vld [vmem:[#allocation115_spill] sm:$0xff] }
 0x14a   :  { %4143 = vmatpush1.bf16.msra.mxu1 %v4142_v26  ;;  %v8267_v26 = vld [vmem:[#allocation116_spill] sm:$0xff] }
 0x14b   :  { %4145 = vmatprep.subr.bf16.mxu1 %v4144_v12  ;;  %v3770_v40 = vpack.c.bf16 %v8267_v26, %v8266_v62  ;;  %v8268_v12 = vpack.c.bf16 %v8111_v31, %v8110_v43  ;;  %v8275_v26 = vld [vmem:[#allocation130_spill] sm:$0xff]  ;;  %v8276_v62 = vld [vmem:[#allocation131_spill] sm:$0xff] }
 0x14c   :  { %3763 = vmatpush1.bf16.msra.mxu0 %v3762_v29  ;;  %v8269_v29 = vld [vmem:[#allocation118_spill] sm:$0xff] }
 0x14d   :  { %3765 = vmatprep.subr.bf16.mxu0 %v3764_v52  ;;  %v4154_v52 = vpack.c.bf16 %v8270_v30, %v8269_v29  ;;  %v8278_v30 = vld [vmem:[#allocation139_spill] sm:$0xff]  ;;  %v8279_v29 = vld [vmem:[#allocation140_spill] sm:$0xff] }
 0x14e   :  { %4147 = vmatpush1.bf16.msra.mxu1 %v4146_v0  ;;  %v8271_v0 = vpack.c.bf16 %v8113_v33, %v8112_v44 }
 0x14f   :  { %4149 = vmatprep.subr.bf16.mxu1 %v8265_v63  ;;  %v3774_v63 = vpack.c.bf16 %v8273_v5, %v8272_v22  ;;  %v8281_v5 = vld [vmem:[#allocation142_spill] sm:$0xff]  ;;  %v8282_v22 = vld [vmem:[#allocation143_spill] sm:$0xff] }
 0x150   :  { %3767 = vmatpush1.bf16.msra.mxu0 %v3766_v2  ;;  %v8274_v2 = vpack.c.bf16 %v8123_v28, %v8122_v47 }
 0x151   :  { %3769 = vmatprep.subr.bf16.mxu0 %v8268_v12  ;;  %v4158_v12 = vpack.c.bf16 %v8276_v62, %v8275_v26  ;;  %v8284_v62 = vld [vmem:[#allocation151_spill] sm:$0xff]  ;;  %v8285_v26 = vld [vmem:[#allocation152_spill] sm:$0xff] }
 0x152   :  { %4151 = vmatpush1.bf16.msra.mxu1 %v4150_v10  ;;  %v8277_v10 = vpack.c.bf16 %v8125_v21, %v8124_v58 }
 0x153   :  { %4153 = vmatprep.subr.bf16.mxu1 %v8271_v0  ;;  %v3778_v0 = vpack.c.bf16 %v8279_v29, %v8278_v30  ;;  %v8287_v29 = vld [vmem:[#allocation154_spill] sm:$0xff]  ;;  %v8288_v30 = vld [vmem:[#allocation155_spill] sm:$0xff] }
 0x154   :  { %3771 = vmatpush1.bf16.msra.mxu0 %v3770_v40  ;;  %v8280_v40 = vpack.c.bf16 %v8135_v27, %v8134_v35 }
 0x155   :  { %3773 = vmatprep.subr.bf16.mxu0 %v8274_v2  ;;  %v4162_v2 = vpack.c.bf16 %v8282_v22, %v8281_v5  ;;  %v8290_v22 = vld [vmem:[#allocation163_spill] sm:$0xff]  ;;  %v8291_v5 = vld [vmem:[#allocation164_spill] sm:$0xff] }
 0x156   :  { %4155 = vmatpush1.bf16.msra.mxu1 %v4154_v52  ;;  %v8283_v52 = vpack.c.bf16 %v8137_v57, %v8136_v59 }
 0x157   :  { %4157 = vmatprep.subr.bf16.mxu1 %v8277_v10  ;;  %v3782_v10 = vpack.c.bf16 %v8285_v26, %v8284_v62  ;;  %v8293_v26 = vld [vmem:[#allocation166_spill] sm:$0xff]  ;;  %v8294_v62 = vld [vmem:[#allocation167_spill] sm:$0xff] }
 0x158   :  { %3775 = vmatpush1.bf16.msra.mxu0 %v3774_v63  ;;  %v8286_v63 = vpack.c.bf16 %v8213_v23, %v8212_v11 }
 0x159   :  { %3777 = vmatprep.subr.bf16.mxu0 %v8280_v40  ;;  %v4166_v40 = vpack.c.bf16 %v8288_v30, %v8287_v29  ;;  %v8296_v30 = vld [vmem:[#allocation175_spill] sm:$0xff]  ;;  %v8297_v29 = vld [vmem:[#allocation176_spill] sm:$0xff] }
 0x15a   :  { %4159 = vmatpush1.bf16.msra.mxu1 %v4158_v12  ;;  %v8289_v12 = vpack.c.bf16 %v8149_v18, %v8214_v9 }
 0x15b   :  { %4161 = vmatprep.subr.bf16.mxu1 %v8283_v52  ;;  %v3786_v52 = vpack.c.bf16 %v8291_v5, %v8290_v22  ;;  %v8299_v5 = vld [vmem:[#allocation178_spill] sm:$0xff]  ;;  %v8300_v22 = vld [vmem:[#allocation179_spill] sm:$0xff] }
 0x15c   :  { %3779 = vmatpush1.bf16.msra.mxu0 %v3778_v0  ;;  %v8292_v0 = vpack.c.bf16 %v8218_v20, %v8217_v4 }
 0x15d   :  { %3781 = vmatprep.subr.bf16.mxu0 %v8286_v63  ;;  %v4170_v63 = vpack.c.bf16 %v8294_v62, %v8293_v26  ;;  %v8302_v62 = vld [vmem:[#allocation187_spill] sm:$0xff]  ;;  %v8303_v26 = vld [vmem:[#allocation188_spill] sm:$0xff] }
 0x15e   :  { %4163 = vmatpush1.bf16.msra.mxu1 %v4162_v2  ;;  %v8295_v2 = vpack.c.bf16 %v8220_v38, %v8219_v19 }
 0x15f   :  { %4165 = vmatprep.subr.bf16.mxu1 %v8289_v12  ;;  %v3790_v12 = vpack.c.bf16 %v8297_v29, %v8296_v30  ;;  %v8305_v29 = vld [vmem:[#allocation190_spill] sm:$0xff]  ;;  %v8306_v30 = vld [vmem:[#allocation191_spill] sm:$0xff] }
 0x160   :  { %3783 = vmatpush1.bf16.msra.mxu0 %v3782_v10  ;;  %v8298_v10 = vpack.c.bf16 %v8224_v53, %v8223_v15 }
 0x161   :  { %3785 = vmatprep.subr.bf16.mxu0 %v8292_v0  ;;  %v4174_v0 = vpack.c.bf16 %v8300_v22, %v8299_v5  ;;  %v8308_v22 = vld [vmem:[#allocation199_spill] sm:$0xff]  ;;  %v8309_v5 = vld [vmem:[#allocation200_spill] sm:$0xff] }
 0x162   :  { %4167 = vmatpush1.bf16.msra.mxu1 %v4166_v40  ;;  %v8301_v40 = vpack.c.bf16 %v8226_v55, %v8225_v7 }
 0x163   :  { %4169 = vmatprep.subr.bf16.mxu1 %v8295_v2  ;;  %v3794_v2 = vpack.c.bf16 %v8303_v26, %v8302_v62 }
 0x164   :  { %3787 = vmatpush1.bf16.msra.mxu0 %v3786_v52  ;;  %v8304_v52 = vpack.c.bf16 %v8230_v42, %v8229_v45 }
 0x165   :  { %3789 = vmatprep.subr.bf16.mxu0 %v8298_v10  ;;  %v4178_v10 = vpack.c.bf16 %v8306_v30, %v8305_v29  ;;  %v8312_v30 = vmov 1.0|1.0  }
 0x166   :  { %4171 = vmatpush1.bf16.msra.mxu1 %v4170_v63  ;;  %v8307_v63 = vpack.c.bf16 %v8232_v48, %v8231_v41 }
 0x167   :  { %4173 = vmatprep.subr.bf16.mxu1 %v8301_v40  ;;  %v3798_v40 = vpack.c.bf16 %v8309_v5, %v8308_v22  ;;  %v8440_v5 = vld [vmem:[#allocation27_spill] sm:$0xff] }
 0x168   :  { %3791 = vmatpush1.bf16.msra.mxu0 %v3790_v12  ;;  %v8310_v12 = vpack.c.bf16 %v8235_v54, %v8193_v17 }
 0x169   :  { %3793 = vmatprep.subr.bf16.mxu0 %v8304_v52  ;;  %v4182_v52 = vpack.c.bf16 %v8203_v46, %v8201_v60 }
 0x16a   :  { %4175 = vmatpush1.bf16.msra.mxu1 %v4174_v0  ;;  %v8311_v0 = vpack.c.bf16 %v8196_v61, %v8236_v39  ;;  %v8456_v39 = vld [vmem:[#allocation205_spill] sm:$0xff] }
 0x16b   :  { %4177 = vmatprep.subr.bf16.mxu1 %v8307_v63  ;;  %v8315_v63 = vld [vmem:[#allocation209_spill] sm:$0xff] }
 0x16c   :  { %3795 = vmatpush1.bf16.msra.mxu0 %v3794_v2  ;;  %v8321_v2 = vand.u32 4294901760, %v8242_v6  ;;  %v8328_v6 = vld [vmem:[#allocation42_spill] sm:$0xff] }
 0x16d   :  { %3797 = vmatprep.subr.bf16.mxu0 %v8310_v12  ;;  %v8317_v12 = vand.u32 4294901760, %v8239_v32  ;;  %vm8329_vm13 = vnez %v8328_v6  ;;  %v8332_v32 = vld [vmem:[#allocation45_spill] sm:$0xff] }
 0x16e   :  { %4179 = vmatpush1.bf16.msra.mxu1 %v4178_v10  ;;  %v8340_v6 = vld [vmem:[#allocation57_spill] sm:$0xff]  ;;  %v8433_v10 = vand.u32 4294901760, %v4651_v37  ;;  %v8443_v37 = vld [vmem:[#allocation22_spill] sm:$0xff] }
 0x16f   :  { %4181 = vmatprep.subr.bf16.mxu1 %v8311_v0  ;;  %v8318_v0 = vld [vmem:[#allocation211_spill] sm:$0xff] }
 0x170   :  { %3799 = vmatpush1.bf16.msra.mxu0 %v3798_v40  ;;  %v8336_v40 = vld [vmem:[#allocation54_spill] sm:$0xff] }
 0x171   :  { %3801 = vmatprep.subr.msk.bf16.mxu0 %vm4632_vm4, %v8312_v30 }
 0x172   :  { %4183 = vmatpush1.bf16.msra.mxu1 %v4182_v52  ;;  %v8326_v52 = vld [vmem:[#allocation37_spill] sm:$0xff] }
 0x173   :  { %4185 = vmatprep.subr.msk.bf16.mxu1 %vm4645_vm5, %v8312_v30  ;;  %1018 = vmatmul.mubr.f32.vlgmr.msra.gmra.mrb[0].mxu0 %v8315_v63  ;;  %vm8327_vm12 = vnez %v8326_v52  ;;  %v8338_v52 = vld [vmem:[#allocation60_spill] sm:$0xff] }
 0x174   :  { %3803 = vmatpush1.bf16.msk.msra.mxu0 %vm4664_vm10, %v8312_v30  ;;  %1155 = vmatprep.mubr.f32.mxu0 %v8317_v12  ;;  %v8334_v12 = vld [vmem:[#allocation49_spill] sm:$0xff] }
 0x175   :  { %2512 = vmatmul.mubr.f32.vlgmr.msra.gmra.mrb[0].mxu1 %v8318_v0  ;;  %3805 = vmatprep.subr.msk.bf16.mxu0 %vm4700_vm0, %v8312_v30 }
 0x176   :  { %4187 = vmatpush1.bf16.msk.msra.mxu1 %vm4677_vm11, %v8312_v30  ;;  %2649 = vmatprep.mubr.f32.mxu1 %v8321_v2  ;;  %v8330_v2 = vld [vmem:[#allocation48_spill] sm:$0xff] }
 0x177   :  { %4189 = vmatprep.subr.msk.bf16.mxu1 %vm4711_vm1, %v8312_v30  ;;  %vm8331_vm7 = vnez %v8330_v2  ;;  %v8342_v2 = vld [vmem:[#allocation61_spill] sm:$0xff] }
 0x178   :  { %3807 = vmatpush1.bf16.msk.msra.mxu0 %vm4760_vm8, %v8312_v30  ;;  %vm8333_vm8 = vnez %v8332_v32  ;;  %v8344_v32 = vld [vmem:[#allocation66_spill] sm:$0xff] }
 0x179   :  { %3809 = vmatprep.subr.msk.bf16.mxu0 %vm4796_vm2, %v8312_v30  ;;  %vm8335_vm2 = vnez %v8334_v12  ;;  %v8346_v12 = vld [vmem:[#allocation72_spill] sm:$0xff] }
 0x17a   :  { %4191 = vmatpush1.bf16.msk.msra.mxu1 %vm4773_vm9, %v8312_v30  ;;  %vm8337_vm9 = vnez %v8336_v40  ;;  %v8348_v40 = vld [vmem:[#allocation69_spill] sm:$0xff] }
 0x17b   :  { %4193 = vmatprep.subr.msk.bf16.mxu1 %vm8327_vm12, %v8312_v30  ;;  %vm8339_vm12 = vnez %v8338_v52  ;;  %v8350_v52 = vld [vmem:[#allocation73_spill] sm:$0xff] }
 0x17c   :  { %3811 = vmatpush1.bf16.msk.msra.mxu0 %vm8329_vm13, %v8312_v30  ;;  %vm8341_vm13 = vnez %v8340_v6  ;;  %v8352_v6 = vld [vmem:[#allocation78_spill] sm:$0xff] }
 0x17d   :  { %3813 = vmatprep.subr.msk.bf16.mxu0 %vm8331_vm7, %v8312_v30  ;;  %vm8343_vm7 = vnez %v8342_v2  ;;  %v8354_v2 = vld [vmem:[#allocation84_spill] sm:$0xff] }
 0x17e   :  { %4195 = vmatpush1.bf16.msk.msra.mxu1 %vm8333_vm8, %v8312_v30  ;;  %vm8345_vm8 = vnez %v8344_v32  ;;  %v8356_v32 = vld [vmem:[#allocation81_spill] sm:$0xff] }
 0x17f   :  { %4197 = vmatprep.subr.msk.bf16.mxu1 %vm8335_vm2, %v8312_v30  ;;  %vm8347_vm2 = vnez %v8346_v12  ;;  %v8358_v12 = vld [vmem:[#allocation85_spill] sm:$0xff] }
 0x180   :  { %3815 = vmatpush1.bf16.msk.msra.mxu0 %vm8337_vm9, %v8312_v30  ;;  %vm8349_vm9 = vnez %v8348_v40  ;;  %v8360_v40 = vld [vmem:[#allocation90_spill] sm:$0xff] }
 0x181   :  { %3817 = vmatprep.subr.msk.bf16.mxu0 %vm8339_vm12, %v8312_v30  ;;  %vm8351_vm12 = vnez %v8350_v52  ;;  %v8362_v52 = vld [vmem:[#allocation96_spill] sm:$0xff] }
 0x182   :  { %4199 = vmatpush1.bf16.msk.msra.mxu1 %vm8341_vm13, %v8312_v30  ;;  %vm8353_vm13 = vnez %v8352_v6  ;;  %v8364_v6 = vld [vmem:[#allocation93_spill] sm:$0xff] }
 0x183   :  { %4201 = vmatprep.subr.msk.bf16.mxu1 %vm8343_vm7, %v8312_v30  ;;  %vm8355_vm7 = vnez %v8354_v2  ;;  %v8366_v2 = vld [vmem:[#allocation97_spill] sm:$0xff] }
 0x184   :  { %3819 = vmatpush1.bf16.msk.msra.mxu0 %vm8345_vm8, %v8312_v30  ;;  %vm8357_vm8 = vnez %v8356_v32  ;;  %v8368_v32 = vld [vmem:[#allocation102_spill] sm:$0xff] }
 0x185   :  { %3821 = vmatprep.subr.msk.bf16.mxu0 %vm8347_vm2, %v8312_v30  ;;  %vm8359_vm2 = vnez %v8358_v12  ;;  %v8370_v12 = vld [vmem:[#allocation108_spill] sm:$0xff] }
 0x186   :  { %4203 = vmatpush1.bf16.msk.msra.mxu1 %vm8349_vm9, %v8312_v30  ;;  %vm8361_vm9 = vnez %v8360_v40  ;;  %v8372_v40 = vld [vmem:[#allocation105_spill] sm:$0xff] }
 0x187   :  { %4205 = vmatprep.subr.msk.bf16.mxu1 %vm8351_vm12, %v8312_v30  ;;  %vm8363_vm12 = vnez %v8362_v52  ;;  %v8374_v52 = vld [vmem:[#allocation112_spill] sm:$0xff] }
 0x188   :  { %3823 = vmatpush1.bf16.msk.msra.mxu0 %vm8353_vm13, %v8312_v30  ;;  %vm8365_vm13 = vnez %v8364_v6  ;;  %v8376_v6 = vld [vmem:[#allocation114_spill] sm:$0xff] }
 0x189   :  { %3825 = vmatprep.subr.msk.bf16.mxu0 %vm8355_vm7, %v8312_v30  ;;  %vm8367_vm7 = vnez %v8366_v2  ;;  %v8378_v2 = vld [vmem:[#allocation120_spill] sm:$0xff] }
 0x18a   :  { %4207 = vmatpush1.bf16.msk.msra.mxu1 %vm8357_vm8, %v8312_v30  ;;  %vm8369_vm8 = vnez %v8368_v32  ;;  %v8380_v32 = vld [vmem:[#allocation117_spill] sm:$0xff] }
 0x18b   :  { %4209 = vmatprep.subr.msk.bf16.mxu1 %vm8359_vm2, %v8312_v30  ;;  %vm8371_vm2 = vnez %v8370_v12  ;;  %v8382_v12 = vld [vmem:[#allocation123_spill] sm:$0xff] }
 0x18c   :  { %3827 = vmatpush1.bf16.msk.msra.mxu0 %vm8361_vm9, %v8312_v30  ;;  %vm8373_vm9 = vnez %v8372_v40  ;;  %v8384_v40 = vld [vmem:[#allocation126_spill] sm:$0xff] }
 0x18d   :  { %3829 = vmatprep.subr.msk.bf16.mxu0 %vm8363_vm12, %v8312_v30  ;;  %vm8375_vm12 = vnez %v8374_v52  ;;  %v8386_v52 = vld [vmem:[#allocation132_spill] sm:$0xff] }
 0x18e   :  { %4211 = vmatpush1.bf16.msk.msra.mxu1 %vm8365_vm13, %v8312_v30  ;;  %vm8377_vm13 = vnez %v8376_v6  ;;  %v8388_v6 = vld [vmem:[#allocation129_spill] sm:$0xff] }
 0x18f   :  { %4213 = vmatprep.subr.msk.bf16.mxu1 %vm8367_vm7, %v8312_v30  ;;  %vm8379_vm7 = vnez %v8378_v2  ;;  %v8390_v2 = vld [vmem:[#allocation135_spill] sm:$0xff] }
 0x190   :  { %3831 = vmatpush1.bf16.msk.msra.mxu0 %vm8369_vm8, %v8312_v30  ;;  %vm8381_vm8 = vnez %v8380_v32  ;;  %v8392_v32 = vld [vmem:[#allocation138_spill] sm:$0xff] }
 0x191   :  { %3833 = vmatprep.subr.msk.bf16.mxu0 %vm8371_vm2, %v8312_v30  ;;  %vm8383_vm2 = vnez %v8382_v12  ;;  %v8394_v12 = vld [vmem:[#allocation145_spill] sm:$0xff] }
 0x192   :  { %4215 = vmatpush1.bf16.msk.msra.mxu1 %vm8373_vm9, %v8312_v30  ;;  %vm8385_vm9 = vnez %v8384_v40  ;;  %v8396_v40 = vld [vmem:[#allocation141_spill] sm:$0xff] }
 0x193   :  { %4217 = vmatprep.subr.msk.bf16.mxu1 %vm8375_vm12, %v8312_v30  ;;  %vm8387_vm12 = vnez %v8386_v52  ;;  %v8398_v52 = vld [vmem:[#allocation147_spill] sm:$0xff] }
 0x194   :  { %3835 = vmatpush1.bf16.msk.msra.mxu0 %vm8377_vm13, %v8312_v30  ;;  %vm8389_vm13 = vnez %v8388_v6  ;;  %v8400_v6 = vld [vmem:[#allocation150_spill] sm:$0xff] }
 0x195   :  { %3837 = vmatprep.subr.msk.bf16.mxu0 %vm8379_vm7, %v8312_v30  ;;  %vm8391_vm7 = vnez %v8390_v2  ;;  %v8402_v2 = vld [vmem:[#allocation156_spill] sm:$0xff] }
 0x196   :  { %4219 = vmatpush1.bf16.msk.msra.mxu1 %vm8381_vm8, %v8312_v30  ;;  %vm8393_vm8 = vnez %v8392_v32  ;;  %v8404_v32 = vld [vmem:[#allocation153_spill] sm:$0xff] }
 0x197   :  { %4221 = vmatprep.subr.msk.bf16.mxu1 %vm8383_vm2, %v8312_v30  ;;  %vm8395_vm2 = vnez %v8394_v12  ;;  %v8406_v12 = vld [vmem:[#allocation159_spill] sm:$0xff] }
 0x198   :  { %3839 = vmatpush1.bf16.msk.msra.mxu0 %vm8385_vm9, %v8312_v30  ;;  %vm8397_vm9 = vnez %v8396_v40  ;;  %v8408_v40 = vld [vmem:[#allocation162_spill] sm:$0xff] }
 0x199   :  { %3841 = vmatprep.subr.msk.bf16.mxu0 %vm8387_vm12, %v8312_v30  ;;  %vm8399_vm12 = vnez %v8398_v52  ;;  %v8410_v52 = vld [vmem:[#allocation169_spill] sm:$0xff] }
 0x19a   :  { %4223 = vmatpush1.bf16.msk.msra.mxu1 %vm8389_vm13, %v8312_v30  ;;  %vm8401_vm13 = vnez %v8400_v6  ;;  %v8412_v6 = vld [vmem:[#allocation165_spill] sm:$0xff] }
 0x19b   :  { %4225 = vmatprep.subr.msk.bf16.mxu1 %vm8391_vm7, %v8312_v30  ;;  %vm8403_vm7 = vnez %v8402_v2  ;;  %v8414_v2 = vld [vmem:[#allocation171_spill] sm:$0xff] }
 0x19c   :  { %3843 = vmatpush1.bf16.msk.msra.mxu0 %vm8393_vm8, %v8312_v30  ;;  %vm8405_vm8 = vnez %v8404_v32  ;;  %v8416_v32 = vld [vmem:[#allocation174_spill] sm:$0xff] }
 0x19d   :  { %3845 = vmatprep.subr.msk.bf16.mxu0 %vm8395_vm2, %v8312_v30  ;;  %vm8407_vm2 = vnez %v8406_v12  ;;  %v8418_v12 = vld [vmem:[#allocation180_spill] sm:$0xff] }
 0x19e   :  { %4227 = vmatpush1.bf16.msk.msra.mxu1 %vm8397_vm9, %v8312_v30  ;;  %vm8409_vm9 = vnez %v8408_v40  ;;  %v8420_v40 = vld [vmem:[#allocation177_spill] sm:$0xff] }
 0x19f   :  { %4229 = vmatprep.subr.msk.bf16.mxu1 %vm8399_vm12, %v8312_v30  ;;  %vm8411_vm12 = vnez %v8410_v52  ;;  %v8422_v52 = vld [vmem:[#allocation183_spill] sm:$0xff] }
 0x1a0   :  { %3847 = vmatpush1.bf16.msk.msra.mxu0 %vm8401_vm13, %v8312_v30  ;;  %vm8413_vm13 = vnez %v8412_v6  ;;  %v8424_v6 = vld [vmem:[#allocation186_spill] sm:$0xff] }
 0x1a1   :  { %3849 = vmatprep.subr.msk.bf16.mxu0 %vm8403_vm7, %v8312_v30  ;;  %vm8415_vm7 = vnez %v8414_v2 }
 0x1a2   :  { %4231 = vmatpush1.bf16.msk.msra.mxu1 %vm8405_vm8, %v8312_v30  ;;  %vm8417_vm8 = vnez %v8416_v32  ;;  %v8427_v32 = vand.u32 4294901760, %v8205_v13  ;;  %v8436_v13 = vld [vmem:[#allocation20_spill] sm:$0xff] }
 0x1a3   :  { %4233 = vmatprep.subr.msk.bf16.mxu1 %vm8407_vm2, %v8312_v30  ;;  %vm8419_vm2 = vnez %v8418_v12  ;;  %v8428_v12 = vand.u32 4294901760, %v8206_v50  ;;  %v8435_v50 = vand.u32 4294901760, %v8207_v25  ;;  %v8447_v25 = vand.u32 4294901760, %v8315_v63 }
 0x1a4   :  { %3851 = vmatpush1.bf16.msk.msra.mxu0 %vm8409_vm9, %v8312_v30  ;;  %vm8421_vm9 = vnez %v8420_v40  ;;  %v8429_v40 = vld [vmem:[#allocation189_spill] sm:$0xff] }
 0x1a5   :  { %3853 = vmatprep.subr.msk.bf16.mxu0 %vm8411_vm12, %v8312_v30  ;;  %vm8423_vm12 = vnez %v8422_v52  ;;  %v3864_v29 = vpack.c.bf16 %v8428_v12, %v8427_v32  ;;  %v8437_v32 = vand.u32 4294901760, %v8436_v13  ;;  %v8441_v52 = vand.u32 4294901760, %v8440_v5  ;;  %v8450_v13 = vld [vmem:[#allocation29_spill] sm:$0xff] }
 0x1a6   :  { %4235 = vmatpush1.bf16.msk.msra.mxu1 %vm8413_vm13, %v8312_v30  ;;  %vm8425_vm13 = vnez %v8424_v6  ;;  %v8432_v6 = vand.u32 4294901760, %v4649_v36 }
 0x1a7   :  { %4237 = vmatprep.subr.msk.bf16.mxu1 %vm8415_vm7, %v8312_v30  ;;  %v3866_v12 = vpack.c.bf16 %v8437_v32, %v8435_v50  ;;  %v8448_v50 = vld [vmem:[#allocation28_spill] sm:$0xff] }
 0x1a8   :  { %3855 = vmatpush1.bf16.msk.msra.mxu0 %vm8417_vm8, %v8312_v30  ;;  %v4248_v46 = vpack.c.bf16 %v8433_v10, %v8432_v6  ;;  %v8444_v10 = vand.u32 4294901760, %v8443_v37  ;;  %v8445_v6 = vld [vmem:[#allocation23_spill] sm:$0xff]  ;;  %v8457_v37 = vand.u32 4294901760, %v8318_v0 }
 0x1a9   :  { %3857 = vmatprep.subr.msk.bf16.mxu0 %vm8419_vm2, %v8312_v30  ;;  %v8446_v2 = vand.u32 4294901760, %v8445_v6 }
 0x1aa   :  { %4239 = vmatpush1.bf16.msk.msra.mxu1 %vm8421_vm9, %v8312_v30  ;;  %vm8430_vm9 = vnez %v8429_v40  ;;  %v8438_v40 = vld [vmem:[#allocation26_spill] sm:$0xff] }
 0x1ab   :  { %4241 = vmatprep.subr.msk.bf16.mxu1 %vm8423_vm12, %v8312_v30  ;;  %v8439_v60 = vand.u32 4294901760, %v8438_v40  ;;  %v4250_v61 = vpack.c.bf16 %v8446_v2, %v8444_v10  ;;  %v8451_v40 = vand.u32 4294901760, %v8450_v13  ;;  %v8460_v2 = vld [vmem:[#allocation39_spill] sm:$0xff] }
 0x1ac   :  { %3859 = vmatpush1.bf16.msk.msra.mxu0 %vm8425_vm13, %v8312_v30  ;;  %v8461_v10 = vand.u32 4294901760, %v8460_v2 }
 0x1ad   :  { %3861 = vmatprep.subr.msk.bf16.mxu0 %vm5726_vm15, %v8312_v30  ;;  %v3868_v22 = vpack.c.bf16 %v8441_v52, %v8439_v60  ;;  %v8452_v60 = vld [vmem:[#allocation31_spill] sm:$0xff]  ;;  %v8454_v52 = vld [vmem:[#allocation32_spill] sm:$0xff] }
 0x1ae   :  { %4243 = vmatpush1.bf16.msk.msra.mxu1 %vm8430_vm9, %v8312_v30  ;;  %v8453_v5 = vand.u32 4294901760, %v8452_v60  ;;  %v8455_v36 = vand.u32 4294901760, %v8454_v52 }
 0x1af   :  { %4245 = vmatprep.subr.msk.bf16.mxu1 %vm5740_vm14, %v8312_v30 }
 0x1b0   :  { %3863 = vmatpush1.bf16.msk.msra.mxu0 %vm5754_vm3, %v8312_v30 }
 0x1b1   :  { %3865 = vmatprep.subr.bf16.mxu0 %v3864_v29  ;;  %v8449_v29 = vand.u32 4294901760, %v8448_v50 }
 0x1b2   :  { %4247 = vmatpush1.bf16.msk.msra.mxu1 %vm5770_vm6, %v8312_v30  ;;  %v3870_v30 = vpack.c.bf16 %v8455_v36, %v8453_v5  ;;  %v8467_v36 = vld [vmem:[#allocation40_spill] sm:$0xff]  ;;  %v8469_v5 = vld [vmem:[#allocation41_spill] sm:$0xff] }
 0x1b3   :  { %4249 = vmatprep.subr.bf16.mxu1 %v4248_v46  ;;  %1159 = vmatmul.mubr.f32.vlgmr.msra.gmra.mrb[0].mxu0 %v8447_v25  ;;  %v4252_v32 = vpack.c.bf16 %v8451_v40, %v8449_v29  ;;  %v8458_v46 = vld [vmem:[#allocation38_spill] sm:$0xff]  ;;  %v8466_v40 = vld [vmem:[#allocation208_spill] sm:$0xff]  ;;  %v8468_v60 = vand.u32 4294901760, %v8467_v36  ;;  %v8470_v0 = vand.u32 4294901760, %v8469_v5  ;;  %v8485_v5 = vld [vmem:[#allocation53_spill] sm:$0xff] }
 0x1b4   :  { %3867 = vmatpush1.bf16.msra.mxu0 %v3866_v12  ;;  %1422 = vmatprep.mubr.f32.mxu0 %v8456_v39  ;;  %v8459_v63 = vand.u32 4294901760, %v8458_v46  ;;  %v8462_v25 = vld [vmem:[#allocation34_spill] sm:$0xff]  ;;  %v8464_v12 = vld [vmem:[#allocation35_spill] sm:$0xff]  ;;  %v8473_v46 = vld [vmem:[#allocation44_spill] sm:$0xff] }
 0x1b5   :  { %2653 = vmatmul.mubr.f32.vlgmr.msra.gmra.mrb[0].mxu1 %v8457_v37  ;;  %3869 = vmatprep.subr.bf16.mxu0 %v3868_v22  ;;  %v8463_v50 = vand.u32 4294901760, %v8462_v25  ;;  %v8465_v29 = vand.u32 4294901760, %v8464_v12  ;;  %v4256_v52 = vpack.c.bf16 %v8470_v0, %v8468_v60  ;;  %v8471_v22 = vld [vmem:[#allocation43_spill] sm:$0xff]  ;;  %v8474_v2 = vand.u32 4294901760, %v8473_v46  ;;  %v8483_v60 = vld [vmem:[#allocation52_spill] sm:$0xff] }
 0x1b6   :  { %v3872_v6 = vpack.c.bf16 %v8461_v10, %v8459_v63  ;;  %4251 = vmatpush1.bf16.msra.mxu1 %v4250_v61  ;;  %2916 = vmatprep.mubr.f32.mxu1 %v8466_v40  ;;  %v8472_v37 = vand.u32 4294901760, %v8471_v22  ;;  %v8475_v61 = vld [vmem:[#allocation50_spill] sm:$0xff]  ;;  %v8477_v25 = vld [vmem:[#allocation51_spill] sm:$0xff]  ;;  %v8486_v0 = vand.u32 4294901760, %v8485_v5  ;;  %v8489_v46 = vld [vmem:[#allocation56_spill] sm:$0xff] }
 0x1b7   :  { %v4254_v13 = vpack.c.bf16 %v8465_v29, %v8463_v50  ;;  %4253 = vmatprep.subr.bf16.mxu1 %v4252_v32  ;;  %v8476_v10 = vand.u32 4294901760, %v8475_v61  ;;  %v8478_v12 = vand.u32 4294901760, %v8477_v25  ;;  %v8479_v29 = vld [vmem:[#allocation46_spill] sm:$0xff]  ;;  %v8481_v40 = vld [vmem:[#allocation47_spill] sm:$0xff]  ;;  %v8501_v5 = vld [vmem:[#allocation65_spill] sm:$0xff] }
 0x1b8   :  { %3871 = vmatpush1.bf16.msra.mxu0 %v3870_v30  ;;  %v3874_v63 = vpack.c.bf16 %v8474_v2, %v8472_v37  ;;  %v8480_v32 = vand.u32 4294901760, %v8479_v29  ;;  %v8482_v36 = vand.u32 4294901760, %v8481_v40  ;;  %v8484_v30 = vand.u32 4294901760, %v8483_v60  ;;  %v8487_v37 = vld [vmem:[#allocation55_spill] sm:$0xff]  ;;  %v8495_v40 = vld [vmem:[#allocation58_spill] sm:$0xff] }
 0x1b9   :  { %3873 = vmatprep.subr.bf16.mxu0 %v3872_v6  ;;  %v3876_v50 = vpack.c.bf16 %v8478_v12, %v8476_v10  ;;  %v8488_v6 = vand.u32 4294901760, %v8487_v37  ;;  %v8490_v2 = vand.u32 4294901760, %v8489_v46  ;;  %v8491_v10 = vld [vmem:[#allocation62_spill] sm:$0xff]  ;;  %v8493_v25 = vld [vmem:[#allocation63_spill] sm:$0xff]  ;;  %v8505_v46 = vld [vmem:[#allocation68_spill] sm:$0xff] }
 0x1ba   :  { %4255 = vmatpush1.bf16.msra.mxu1 %v4254_v13  ;;  %v4258_v39 = vpack.c.bf16 %v8482_v36, %v8480_v32  ;;  %v4260_v22 = vpack.c.bf16 %v8486_v0, %v8484_v30  ;;  %v8492_v13 = vand.u32 4294901760, %v8491_v10  ;;  %v8494_v12 = vand.u32 4294901760, %v8493_v25  ;;  %v8497_v32 = vld [vmem:[#allocation59_spill] sm:$0xff]  ;;  %v8499_v30 = vld [vmem:[#allocation64_spill] sm:$0xff] }
 0x1bb   :  { %4257 = vmatprep.subr.bf16.mxu1 %v4256_v52  ;;  %v3878_v61 = vpack.c.bf16 %v8490_v2, %v8488_v6  ;;  %v8496_v52 = vand.u32 4294901760, %v8495_v40  ;;  %v8498_v36 = vand.u32 4294901760, %v8497_v32  ;;  %v8502_v0 = vand.u32 4294901760, %v8501_v5  ;;  %v8503_v6 = vld [vmem:[#allocation67_spill] sm:$0xff] }
 0x1bc   :  { %3875 = vmatpush1.bf16.msra.mxu0 %v3874_v63  ;;  %v3880_v29 = vpack.c.bf16 %v8494_v12, %v8492_v13  ;;  %v8500_v63 = vand.u32 4294901760, %v8499_v30  ;;  %v8506_v2 = vand.u32 4294901760, %v8505_v46  ;;  %v8507_v13 = vld [vmem:[#allocation74_spill] sm:$0xff]  ;;  %v8509_v25 = vld [vmem:[#allocation75_spill] sm:$0xff] }
 0x1bd   :  { %3877 = vmatprep.subr.bf16.mxu0 %v3876_v50  ;;  %v4262_v60 = vpack.c.bf16 %v8498_v36, %v8496_v52  ;;  %v8504_v50 = vand.u32 4294901760, %v8503_v6  ;;  %v8510_v12 = vand.u32 4294901760, %v8509_v25  ;;  %v8511_v52 = vld [vmem:[#allocation70_spill] sm:$0xff]  ;;  %v8513_v32 = vld [vmem:[#allocation71_spill] sm:$0xff]  ;;  %v8519_v6 = vld [vmem:[#allocation80_spill] sm:$0xff] }
 0x1be   :  { %4259 = vmatpush1.bf16.msra.mxu1 %v4258_v39  ;;  %v4264_v37 = vpack.c.bf16 %v8502_v0, %v8500_v63  ;;  %v8508_v39 = vand.u32 4294901760, %v8507_v13  ;;  %v8514_v36 = vand.u32 4294901760, %v8513_v32  ;;  %v8516_v63 = vld [vmem:[#allocation77_spill] sm:$0xff]  ;;  %v8523_v13 = vld [vmem:[#allocation87_spill] sm:$0xff] }
 0x1bf   :  { %4261 = vmatprep.subr.bf16.mxu1 %v4260_v22  ;;  %v3882_v10 = vpack.c.bf16 %v8506_v2, %v8504_v50  ;;  %v8512_v22 = vand.u32 4294901760, %v8511_v52  ;;  %v8517_v5 = vand.u32 4294901760, %v8516_v63  ;;  %v8520_v50 = vand.u32 4294901760, %v8519_v6  ;;  %v8521_v2 = vld [vmem:[#allocation86_spill] sm:$0xff]  ;;  %v8527_v52 = vld [vmem:[#allocation83_spill] sm:$0xff] }
 0x1c0   :  { %3879 = vmatpush1.bf16.msra.mxu0 %v3878_v61  ;;  %v3884_v40 = vpack.c.bf16 %v8510_v12, %v8508_v39  ;;  %v8515_v61 = vand.u32 4294901760, %v8247_v1  ;;  %v8524_v39 = vand.u32 4294901760, %v8523_v13  ;;  %v8525_v12 = vld [vmem:[#allocation82_spill] sm:$0xff]  ;;  %v8528_v1 = vand.u32 4294901760, %v8527_v52  ;;  %v8543_v13 = vld [vmem:[#allocation104_spill] sm:$0xff] }
 0x1c1   :  { %3881 = vmatprep.subr.bf16.mxu0 %v3880_v29  ;;  %v4266_v30 = vpack.c.bf16 %v8514_v36, %v8512_v22  ;;  %v8518_v29 = vand.u32 4294901760, %v8249_v3  ;;  %v8530_v3 = vand.u32 4294901760, %v8256_v49  ;;  %v8532_v36 = vld [vmem:[#allocation92_spill] sm:$0xff]  ;;  %v8540_v49 = vand.u32 4294901760, %v8100_v24 }
 0x1c2   :  { %4263 = vmatpush1.bf16.msra.mxu1 %v4262_v60  ;;  %v4268_v0 = vpack.c.bf16 %v8517_v5, %v8515_v61  ;;  %v8522_v60 = vand.u32 4294901760, %v8521_v2  ;;  %v8533_v61 = vand.u32 4294901760, %v8532_v36  ;;  %v8534_v5 = vld [vmem:[#allocation98_spill] sm:$0xff] }
 0x1c3   :  { %4265 = vmatprep.subr.bf16.mxu1 %v4264_v37  ;;  %v3886_v46 = vpack.c.bf16 %v8520_v50, %v8518_v29  ;;  %v8526_v37 = vand.u32 4294901760, %v8525_v12  ;;  %v8536_v29 = vld [vmem:[#allocation99_spill] sm:$0xff]  ;;  %v8545_v12 = vand.u32 4294901760, %v8110_v43 }
 0x1c4   :  { %3883 = vmatpush1.bf16.msra.mxu0 %v3882_v10  ;;  %v3888_v25 = vpack.c.bf16 %v8524_v39, %v8522_v60  ;;  %v8529_v10 = vand.u32 4294901760, %v8255_v51  ;;  %v8537_v6 = vand.u32 4294901760, %v8536_v29  ;;  %v8539_v51 = vand.u32 4294901760, %v8260_v14  ;;  %v8547_v14 = vld [vmem:[#allocation106_spill] sm:$0xff]  ;;  %v8561_v29 = vld [vmem:[#allocation119_spill] sm:$0xff] }
 0x1c5   :  { %3885 = vmatprep.subr.bf16.mxu0 %v3884_v40  ;;  %v4270_v22 = vpack.c.bf16 %v8528_v1, %v8526_v37  ;;  %v8531_v40 = vand.u32 4294901760, %v8257_v56  ;;  %v8541_v56 = vand.u32 4294901760, %v8101_v16  ;;  %v8542_v60 = vand.u32 4294901760, %v8261_v8  ;;  %v8549_v1 = vld [vmem:[#allocation107_spill] sm:$0xff] }
 0x1c6   :  { %4267 = vmatpush1.bf16.msra.mxu1 %v4266_v30  ;;  %v4272_v32 = vpack.c.bf16 %v8530_v3, %v8529_v10  ;;  %v8535_v30 = vand.u32 4294901760, %v8534_v5  ;;  %v8544_v39 = vand.u32 4294901760, %v8543_v13  ;;  %v8548_v52 = vand.u32 4294901760, %v8547_v14  ;;  %v8553_v3 = vld [vmem:[#allocation115_spill] sm:$0xff]  ;;  %v8559_v5 = vld [vmem:[#allocation118_spill] sm:$0xff] }
 0x1c7   :  { %4269 = vmatprep.subr.bf16.mxu1 %v4268_v0  ;;  %v3890_v63 = vpack.c.bf16 %v8533_v61, %v8531_v40  ;;  %v8538_v0 = vand.u32 4294901760, %v8259_v34  ;;  %v8546_v34 = vand.u32 4294901760, %v8111_v31  ;;  %v8550_v24 = vand.u32 4294901760, %v8549_v1  ;;  %v8555_v40 = vld [vmem:[#allocation116_spill] sm:$0xff]  ;;  %v8571_v13 = vld [vmem:[#allocation130_spill] sm:$0xff]  ;;  %v8577_v14 = vld [vmem:[#allocation139_spill] sm:$0xff] }
 0x1c8   :  { %3887 = vmatpush1.bf16.msra.mxu0 %v3886_v46  ;;  %v3892_v50 = vpack.c.bf16 %v8537_v6, %v8535_v30  ;;  %v4276_v46 = vpack.c.bf16 %v8541_v56, %v8540_v49  ;;  %v8551_v16 = vand.u32 4294901760, %v8112_v44  ;;  %v8552_v8 = vand.u32 4294901760, %v8113_v33  ;;  %v8567_v49 = vld [vmem:[#allocation128_spill] sm:$0xff] }
 0x1c9   :  { %3889 = vmatprep.subr.bf16.mxu0 %v3888_v25  ;;  %v4274_v2 = vpack.c.bf16 %v8539_v51, %v8538_v0  ;;  %v3894_v25 = vpack.c.bf16 %v8544_v39, %v8542_v60  ;;  %v3896_v37 = vpack.c.bf16 %v8546_v34, %v8545_v12  ;;  %v8556_v43 = vand.u32 4294901760, %v8555_v40  ;;  %v8565_v51 = vld [vmem:[#allocation127_spill] sm:$0xff]  ;;  %v8579_v1 = vld [vmem:[#allocation140_spill] sm:$0xff] }
 0x1ca   :  { %4271 = vmatpush1.bf16.msra.mxu1 %v4270_v22  ;;  %v4278_v22 = vpack.c.bf16 %v8550_v24, %v8548_v52  ;;  %v4280_v10 = vpack.c.bf16 %v8552_v8, %v8551_v16  ;;  %v8557_v31 = vand.u32 4294901760, %v8122_v47  ;;  %v8558_v61 = vand.u32 4294901760, %v8123_v28  ;;  %v8583_v8 = vld [vmem:[#allocation142_spill] sm:$0xff] }
 0x1cb   :  { %4273 = vmatprep.subr.bf16.mxu1 %v4272_v32  ;;  %v8554_v32 = vand.u32 4294901760, %v8553_v3  ;;  %v8560_v30 = vand.u32 4294901760, %v8559_v5  ;;  %v8562_v44 = vand.u32 4294901760, %v8561_v29  ;;  %v8563_v33 = vand.u32 4294901760, %v8124_v58  ;;  %v8585_v3 = vld [vmem:[#allocation143_spill] sm:$0xff]  ;;  %v8595_v29 = vld [vmem:[#allocation154_spill] sm:$0xff] }
 0x1cc   :  { %3891 = vmatpush1.bf16.msra.mxu0 %v3890_v63  ;;  %v3900_v63 = vpack.c.bf16 %v8558_v61, %v8557_v31  ;;  %v8568_v47 = vand.u32 4294901760, %v8567_v49  ;;  %v8569_v28 = vand.u32 4294901760, %v8134_v35  ;;  %v8572_v39 = vand.u32 4294901760, %v8571_v13  ;;  %v8591_v61 = vld [vmem:[#allocation152_spill] sm:$0xff]  ;;  %v8609_v13 = vld [vmem:[#allocation167_spill] sm:$0xff] }
 0x1cd   :  { %3893 = vmatprep.subr.bf16.mxu0 %v3892_v50  ;;  %v3898_v36 = vpack.c.bf16 %v8556_v43, %v8554_v32  ;;  %v4282_v6 = vpack.c.bf16 %v8562_v44, %v8560_v30  ;;  %v8564_v50 = vand.u32 4294901760, %v8125_v21  ;;  %v8575_v21 = vand.u32 4294901760, %v8136_v59  ;;  %v8603_v49 = vld [vmem:[#allocation164_spill] sm:$0xff] }
 0x1ce   :  { %4275 = vmatpush1.bf16.msra.mxu1 %v4274_v2  ;;  %v8566_v2 = vand.u32 4294901760, %v8565_v51  ;;  %v8576_v34 = vand.u32 4294901760, %v8137_v57  ;;  %v8578_v52 = vand.u32 4294901760, %v8577_v14  ;;  %v8580_v35 = vand.u32 4294901760, %v8579_v1  ;;  %v8601_v51 = vld [vmem:[#allocation163_spill] sm:$0xff]  ;;  %v8619_v1 = vld [vmem:[#allocation178_spill] sm:$0xff] }
 0x1cf   :  { %4277 = vmatprep.subr.bf16.mxu1 %v4276_v46  ;;  %v4284_v0 = vpack.c.bf16 %v8564_v50, %v8563_v33  ;;  %v8570_v46 = vand.u32 4294901760, %v8135_v27  ;;  %v8581_v27 = vand.u32 4294901760, %v8212_v11  ;;  %v8586_v59 = vand.u32 4294901760, %v8585_v3 }
 0x1d0   :  { %3895 = vmatpush1.bf16.msra.mxu0 %v3894_v25  ;;  %v3902_v56 = vpack.c.bf16 %v8568_v47, %v8566_v2  ;;  %v8573_v25 = vld [vmem:[#allocation131_spill] sm:$0xff]  ;;  %v3906_v24 = vpack.c.bf16 %v8580_v35, %v8578_v52  ;;  %v8587_v57 = vand.u32 4294901760, %v8214_v9  ;;  %v8588_v40 = vand.u32 4294901760, %v8149_v18 }
 0x1d1   :  { %3897 = vmatprep.subr.bf16.mxu0 %v3896_v37  ;;  %v3904_v60 = vpack.c.bf16 %v8570_v46, %v8569_v28  ;;  %v8574_v58 = vand.u32 4294901760, %v8573_v25  ;;  %v4288_v37 = vpack.c.bf16 %v8576_v34, %v8575_v21  ;;  %v8592_v11 = vand.u32 4294901760, %v8591_v61  ;;  %v8607_v46 = vld [vmem:[#allocation166_spill] sm:$0xff]  ;;  %v8615_v34 = vld [vmem:[#allocation176_spill] sm:$0xff] }
 0x1d2   :  { %4279 = vmatpush1.bf16.msra.mxu1 %v4278_v22  ;;  %v8582_v22 = vand.u32 4294901760, %v8213_v23  ;;  %v4292_v43 = vpack.c.bf16 %v8588_v40, %v8587_v57  ;;  %v8593_v23 = vand.u32 4294901760, %v8217_v4  ;;  %v8594_v5 = vand.u32 4294901760, %v8218_v20  ;;  %v8631_v40 = vld [vmem:[#allocation191_spill] sm:$0xff] }
 0x1d3   :  { %4281 = vmatprep.subr.bf16.mxu1 %v4280_v10  ;;  %v4286_v12 = vpack.c.bf16 %v8574_v58, %v8572_v39  ;;  %v8584_v10 = vand.u32 4294901760, %v8583_v8  ;;  %v8596_v44 = vand.u32 4294901760, %v8595_v29  ;;  %v8599_v18 = vand.u32 4294901760, %v8219_v19 }
 0x1d4   :  { %3899 = vmatpush1.bf16.msra.mxu0 %v3898_v36  ;;  %v3908_v16 = vpack.c.bf16 %v8582_v22, %v8581_v27  ;;  %v8589_v36 = vld [vmem:[#allocation151_spill] sm:$0xff]  ;;  %v3912_v30 = vpack.c.bf16 %v8594_v5, %v8593_v23  ;;  %v8600_v50 = vand.u32 4294901760, %v8220_v38  ;;  %v8602_v2 = vand.u32 4294901760, %v8601_v51  ;;  %v8651_v51 = vld [vmem:[#allocation206_spill] sm:$0xff] }
 0x1d5   :  { %3901 = vmatprep.subr.bf16.mxu0 %v3900_v63  ;;  %v4290_v32 = vpack.c.bf16 %v8586_v59, %v8584_v10  ;;  %v8590_v31 = vand.u32 4294901760, %v8589_v36  ;;  %v8604_v4 = vand.u32 4294901760, %v8603_v49  ;;  %v8605_v20 = vand.u32 4294901760, %v8223_v15 }
 0x1d6   :  { %4283 = vmatpush1.bf16.msra.mxu1 %v4282_v6  ;;  %v8597_v6 = vld [vmem:[#allocation155_spill] sm:$0xff]  ;;  %v8610_v19 = vand.u32 4294901760, %v8609_v13  ;;  %v8611_v38 = vand.u32 4294901760, %v8225_v7  ;;  %v8612_v25 = vand.u32 4294901760, %v8226_v55  ;;  %v8616_v15 = vand.u32 4294901760, %v8615_v34  ;;  %v8666_v13 = vld [vmem:[#allocation48_spill] sm:$0xff] }
 0x1d7   :  { %4285 = vmatprep.subr.bf16.mxu1 %v4284_v0  ;;  %v3910_v63 = vpack.c.bf16 %v8592_v11, %v8590_v31  ;;  %v8598_v9 = vand.u32 4294901760, %v8597_v6  ;;  %v4296_v0 = vpack.c.bf16 %v8600_v50, %v8599_v18  ;;  %v3914_v47 = vpack.c.bf16 %v8604_v4, %v8602_v2  ;;  %v8635_v31 = vld [vmem:[#allocation197_spill] sm:$0xff]  ;;  %v8648_v18 = vld [vmem:[#allocation203_spill] sm:$0xff]  ;;  %v8654_v4 = vld [vmem:[#allocation208_spill] sm:$0xff] }
 0x1d8   :  { %3903 = vmatpush1.bf16.msra.mxu0 %v3902_v56  ;;  %v8606_v56 = vand.u32 4294901760, %v8224_v53  ;;  %v4300_v58 = vpack.c.bf16 %v8612_v25, %v8611_v38  ;;  %v8617_v53 = vand.u32 4294901760, %v8229_v45  ;;  %v8618_v14 = vand.u32 4294901760, %v8230_v42  ;;  %v8672_v38 = vld [vmem:[#allocation54_spill] sm:$0xff]  ;;  %v8674_v25 = vld [vmem:[#allocation60_spill] sm:$0xff] }
 0x1d9   :  { %3905 = vmatprep.subr.bf16.mxu0 %v3904_v60  ;;  %v4294_v33 = vpack.c.bf16 %v8598_v9, %v8596_v44  ;;  %v8608_v60 = vand.u32 4294901760, %v8607_v46  ;;  %v8620_v35 = vand.u32 4294901760, %v8619_v1  ;;  %v8623_v55 = vand.u32 4294901760, %v8231_v41  ;;  %v8662_v46 = vld [vmem:[#allocation37_spill] sm:$0xff]  ;;  %v8682_v34 = vld [vmem:[#allocation72_spill] sm:$0xff] }
 0x1da   :  { %4287 = vmatpush1.bf16.msra.mxu1 %v4286_v12  ;;  %v3916_v28 = vpack.c.bf16 %v8606_v56, %v8605_v20  ;;  %v8613_v12 = vld [vmem:[#allocation175_spill] sm:$0xff]  ;;  %v3920_v52 = vpack.c.bf16 %v8618_v14, %v8617_v53  ;;  %v8624_v22 = vand.u32 4294901760, %v8232_v48  ;;  %v8625_v8 = vand.u32 4294901760, %v8302_v62  ;;  %v8633_v48 = vld [vmem:[#allocation196_spill] sm:$0xff]  ;;  %v8656_v20 = vld [vmem:[#allocation30_spill] sm:$0xff] }
 0x1db   :  { %4289 = vmatprep.subr.bf16.mxu1 %v4288_v37  ;;  %v4298_v39 = vpack.c.bf16 %v8610_v19, %v8608_v60  ;;  %v8614_v21 = vand.u32 4294901760, %v8613_v12  ;;  %v8626_v45 = vand.u32 4294901760, %v8303_v26  ;;  %v8627_v42 = vand.u32 4294901760, %v8193_v17  ;;  %v8637_v26 = vld [vmem:[#allocation199_spill] sm:$0xff]  ;;  %v8658_v56 = vld [vmem:[#allocation36_spill] sm:$0xff]  ;;  %v8664_v60 = vld [vmem:[#allocation42_spill] sm:$0xff] }
 0x1dc   :  { %3907 = vmatpush1.bf16.msra.mxu0 %v3906_v24  ;;  %v8621_v24 = vld [vmem:[#allocation179_spill] sm:$0xff]  ;;  %v8628_v3 = vand.u32 4294901760, %v8235_v54  ;;  %v8632_v41 = vand.u32 4294901760, %v8631_v40  ;;  %v8634_v36 = vand.u32 4294901760, %v8633_v48  ;;  %v8636_v62 = vand.u32 4294901760, %v8635_v31  ;;  %v8641_v54 = vld [vmem:[#allocation202_spill] sm:$0xff] }
 0x1dd   :  { %3909 = vmatprep.subr.bf16.mxu0 %v3908_v16  ;;  %v3918_v37 = vpack.c.bf16 %v8616_v15, %v8614_v21  ;;  %v8622_v7 = vand.u32 4294901760, %v8621_v24  ;;  %v4304_v16 = vpack.c.bf16 %v8624_v22, %v8623_v55  ;;  %v3922_v10 = vpack.c.bf16 %v8626_v45, %v8625_v8  ;;  %v8668_v19 = vld [vmem:[#allocation45_spill] sm:$0xff]  ;;  %v8680_v21 = vld [vmem:[#allocation66_spill] sm:$0xff]  ;;  %v8690_v14 = vld [vmem:[#allocation84_spill] sm:$0xff] }
 0x1de   :  { %4291 = vmatpush1.bf16.msra.mxu1 %v4290_v32  ;;  %v3924_v59 = vpack.c.bf16 %v8628_v3, %v8627_v42  ;;  %v8629_v32 = vld [vmem:[#allocation190_spill] sm:$0xff]  ;;  %v4308_v61 = vpack.c.bf16 %v8636_v62, %v8634_v36  ;;  %v8638_v11 = vand.u32 4294901760, %v8637_v26  ;;  %v8642_v5 = vand.u32 4294901760, %v8641_v54  ;;  %v8678_v12 = vld [vmem:[#allocation61_spill] sm:$0xff]  ;;  %v8698_v24 = vld [vmem:[#allocation96_spill] sm:$0xff] }
 0x1df   :  { %4293 = vmatprep.subr.bf16.mxu1 %v4292_v43  ;;  %v4302_v27 = vpack.c.bf16 %v8622_v7, %v8620_v35  ;;  %v8630_v57 = vand.u32 4294901760, %v8629_v32  ;;  %v8645_v6 = vmov 1.0|1.0   ;;  %v8684_v15 = vld [vmem:[#allocation69_spill] sm:$0xff]  ;;  %v8688_v53 = vld [vmem:[#allocation78_spill] sm:$0xff]  ;;  %v8706_v22 = vld [vmem:[#allocation108_spill] sm:$0xff] }
 0x1e0   :  { %3911 = vmatpush1.bf16.msra.mxu0 %v3910_v63  ;;  %v8639_v63 = vld [vmem:[#allocation200_spill] sm:$0xff]  ;;  %v8694_v1 = vld [vmem:[#allocation85_spill] sm:$0xff]  ;;  %v8696_v35 = vld [vmem:[#allocation90_spill] sm:$0xff] }
 0x1e1   :  { %3913 = vmatprep.subr.bf16.mxu0 %v3912_v30  ;;  %v4306_v43 = vpack.c.bf16 %v8632_v41, %v8630_v57  ;;  %v8640_v17 = vand.u32 4294901760, %v8639_v63  ;;  %v8643_v30 = vld [vmem:[#allocation204_spill] sm:$0xff]  ;;  %v8700_v7 = vld [vmem:[#allocation93_spill] sm:$0xff]  ;;  %v8704_v55 = vld [vmem:[#allocation102_spill] sm:$0xff] }
 0x1e2   :  { %4295 = vmatpush1.bf16.msra.mxu1 %v4294_v33  ;;  %v8644_v29 = vand.u32 4294901760, %v8643_v30  ;;  %v8710_v8 = vld [vmem:[#allocation112_spill] sm:$0xff]  ;;  %v8712_v45 = vld [vmem:[#allocation114_spill] sm:$0xff]  ;;  %v8716_v42 = vld [vmem:[#allocation117_spill] sm:$0xff] }
 0x1e3   :  { %4297 = vmatprep.subr.bf16.mxu1 %v4296_v0  ;;  %v3926_v23 = vpack.c.bf16 %v8640_v17, %v8638_v11  ;;  %v8650_v0 = vld [vmem:[#allocation205_spill] sm:$0xff]  ;;  %v8718_v3 = vld [vmem:[#allocation123_spill] sm:$0xff]  ;;  %v8722_v32 = vld [vmem:[#allocation132_spill] sm:$0xff] }
 0x1e4   :  { %3915 = vmatpush1.bf16.msra.mxu0 %v3914_v47  ;;  %v4310_v44 = vpack.c.bf16 %v8644_v29, %v8642_v5  ;;  %v8724_v57 = vld [vmem:[#allocation129_spill] sm:$0xff]  ;;  %v8726_v40 = vld [vmem:[#allocation135_spill] sm:$0xff]  ;;  %v8728_v41 = vld [vmem:[#allocation138_spill] sm:$0xff] }
 0x1e5   :  { %3917 = vmatprep.subr.bf16.mxu0 %v3916_v28  ;;  %v8660_v28 = vld [vmem:[#allocation33_spill] sm:$0xff]  ;;  %v8734_v36 = vld [vmem:[#allocation147_spill] sm:$0xff]  ;;  %v8736_v31 = vld [vmem:[#allocation150_spill] sm:$0xff] }
 0x1e6   :  { %4299 = vmatpush1.bf16.msra.mxu1 %v4298_v39  ;;  %v8670_v39 = vld [vmem:[#allocation49_spill] sm:$0xff]  ;;  %v8738_v62 = vld [vmem:[#allocation156_spill] sm:$0xff]  ;;  %v8742_v26 = vld [vmem:[#allocation159_spill] sm:$0xff] }
 0x1e7   :  { %4301 = vmatprep.subr.bf16.mxu1 %v4300_v58  ;;  %v8676_v58 = vld [vmem:[#allocation57_spill] sm:$0xff]  ;;  %v8744_v11 = vld [vmem:[#allocation162_spill] sm:$0xff] }
 0x1e8   :  { %3919 = vmatpush1.bf16.msra.mxu0 %v3918_v37  ;;  %v8686_v37 = vld [vmem:[#allocation73_spill] sm:$0xff] }
 0x1e9   :  { %3921 = vmatprep.subr.bf16.mxu0 %v3920_v52  ;;  %v8692_v52 = vld [vmem:[#allocation81_spill] sm:$0xff] }
 0x1ea   :  { %4303 = vmatpush1.bf16.msra.mxu1 %v4302_v27  ;;  %v8702_v27 = vld [vmem:[#allocation97_spill] sm:$0xff] }
 0x1eb   :  { %4305 = vmatprep.subr.bf16.mxu1 %v4304_v16  ;;  %v8708_v16 = vld [vmem:[#allocation105_spill] sm:$0xff] }
 0x1ec   :  { %3923 = vmatpush1.bf16.msra.mxu0 %v3922_v10  ;;  %v8714_v10 = vld [vmem:[#allocation120_spill] sm:$0xff]  ;;  %v8732_v48 = vld [vmem:[#allocation141_spill] sm:$0xff] }
 0x1ed   :  { %3925 = vmatprep.subr.bf16.mxu0 %v3924_v59  ;;  %v8720_v59 = vld [vmem:[#allocation126_spill] sm:$0xff]  ;;  %v8746_v63 = vld [vmem:[#allocation169_spill] sm:$0xff] }
 0x1ee   :  { %4307 = vmatpush1.bf16.msra.mxu1 %v4306_v43  ;;  %v8730_v43 = vld [vmem:[#allocation145_spill] sm:$0xff] }
 0x1ef   :  { %4309 = vmatprep.subr.bf16.mxu1 %v4308_v61  ;;  %v8740_v61 = vld [vmem:[#allocation153_spill] sm:$0xff] }
 0x1f0   :  { %3927 = vmatpush1.bf16.msra.mxu0 %v3926_v23  ;;  %v8748_v17 = vld [vmem:[#allocation165_spill] sm:$0xff] }
 0x1f1   :  { %3929 = vmatprep.subr.msk.bf16.mxu0 %vm4632_vm4, %v8645_v6  ;;  %vm8657_vm4 = vnez %v8656_v20  ;;  %v8753_v30 = vld [vmem:[#allocation177_spill] sm:$0xff] }
 0x1f2   :  { %4311 = vmatpush1.bf16.msra.mxu1 %v4310_v44 }
 0x1f3   :  { %4313 = vmatprep.subr.msk.bf16.mxu1 %vm4645_vm5, %v8645_v6  ;;  %1424 = vmatmul.mubr.f32.vlgmr.msra.gmra.mrb[0].mxu0 %v8648_v18  ;;  %vm8659_vm5 = vnez %v8658_v56 }
 0x1f4   :  { %3931 = vmatpush1.bf16.msk.msra.mxu0 %vm4664_vm10, %v8645_v6  ;;  %1559 = vmatprep.mubr.f32.mxu0 %v8650_v0  ;;  %vm8661_vm10 = vnez %v8660_v28 }
 0x1f5   :  { %2918 = vmatmul.mubr.f32.vlgmr.msra.gmra.mrb[0].mxu1 %v8651_v51  ;;  %3933 = vmatprep.subr.msk.bf16.mxu0 %vm4700_vm0, %v8645_v6  ;;  %vm8665_vm0 = vnez %v8664_v60 }
 0x1f6   :  { %4315 = vmatpush1.bf16.msk.msra.mxu1 %vm4677_vm11, %v8645_v6  ;;  %3053 = vmatprep.mubr.f32.mxu1 %v8654_v4  ;;  %vm8663_vm11 = vnez %v8662_v46 }
 0x1f7   :  { %4317 = vmatprep.subr.msk.bf16.mxu1 %vm4711_vm1, %v8645_v6  ;;  %vm8667_vm1 = vnez %v8666_v13 }
 0x1f8   :  { %3935 = vmatpush1.bf16.msk.msra.mxu0 %vm8657_vm4, %v8645_v6  ;;  %vm8669_vm4 = vnez %v8668_v19 }
 0x1f9   :  { %3937 = vmatprep.subr.msk.bf16.mxu0 %vm8659_vm5, %v8645_v6  ;;  %vm8671_vm5 = vnez %v8670_v39 }
 0x1fa   :  { %4319 = vmatpush1.bf16.msk.msra.mxu1 %vm8661_vm10, %v8645_v6  ;;  %vm8673_vm10 = vnez %v8672_v38 }
 0x1fb   :  { %4321 = vmatprep.subr.msk.bf16.mxu1 %vm8663_vm11, %v8645_v6  ;;  %vm8675_vm11 = vnez %v8674_v25 }
 0x1fc   :  { %3939 = vmatpush1.bf16.msk.msra.mxu0 %vm8665_vm0, %v8645_v6  ;;  %vm8677_vm0 = vnez %v8676_v58 }
 0x1fd   :  { %3941 = vmatprep.subr.msk.bf16.mxu0 %vm8667_vm1, %v8645_v6  ;;  %vm8679_vm1 = vnez %v8678_v12 }
 0x1fe   :  { %4323 = vmatpush1.bf16.msk.msra.mxu1 %vm8669_vm4, %v8645_v6  ;;  %vm8681_vm4 = vnez %v8680_v21 }
 0x1ff   :  { %4325 = vmatprep.subr.msk.bf16.mxu1 %vm8671_vm5, %v8645_v6  ;;  %vm8683_vm5 = vnez %v8682_v34 }
 0x200   :  { %3943 = vmatpush1.bf16.msk.msra.mxu0 %vm8673_vm10, %v8645_v6  ;;  %vm8685_vm10 = vnez %v8684_v15 }
 0x201   :  { %3945 = vmatprep.subr.msk.bf16.mxu0 %vm8675_vm11, %v8645_v6  ;;  %vm8687_vm11 = vnez %v8686_v37 }
 0x202   :  { %4327 = vmatpush1.bf16.msk.msra.mxu1 %vm8677_vm0, %v8645_v6  ;;  %vm8689_vm0 = vnez %v8688_v53 }
 0x203   :  { %4329 = vmatprep.subr.msk.bf16.mxu1 %vm8679_vm1, %v8645_v6  ;;  %vm8691_vm1 = vnez %v8690_v14 }
 0x204   :  { %3947 = vmatpush1.bf16.msk.msra.mxu0 %vm8681_vm4, %v8645_v6  ;;  %vm8693_vm4 = vnez %v8692_v52 }
 0x205   :  { %3949 = vmatprep.subr.msk.bf16.mxu0 %vm8683_vm5, %v8645_v6  ;;  %vm8695_vm5 = vnez %v8694_v1 }
 0x206   :  { %4331 = vmatpush1.bf16.msk.msra.mxu1 %vm8685_vm10, %v8645_v6  ;;  %vm8697_vm10 = vnez %v8696_v35 }
 0x207   :  { %4333 = vmatprep.subr.msk.bf16.mxu1 %vm8687_vm11, %v8645_v6  ;;  %vm8699_vm11 = vnez %v8698_v24 }
 0x208   :  { %3951 = vmatpush1.bf16.msk.msra.mxu0 %vm8689_vm0, %v8645_v6  ;;  %vm8701_vm0 = vnez %v8700_v7 }
 0x209   :  { %3953 = vmatprep.subr.msk.bf16.mxu0 %vm8691_vm1, %v8645_v6  ;;  %vm8703_vm1 = vnez %v8702_v27 }
 0x20a   :  { %4335 = vmatpush1.bf16.msk.msra.mxu1 %vm8693_vm4, %v8645_v6  ;;  %vm8705_vm4 = vnez %v8704_v55 }
 0x20b   :  { %4337 = vmatprep.subr.msk.bf16.mxu1 %vm8695_vm5, %v8645_v6  ;;  %vm8707_vm5 = vnez %v8706_v22 }
 0x20c   :  { %3955 = vmatpush1.bf16.msk.msra.mxu0 %vm8697_vm10, %v8645_v6  ;;  %vm8709_vm10 = vnez %v8708_v16 }
 0x20d   :  { %3957 = vmatprep.subr.msk.bf16.mxu0 %vm8699_vm11, %v8645_v6  ;;  %vm8711_vm11 = vnez %v8710_v8 }
 0x20e   :  { %4339 = vmatpush1.bf16.msk.msra.mxu1 %vm8701_vm0, %v8645_v6  ;;  %vm8713_vm0 = vnez %v8712_v45 }
 0x20f   :  { %4341 = vmatprep.subr.msk.bf16.mxu1 %vm8703_vm1, %v8645_v6  ;;  %vm8715_vm1 = vnez %v8714_v10 }
 0x210   :  { %3959 = vmatpush1.bf16.msk.msra.mxu0 %vm8705_vm4, %v8645_v6  ;;  %vm8717_vm4 = vnez %v8716_v42 }
 0x211   :  { %3961 = vmatprep.subr.msk.bf16.mxu0 %vm8707_vm5, %v8645_v6  ;;  %vm8719_vm5 = vnez %v8718_v3 }
 0x212   :  { %4343 = vmatpush1.bf16.msk.msra.mxu1 %vm8709_vm10, %v8645_v6  ;;  %vm8721_vm10 = vnez %v8720_v59 }
 0x213   :  { %4345 = vmatprep.subr.msk.bf16.mxu1 %vm8711_vm11, %v8645_v6  ;;  %vm8723_vm11 = vnez %v8722_v32 }
 0x214   :  { %3963 = vmatpush1.bf16.msk.msra.mxu0 %vm8713_vm0, %v8645_v6  ;;  %vm8725_vm0 = vnez %v8724_v57 }
 0x215   :  { %3965 = vmatprep.subr.msk.bf16.mxu0 %vm8715_vm1, %v8645_v6  ;;  %vm8727_vm1 = vnez %v8726_v40 }
 0x216   :  { %4347 = vmatpush1.bf16.msk.msra.mxu1 %vm8717_vm4, %v8645_v6  ;;  %vm8729_vm4 = vnez %v8728_v41 }
 0x217   :  { %4349 = vmatprep.subr.msk.bf16.mxu1 %vm8719_vm5, %v8645_v6  ;;  %vm8731_vm5 = vnez %v8730_v43 }
 0x218   :  { %3967 = vmatpush1.bf16.msk.msra.mxu0 %vm8721_vm10, %v8645_v6  ;;  %vm8733_vm10 = vnez %v8732_v48 }
 0x219   :  { %3969 = vmatprep.subr.msk.bf16.mxu0 %vm8723_vm11, %v8645_v6  ;;  %vm8735_vm11 = vnez %v8734_v36 }
 0x21a   :  { %4351 = vmatpush1.bf16.msk.msra.mxu1 %vm8725_vm0, %v8645_v6  ;;  %vm8737_vm0 = vnez %v8736_v31 }
 0x21b   :  { %4353 = vmatprep.subr.msk.bf16.mxu1 %vm8727_vm1, %v8645_v6  ;;  %vm8739_vm1 = vnez %v8738_v62 }
 0x21c   :  { %3971 = vmatpush1.bf16.msk.msra.mxu0 %vm8729_vm4, %v8645_v6  ;;  %vm8741_vm4 = vnez %v8740_v61 }
 0x21d   :  { %3973 = vmatprep.subr.msk.bf16.mxu0 %vm8731_vm5, %v8645_v6  ;;  %vm8743_vm5 = vnez %v8742_v26 }
 0x21e   :  { %4355 = vmatpush1.bf16.msk.msra.mxu1 %vm8733_vm10, %v8645_v6  ;;  %vm8745_vm10 = vnez %v8744_v11 }
 0x21f   :  { %4357 = vmatprep.subr.msk.bf16.mxu1 %vm8735_vm11, %v8645_v6  ;;  %vm8747_vm11 = vnez %v8746_v63 }
 0x220   :  { %3975 = vmatpush1.bf16.msk.msra.mxu0 %vm8737_vm0, %v8645_v6  ;;  %vm8749_vm0 = vnez %v8748_v17 }
 0x221   :  { %3977 = vmatprep.subr.msk.bf16.mxu0 %vm8739_vm1, %v8645_v6  ;;  %vm8754_vm1 = vnez %v8753_v30 }
 0x222   :  { %4359 = vmatpush1.bf16.msk.msra.mxu1 %vm8741_vm4, %v8645_v6 }
 0x223   :  { %4361 = vmatprep.subr.msk.bf16.mxu1 %vm8743_vm5, %v8645_v6 }
 0x224   :  { %3979 = vmatpush1.bf16.msk.msra.mxu0 %vm8745_vm10, %v8645_v6 }
 0x225   :  { %3981 = vmatprep.subr.msk.bf16.mxu0 %vm8747_vm11, %v8645_v6 }
 0x226   :  { %4363 = vmatpush1.bf16.msk.msra.mxu1 %vm8749_vm0, %v8645_v6 }
 0x227   :  { %4365 = vmatprep.subr.msk.bf16.mxu1 %vm8415_vm7, %v8645_v6 }
 0x228   :  { %3983 = vmatpush1.bf16.msk.msra.mxu0 %vm8417_vm8, %v8645_v6 }
 0x229   :  { %3985 = vmatprep.subr.msk.bf16.mxu0 %vm8419_vm2, %v8645_v6 }
 0x22a   :  { %4367 = vmatpush1.bf16.msk.msra.mxu1 %vm8754_vm1, %v8645_v6 }
 0x22b   :  { %4369 = vmatprep.subr.msk.bf16.mxu1 %vm8423_vm12, %v8645_v6 }
 0x22c   :  { %3987 = vmatpush1.bf16.msk.msra.mxu0 %vm8425_vm13, %v8645_v6 }
 0x22d   :  { %3989 = vmatprep.subr.msk.bf16.mxu0 %vm5726_vm15, %v8645_v6 }
 0x22e   :  { %4371 = vmatpush1.bf16.msk.msra.mxu1 %vm8430_vm9, %v8645_v6 }
 0x22f   :  { %4373 = vmatprep.subr.msk.bf16.mxu1 %vm5740_vm14, %v8645_v6 }
 0x230   :  { %3991 = vmatpush1.bf16.msk.msra.mxu0 %vm5754_vm3, %v8645_v6 }
 0x232   :  { %4375 = vmatpush1.bf16.msk.msra.mxu1 %vm5770_vm6, %v8645_v6 }
 0x233   :  { %1561 = vmatmul.mubr.f32.vlgmr.msra.gmra.mrb[0].mxu0 %v8648_v18 }
 0x235   :  { %3055 = vmatmul.mubr.f32.vlgmr.msra.gmra.mrb[0].mxu1 %v8651_v51 }
 0x306   :  { %v1562_v49 = vpop.f32.mrb[0].mxu0 }
 0x307   :  { %v1564_v4 = vpop.f32.mrb[1].mxu0 }
 0x308   :  { %v3056_v47 = vpop.f32.mrb[0].mxu1  ;;  %v1569_v20 = vcombine.low %v1562_v49, %v1564_v4 }
 0x309   :  { %v3058_v56 = vpop.f32.mrb[1].mxu1 }
 0x30a   :  { %1571 = vst [vmem:[#allocation7] sm:$0xff] %v1569_v20  ;;  %v3063_v28 = vcombine.low %v3056_v47, %v3058_v56 }
 0x30b   :  { %4459 = shalt.err (!%p4456_p6)
}
 0x30c   :  { %s4460_s24 = scalar_lea.hbm %s7136_s4, 128 }
 0x30d   :  { %p4461_p7 = scmp.ne.s32.totalorder %s7136_s4, %s4460_s24  ;;  %p4464_p8 = scmp.lt.u32.totalorder %s4460_s24, %s7136_s4 }
 0x30f   :  { %p4466_p9 = pnand %p4464_p8, %p4461_p7 }
 0x311   :  { %4469 = shalt.err (!%p4466_p9)
}
 0x312   :  { %3075 = dma.vmem_to_hbm [thread:$0]  %s3073_s3, 128, %s7136_s4, [#allocation4]   ;;  %3065 = vst [vmem:[#allocation8] sm:$0xff] %v3063_v28 }
 0x313   :  { %s4470_s6 = scalar_lea.vmem %s3083_s20, 128  ;;  %p4475_p11 = scmp.lt.s32.totalorder %s3083_s20, %s3083_s20 }
 0x314   :  { %p4471_p10 = scmp.ne.s32.totalorder %s3083_s20, %s4470_s6  ;;  %p4476_p12 = scmp.lt.s32.totalorder %s4470_s6, %s4470_s6 }
 0x316   :  { %p4477_p13 = por %p4476_p12, %p4475_p11 }
 0x318   :  { %p4478_p0 = pnand %p4477_p13, %p4471_p10 }
 0x31a   :  { %4481 = shalt.err (!%p4478_p0)
}
 0x31b   :  { %s4482_s9 = scalar_lea.hbm %s7137_s5, 128 }
 0x31c   :  { %p4483_p1 = scmp.ne.s32.totalorder %s7137_s5, %s4482_s9  ;;  %p4486_p2 = scmp.lt.u32.totalorder %s4482_s9, %s7137_s5 }
 0x31e   :  { %p4488_p3 = pnand %p4486_p2, %p4483_p1 }
 0x320   :  { %4491 = shalt.err (!%p4488_p3)
}
 0x321   :  { %3085 = dma.vmem_to_hbm [thread:$0]  %s3083_s20, 128, %s7137_s5, [#allocation9]  }
 0x322   :  { %4496 = dma.done.wait [#allocation4], 128  }
 0x323   :  { %4497 = vsyncadd [#allocation4], 4294967168 }
 0x324   :  { %4498 = dma.done.wait [#allocation9], 128  }
 0x325   :  { %4499 = vsyncadd [#allocation9], 4294967168 }
 0x326   :  { %3092 = vsyncpa [#allocation3], 1 }
 0x327   :  { %3093 = vsyncpa [#allocation6], 1 }
 0x328   :  { %3094 = vsyncpa [#allocation4], 1 }
 0x329   :  { %3095 = vsyncpa [#allocation9], 1 }

</bundles_post_ra>
